<compile_context>
chip_gen: v7x
topology: tpu7x:2x2x1
jax: 0.10.0
libtpu: 0.0.40
codegen_flags: <defaults>
</compile_context>

<pallas_src>
import math

import jax
import jax.numpy as jnp
from jax import lax
from jax.experimental import pallas as pl
from jax.experimental.pallas import tpu as pltpu

# ----------------------------- config (small) --------------------------------
B = 2                                   # batch
IMG_C, IMG_H, IMG_W = 3, 16, 16         # image (NCHW)
PATCH = 4                               # encoder conv kernel = stride
T = (IMG_H // PATCH) * (IMG_W // PATCH)  # num_image_tokens = 16
P_FLAT = IMG_C * PATCH * PATCH          # flattened patch size = 48
D_LAT = 32                              # VQ latent dim
K_CODE = 32                             # num_codebook_vectors
MASK_TOKEN = K_CODE                     # mask_token_id
V = K_CODE + 1                          # transformer vocab (codebook + mask)
V_PAD = 128                             # lane-dense padded vocab for logits
D = 32                                  # transformer width
H_MLP = 64                              # MLP hidden
N_HEADS = 4
HEAD_DIM = D // N_HEADS
N_LAYERS = 2
LN_EPS = 1e-12                          # BERT-style eps (PyTorch default 1e-5)
CHOICE_TEMPERATURE = 4.5                # kept for parity with the module config

# ---- packed-parameter slab layouts ----
# slab32: f32, 32 lanes, rows:
R_WENC = 0                              # rows [0, 48)   : w_enc (P_FLAT, D_LAT)
R_BENC = 48                             # row  48        : b_enc (D_LAT,)
R_CB = 56                               # rows [56, 88)  : codebook (K, D_LAT)
R_POS = 88                              # rows [88, 104) : pos_emb (T, D)
N_SLAB32 = 104

# vec slab: f32, 128 lanes, one parameter vector per row (cols [0:len) used):
VR_LN_IN_G, VR_LN_IN_B = 0, 1
VR_B_TP, VR_LN_TP_G, VR_LN_TP_B = 2, 3, 4
VR_LAYER0 = 5
VEC_PER_LAYER = 10   # b_q, b_k, b_v, b_ao, ln1_g, ln1_b, b_mlp1, b_mlp2, ln2_g, ln2_b
VR_OUT_BIAS = 32                        # rows [32, 48) : out_bias (T, V) padded to 128
N_VEC = VR_OUT_BIAS + T                 # 48


# --------------------------- fused MaskGit kernel -----------------------------
def maskgit_fused_kernel(patches_ref, mask_ref, slab32_ref, vec_ref,
                         attn_w_ref, mats_ref, tok_emb_ref,
                         logits_ref, zidx_ref):
    """One batch element per grid step.

    patches_ref : (1, T, P_FLAT) f32
    mask_ref    : (1, T, 1)      i32   (1 -> replace with mask token)
    slab32_ref  : (N_SLAB32, 32) f32   w_enc / b_enc / codebook / pos_emb
    vec_ref     : (N_VEC, 128)   f32   LN gammas/betas, biases, out_bias
    attn_w_ref  : (L, 4, H, D, HEAD_DIM) bf16  slots: w_q, w_k, w_v, w_o^T per head
    mats_ref    : (2L+1, 64, 64) bf16  per-layer w_mlp1/w_mlp2 + head w_tp (padded)
    tok_emb_ref : (V_PAD, D)     bf16  token embedding (rows >= V are zero)
    logits_ref  : (1, T, V_PAD)  f32 out
    zidx_ref    : (1, T, 1)      i32 out
    """
    f32 = jnp.float32
    bf16 = jnp.bfloat16

    def vrow(r, n):
        return vec_ref[r:r + 1, 0:n]                               # (1, n) f32

    def layer_norm(x, g, b):
        mu = jnp.mean(x, axis=-1, keepdims=True)
        var = jnp.mean((x - mu) ** 2, axis=-1, keepdims=True)
        return (x - mu) * lax.rsqrt(var + LN_EPS) * g + b

    # ---------- frozen VQGAN encoder (patch conv) + vector quantization ----------
    p = patches_ref[0]                                             # (T, P_FLAT)
    w_enc = slab32_ref[R_WENC:R_WENC + P_FLAT, :]                  # (48, 32)
    b_enc = slab32_ref[R_BENC:R_BENC + 1, :]                       # (1, 32)
    cb = slab32_ref[R_CB:R_CB + K_CODE, :]                         # (K, 32)
    pos = slab32_ref[R_POS:R_POS + T, :]                           # (T, D)

    z = jnp.dot(p, w_enc, preferred_element_type=f32) + b_enc      # (T, D_LAT)
    z_sq = jnp.sum(z * z, axis=-1, keepdims=True)                  # (T, 1)
    cb_sq = jnp.sum(cb * cb, axis=-1)[None, :]                     # (1, K)
    cross = lax.dot_general(z, cb, (((1,), (1,)), ((), ())),
                            preferred_element_type=f32)            # (T, K)
    dists = z_sq - 2.0 * cross + cb_sq                             # (T, K)
    min_d = jnp.min(dists, axis=-1, keepdims=True)
    iota_k = lax.broadcasted_iota(jnp.int32, dists.shape, 1)
    idx = jnp.min(jnp.where(dists <= min_d, iota_k, jnp.int32(K_CODE)),
                  axis=-1, keepdims=True)                          # (T, 1) int32
    zidx_ref[0] = idx

    # ---------- mask fill + token embedding lookup (one-hot @ tok_emb) ----------
    m = mask_ref[0]                                                # (T, 1) int32
    midx = jnp.where(m != 0, jnp.int32(MASK_TOKEN), idx)           # (T, 1)
    iota_v = lax.broadcasted_iota(jnp.int32, (T, V_PAD), 1)
    onehot = jnp.where(iota_v == midx, f32(1.0), f32(0.0)).astype(bf16)
    x = jnp.dot(onehot, tok_emb_ref[...], preferred_element_type=f32)  # (T, D)
    x = x + pos
    x = layer_norm(x, vrow(VR_LN_IN_G, D), vrow(VR_LN_IN_B, D))
    # dropout layers are identity in eval / forward-inference semantics

    # --------------------------- transformer layers ------------------------------
    scale = 1.0 / math.sqrt(HEAD_DIM)
    for l in range(N_LAYERS):
        base = VR_LAYER0 + l * VEC_PER_LAYER
        b_q = vrow(base + 0, D)
        b_k = vrow(base + 1, D)
        b_v = vrow(base + 2, D)
        b_ao = vrow(base + 3, D)
        ln1_g, ln1_b = vrow(base + 4, D), vrow(base + 5, D)
        b_m1 = vrow(base + 6, H_MLP)
        b_m2 = vrow(base + 7, D)
        ln2_g, ln2_b = vrow(base + 8, D), vrow(base + 9, D)

        # ---- multi-head self-attention: per-head weight tiles, summed output ----
        x_bf = x.astype(bf16)
        attn = jnp.zeros((T, D), f32)
        for h in range(N_HEADS):
            sl = slice(h * HEAD_DIM, (h + 1) * HEAD_DIM)
            qh = jnp.dot(x_bf, attn_w_ref[l, 0, h],
                         preferred_element_type=f32) + b_q[:, sl]   # (T, hd)
            kh = jnp.dot(x_bf, attn_w_ref[l, 1, h],
                         preferred_element_type=f32) + b_k[:, sl]
            vh = jnp.dot(x_bf, attn_w_ref[l, 2, h],
                         preferred_element_type=f32) + b_v[:, sl]
            s = lax.dot_general(qh, kh, (((1,), (1,)), ((), ())),
                                preferred_element_type=f32) * scale  # (T, T)
            s = s - jnp.max(s, axis=-1, keepdims=True)
            e = jnp.exp(s)
            pattn = e * pl.reciprocal(jnp.sum(e, axis=-1, keepdims=True),
                                      approx=True)
            pv = jnp.dot(pattn.astype(bf16), vh.astype(bf16),
                         preferred_element_type=f32)                 # (T, hd)
            # per-head output projection; slot 3 stores W_o^T as (D, hd)
            attn = attn + lax.dot_general(pv.astype(bf16), attn_w_ref[l, 3, h],
                                          (((1,), (1,)), ((), ())),
                                          preferred_element_type=f32)
        x = x + attn + b_ao
        x = layer_norm(x, ln1_g, ln1_b)

        # ---- MLP ----
        x_bf = x.astype(bf16)
        h1 = jnp.dot(x_bf, mats_ref[2 * l + 0, 0:D, :],
                     preferred_element_type=f32) + b_m1              # (T, H_MLP)
        h1 = jax.nn.gelu(h1, approximate=True)  # tanh-GELU (PyTorch default is erf-exact)
        h2 = jnp.dot(h1.astype(bf16), mats_ref[2 * l + 1, :, 0:D],
                     preferred_element_type=f32) + b_m2              # (T, D)
        x = x + h2
        x = layer_norm(x, ln2_g, ln2_b)

    # ---- token-prediction head: Linear -> GELU -> LN -> @ tok_emb^T + bias ----
    y = jnp.dot(x.astype(bf16), mats_ref[2 * N_LAYERS, 0:D, 0:D],
                preferred_element_type=f32) + vrow(VR_B_TP, D)
    y = jax.nn.gelu(y, approximate=True)
    y = layer_norm(y, vrow(VR_LN_TP_G, D), vrow(VR_LN_TP_B, D))
    logits = lax.dot_general(y.astype(bf16), tok_emb_ref[...],
                             (((1,), (1,)), ((), ())),
                             preferred_element_type=f32)             # (T, V_PAD)
    logits = logits + vec_ref[VR_OUT_BIAS:VR_OUT_BIAS + T, :]        # out_bias
    logits_ref[0] = logits


# ------------------------------- glue (JAX) -----------------------------------
def extract_patches(x):
    """x: (B, C, H, W) NCHW -> (B, T, C*PATCH*PATCH), flatten order (C, kh, kw)."""
    b, c, h, w = x.shape
    x = x.reshape(b, c, h // PATCH, PATCH, w // PATCH, PATCH)
    x = x.transpose(0, 2, 4, 1, 3, 5)        # (B, H/P, W/P, C, P, P)
    return x.reshape(b, (h // PATCH) * (w // PATCH), c * PATCH * PATCH)


def _full_spec(arr):
    nd = arr.ndim
    return pl.BlockSpec(arr.shape, lambda b, _nd=nd: (0,) * _nd)


def maskgit_forward(packed, x, key_r, key_mask):
    """Mirrors MaskGit.forward: returns (logits, z_indices)."""
    patches = extract_patches(x)                                    # (B, T, 48)
    r = jax.random.uniform(key_r, ())                               # np.random.uniform()
    mask_rate = jnp.cos(r * jnp.pi / 2.0)                           # gamma('cosine')
    mask = jax.random.uniform(key_mask, (B, T)) < mask_rate         # torch.rand < rate
    mask_i = mask.astype(jnp.int32).reshape(B, T, 1)

    slabs = [packed["slab32"], packed["vec"], packed["attn_w"],
             packed["mats"], packed["tok_emb_pad"]]
    in_specs = [
        pl.BlockSpec((1, T, P_FLAT), lambda b: (b, 0, 0)),          # patches
        pl.BlockSpec((1, T, 1), lambda b: (b, 0, 0)),               # mask
    ] + [_full_spec(s) for s in slabs]

    logits_pad, zidx = pl.pallas_call(
        maskgit_fused_kernel,
        out_shape=(jax.ShapeDtypeStruct((B, T, V_PAD), jnp.float32),
                   jax.ShapeDtypeStruct((B, T, 1), jnp.int32)),
        grid=(B,),
        in_specs=in_specs,
        out_specs=(pl.BlockSpec((1, T, V_PAD), lambda b: (b, 0, 0)),
                   pl.BlockSpec((1, T, 1), lambda b: (b, 0, 0))),
        # "parallel" batch axis: shards across the 2 TensorCores on v7x; on
        # single-TC v5e/v6e it is just a cheap 2-step serial loop.
        compiler_params=pltpu.CompilerParams(
            dimension_semantics=("parallel",)),
    )(patches, mask_i, *slabs)

    logits = logits_pad[:, :, :V]                                   # strip vocab pad
    z_indices = zidx.reshape(B, T)
    return logits, z_indices


# --------------------------- deterministic params -----------------------------
def init_params(key):
    ks = jax.random.split(key, 12)
    nrm = lambda k, shape, std=0.02: std * jax.random.normal(k, shape, jnp.float32)
    return {
        # synthetic frozen VQGAN encoder + codebook
        "w_enc": nrm(ks[0], (P_FLAT, D_LAT), 0.1),
        "b_enc": jnp.zeros((D_LAT,), jnp.float32),
        "codebook": nrm(ks[1], (K_CODE, D_LAT), 1.0),
        # transformer embeddings
        "tok_emb": nrm(ks[2], (V, D)),
        "pos_emb": nrm(ks[3], (T, D)),
        "ln_in_g": jnp.ones((D,), jnp.float32),
        "ln_in_b": jnp.zeros((D,), jnp.float32),
        # per-layer attention projections (separate q/k/v, no fused qkv)
        "w_q": nrm(ks[4], (N_LAYERS, D, D)),
        "w_k": nrm(ks[5], (N_LAYERS, D, D)),
        "w_v": nrm(ks[6], (N_LAYERS, D, D)),
        "w_ao": nrm(ks[7], (N_LAYERS, D, D)),
        "b_q": jnp.zeros((N_LAYERS, D), jnp.float32),
        "b_k": jnp.zeros((N_LAYERS, D), jnp.float32),
        "b_v": jnp.zeros((N_LAYERS, D), jnp.float32),
        "b_ao": jnp.zeros((N_LAYERS, D), jnp.float32),
        "ln1_g": jnp.ones((N_LAYERS, D), jnp.float32),
        "ln1_b": jnp.zeros((N_LAYERS, D), jnp.float32),
        # per-layer MLP
        "w_mlp1": nrm(ks[8], (N_LAYERS, D, H_MLP)),
        "b_mlp1": jnp.zeros((N_LAYERS, H_MLP), jnp.float32),
        "w_mlp2": nrm(ks[9], (N_LAYERS, H_MLP, D)),
        "b_mlp2": jnp.zeros((N_LAYERS, D), jnp.float32),
        "ln2_g": jnp.ones((N_LAYERS, D), jnp.float32),
        "ln2_b": jnp.zeros((N_LAYERS, D), jnp.float32),
        # token-prediction head
        "w_tp": nrm(ks[10], (D, D)),
        "b_tp": jnp.zeros((D,), jnp.float32),
        "ln_tp_g": jnp.ones((D,), jnp.float32),
        "ln_tp_b": jnp.zeros((D,), jnp.float32),
        "out_bias": jnp.zeros((T, V), jnp.float32),
    }


def pack_params(p):
    """Pack the logical parameter dict into a few DMA-friendly slabs."""
    # f32, 32-lane slab: encoder + codebook + positional embedding
    slab32 = jnp.zeros((N_SLAB32, D_LAT), jnp.float32)
    slab32 = slab32.at[R_WENC:R_WENC + P_FLAT].set(p["w_enc"])
    slab32 = slab32.at[R_BENC].set(p["b_enc"])
    slab32 = slab32.at[R_CB:R_CB + K_CODE].set(p["codebook"])
    slab32 = slab32.at[R_POS:R_POS + T].set(p["pos_emb"])

    # f32, 128-lane slab: every 1-D parameter + out_bias
    vec = jnp.zeros((N_VEC, 128), jnp.float32)
    setrow = lambda v, r, val: v.at[r, :val.shape[0]].set(val)
    vec = setrow(vec, VR_LN_IN_G, p["ln_in_g"])
    vec = setrow(vec, VR_LN_IN_B, p["ln_in_b"])
    vec = setrow(vec, VR_B_TP, p["b_tp"])
    vec = setrow(vec, VR_LN_TP_G, p["ln_tp_g"])
    vec = setrow(vec, VR_LN_TP_B, p["ln_tp_b"])
    layer_vec_names = ["b_q", "b_k", "b_v", "b_ao", "ln1_g", "ln1_b",
                       "b_mlp1", "b_mlp2", "ln2_g", "ln2_b"]
    for l in range(N_LAYERS):
        base = VR_LAYER0 + l * VEC_PER_LAYER
        for off, name in enumerate(layer_vec_names):
            vec = setrow(vec, base + off, p[name][l])
    vec = vec.at[VR_OUT_BIAS:VR_OUT_BIAS + T, :V].set(p["out_bias"])

    # bf16 attention-weight slab (L, 4, H, D, HEAD_DIM); slot 3 = W_o^T per head
    def split_in(w):  # (L, D, D) -> (L, H, D, hd)
        return w.reshape(N_LAYERS, D, N_HEADS, HEAD_DIM).transpose(0, 2, 1, 3)
    wo_t = p["w_ao"].reshape(N_LAYERS, N_HEADS, HEAD_DIM, D).transpose(0, 1, 3, 2)
    attn_w = jnp.stack([split_in(p["w_q"]), split_in(p["w_k"]),
                        split_in(p["w_v"]), wo_t], axis=1).astype(jnp.bfloat16)

    # bf16 matrix slab (2L+1, 64, 64): per-layer MLP weights + head w_tp (zero pad)
    mats = jnp.zeros((2 * N_LAYERS + 1, 64, 64), jnp.float32)
    for l in range(N_LAYERS):
        mats = mats.at[2 * l, :D, :H_MLP].set(p["w_mlp1"][l])
        mats = mats.at[2 * l + 1, :H_MLP, :D].set(p["w_mlp2"][l])
    mats = mats.at[2 * N_LAYERS, :D, :D].set(p["w_tp"]).astype(jnp.bfloat16)

    # bf16 token embedding padded to a lane-dense vocab of 128
    tok_emb_pad = jnp.zeros((V_PAD, D), jnp.float32).at[:V].set(
        p["tok_emb"]).astype(jnp.bfloat16)

    return {"slab32": slab32, "vec": vec, "attn_w": attn_w,
            "mats": mats, "tok_emb_pad": tok_emb_pad}


# ----------------------------------- main --------------------------------------
if __name__ == "__main__":
    key = jax.random.PRNGKey(0)
    k_img, k_param, k_r, k_mask = jax.random.split(key, 4)

    x = jax.random.normal(k_img, (B, IMG_C, IMG_H, IMG_W), jnp.float32)
    packed = pack_params(init_params(k_param))

    logits, z_indices = maskgit_forward(packed, x, k_r, k_mask)
    jax.block_until_ready((logits, z_indices))

    assert logits.shape == (B, T, V) and logits.dtype == jnp.float32
    assert z_indices.shape == (B, T) and z_indices.dtype == jnp.int32
    assert bool(jnp.all(jnp.isfinite(logits)))
    assert bool(jnp.all((z_indices >= 0) & (z_indices < K_CODE)))
    print("KERNEL_OK")
</pallas_src>

<mosaic_0001>
module attributes {stable_mosaic.version = 11 : i64} {
  func.func @maskgit_fused_kernel(%arg0: i32, %arg1: memref<1x16x48xf32, #tpu.memory_space<vmem>>, %arg2: memref<1x16x1xi32, #tpu.memory_space<vmem>>, %arg3: memref<104x32xf32, #tpu.memory_space<vmem>>, %arg4: memref<48x128xf32, #tpu.memory_space<vmem>>, %arg5: memref<2x4x4x32x8xbf16, #tpu.memory_space<vmem>>, %arg6: memref<5x64x64xbf16, #tpu.memory_space<vmem>>, %arg7: memref<128x32xbf16, #tpu.memory_space<vmem>>, %arg8: memref<1x16x128xf32, #tpu.memory_space<vmem>>, %arg9: memref<1x16x1xi32, #tpu.memory_space<vmem>>) attributes {dimension_semantics = [#tpu.dimension_semantics<parallel>], iteration_bounds = array<i64: 2>, scalar_prefetch = 0 : i64, scratch_operands = 0 : i64, tpu.core_type = #tpu.core_type<tc>, window_params = [{transform_indices = @transform_0, window_bounds = array<i64: 1, 16, 48>}, {transform_indices = @transform_1, window_bounds = array<i64: 1, 16, 1>}, {pipeline_mode = #tpu.pipeline_mode<synchronous>, transform_indices = @transform_2, window_bounds = array<i64: 104, 32>}, {pipeline_mode = #tpu.pipeline_mode<synchronous>, transform_indices = @transform_3, window_bounds = array<i64: 48, 128>}, {pipeline_mode = #tpu.pipeline_mode<synchronous>, transform_indices = @transform_4, window_bounds = array<i64: 2, 4, 4, 32, 8>}, {pipeline_mode = #tpu.pipeline_mode<synchronous>, transform_indices = @transform_5, window_bounds = array<i64: 5, 64, 64>}, {pipeline_mode = #tpu.pipeline_mode<synchronous>, transform_indices = @transform_6, window_bounds = array<i64: 128, 32>}, {transform_indices = @transform_7, window_bounds = array<i64: 1, 16, 128>}, {transform_indices = @transform_8, window_bounds = array<i64: 1, 16, 1>}]} {
    %c0 = arith.constant 0 : index
    %c0_0 = arith.constant 0 : index
    %c0_1 = arith.constant 0 : index
    %0 = vector.load %arg1[%c0, %c0_0, %c0_1] : memref<1x16x48xf32, #tpu.memory_space<vmem>>, vector<1x16x48xf32>
    %1 = vector.shape_cast %0 : vector<1x16x48xf32> to vector<16x48xf32>
    %c0_2 = arith.constant 0 : index
    %c0_3 = arith.constant 0 : index
    %2 = vector.load %arg3[%c0_2, %c0_3] : memref<104x32xf32, #tpu.memory_space<vmem>>, vector<48x32xf32>
    %c48 = arith.constant 48 : index
    %c0_4 = arith.constant 0 : index
    %3 = vector.load %arg3[%c48, %c0_4] : memref<104x32xf32, #tpu.memory_space<vmem>>, vector<1x32xf32>
    %c56 = arith.constant 56 : index
    %c0_5 = arith.constant 0 : index
    %4 = vector.load %arg3[%c56, %c0_5] : memref<104x32xf32, #tpu.memory_space<vmem>>, vector<32x32xf32>
    %c88 = arith.constant 88 : index
    %c0_6 = arith.constant 0 : index
    %5 = vector.load %arg3[%c88, %c0_6] : memref<104x32xf32, #tpu.memory_space<vmem>>, vector<16x32xf32>
    %cst = arith.constant dense<0.000000e+00> : vector<16x32xf32>
    %6 = tpu.matmul %1, %2, %cst {dimension_numbers = #tpu.dot_dimension_numbers<[1], [0], [0], [1], [0, 0, 1, 1], [], []>} : vector<16x48xf32>, vector<48x32xf32>, vector<16x32xf32> -> vector<16x32xf32>
    %7 = vector.broadcast %3 : vector<1x32xf32> to vector<16x32xf32>
    %8 = arith.addf %6, %7 : vector<16x32xf32>
    %9 = arith.mulf %8, %8 : vector<16x32xf32>
    %cst_7 = arith.constant dense<0.000000e+00> : vector<16xf32>
    %10 = vector.multi_reduction <add>, %9, %cst_7 [1] : vector<16x32xf32> to vector<16xf32>
    %11 = vector.shape_cast %10 : vector<16xf32> to vector<16x1xf32>
    %12 = arith.mulf %4, %4 : vector<32x32xf32>
    %cst_8 = arith.constant dense<0.000000e+00> : vector<32xf32>
    %13 = vector.multi_reduction <add>, %12, %cst_8 [1] : vector<32x32xf32> to vector<32xf32>
    %14 = vector.shape_cast %13 : vector<32xf32> to vector<1x32xf32>
    %cst_9 = arith.constant dense<0.000000e+00> : vector<16x32xf32>
    %15 = tpu.matmul %8, %4, %cst_9 {dimension_numbers = #tpu.dot_dimension_numbers<[1], [1], [0], [0], [0, 0, 1, 0], [], []>} : vector<16x32xf32>, vector<32x32xf32>, vector<16x32xf32> -> vector<16x32xf32>
    %cst_10 = arith.constant 2.000000e+00 : f32
    %16 = vector.broadcast %cst_10 : f32 to vector<16x32xf32>
    %17 = arith.mulf %16, %15 : vector<16x32xf32>
    %18 = vector.broadcast %11 : vector<16x1xf32> to vector<16x32xf32>
    %19 = arith.subf %18, %17 : vector<16x32xf32>
    %20 = vector.broadcast %14 : vector<1x32xf32> to vector<16x32xf32>
    %21 = arith.addf %19, %20 : vector<16x32xf32>
    %cst_11 = arith.constant dense<0x7F800000> : vector<16xf32>
    %22 = vector.multi_reduction <minimumf>, %21, %cst_11 [1] : vector<16x32xf32> to vector<16xf32>
    %23 = vector.shape_cast %22 : vector<16xf32> to vector<16x1xf32>
    %24 = tpu.iota {dimensions = array<i32: 1>} : vector<16x32xi32>
    %25 = vector.broadcast %23 : vector<16x1xf32> to vector<16x32xf32>
    %26 = arith.cmpf ole, %21, %25 : vector<16x32xf32>
    %c32_i32 = arith.constant 32 : i32
    %27 = vector.broadcast %c32_i32 : i32 to vector<16x32xi32>
    %28 = arith.select %26, %24, %27 : vector<16x32xi1>, vector<16x32xi32>
    %cst_12 = arith.constant dense<2147483647> : vector<16xi32>
    %29 = vector.multi_reduction <minsi>, %28, %cst_12 [1] : vector<16x32xi32> to vector<16xi32>
    %30 = vector.shape_cast %29 : vector<16xi32> to vector<16x1xi32>
    %c0_13 = arith.constant 0 : index
    %c0_14 = arith.constant 0 : index
    %c0_15 = arith.constant 0 : index
    %31 = vector.load %arg9[%c0_13, %c0_14, %c0_15] : memref<1x16x1xi32, #tpu.memory_space<vmem>>, vector<1x16x1xi32>
    %32 = vector.shape_cast %31 : vector<1x16x1xi32> to vector<16x1xi32>
    %33 = vector.shape_cast %30 : vector<16x1xi32> to vector<1x16x1xi32>
    tpu.vector_store %arg9[%c0_13, %c0_14, %c0_15], %33 {strides = array<i32>} : memref<1x16x1xi32, #tpu.memory_space<vmem>>, vector<1x16x1xi32>,
    %c0_16 = arith.constant 0 : index
    %c0_17 = arith.constant 0 : index
    %c0_18 = arith.constant 0 : index
    %34 = vector.load %arg2[%c0_16, %c0_17, %c0_18] : memref<1x16x1xi32, #tpu.memory_space<vmem>>, vector<1x16x1xi32>
    %35 = vector.shape_cast %34 : vector<1x16x1xi32> to vector<16x1xi32>
    %c0_i32 = arith.constant 0 : i32
    %36 = vector.broadcast %c0_i32 : i32 to vector<16x1xi32>
    %37 = arith.cmpi ne, %35, %36 : vector<16x1xi32>
    %c32_i32_19 = arith.constant 32 : i32
    %38 = vector.broadcast %c32_i32_19 : i32 to vector<16x1xi32>
    %39 = arith.select %37, %38, %30 : vector<16x1xi1>, vector<16x1xi32>
    %40 = tpu.iota {dimensions = array<i32: 1>} : vector<16x128xi32>
    %41 = vector.broadcast %39 : vector<16x1xi32> to vector<16x128xi32>
    %42 = arith.cmpi eq, %40, %41 : vector<16x128xi32>
    %cst_20 = arith.constant 1.000000e+00 : f32
    %cst_21 = arith.constant 0.000000e+00 : f32
    %43 = vector.broadcast %cst_20 : f32 to vector<16x128xf32>
    %44 = vector.broadcast %cst_21 : f32 to vector<16x128xf32>
    %45 = arith.select %42, %43, %44 : vector<16x128xi1>, vector<16x128xf32>
    %46 = arith.truncf %45 : vector<16x128xf32> to vector<16x128xbf16>
    %c0_22 = arith.constant 0 : index
    %c0_23 = arith.constant 0 : index
    %47 = vector.load %arg7[%c0_22, %c0_23] : memref<128x32xbf16, #tpu.memory_space<vmem>>, vector<128x32xbf16>
    %cst_24 = arith.constant dense<0.000000e+00> : vector<16x32xf32>
    %48 = tpu.matmul %46, %47, %cst_24 {dimension_numbers = #tpu.dot_dimension_numbers<[1], [0], [0], [1], [0, 0, 1, 1], [], []>} : vector<16x128xbf16>, vector<128x32xbf16>, vector<16x32xf32> -> vector<16x32xf32>
    %49 = arith.addf %48, %5 : vector<16x32xf32>
    %c0_25 = arith.constant 0 : index
    %c0_26 = arith.constant 0 : index
    %50 = vector.load %arg4[%c0_25, %c0_26] : memref<48x128xf32, #tpu.memory_space<vmem>>, vector<1x32xf32>
    %c1 = arith.constant 1 : index
    %c0_27 = arith.constant 0 : index
    %51 = vector.load %arg4[%c1, %c0_27] : memref<48x128xf32, #tpu.memory_space<vmem>>, vector<1x32xf32>
    %cst_28 = arith.constant dense<0.000000e+00> : vector<16xf32>
    %52 = vector.multi_reduction <add>, %49, %cst_28 [1] : vector<16x32xf32> to vector<16xf32>
    %53 = vector.shape_cast %52 : vector<16xf32> to vector<16x1xf32>
    %cst_29 = arith.constant 3.200000e+01 : f32
    %54 = vector.broadcast %cst_29 : f32 to vector<16x1xf32>
    %55 = arith.divf %53, %54 : vector<16x1xf32>
    %56 = vector.broadcast %55 : vector<16x1xf32> to vector<16x32xf32>
    %57 = arith.subf %49, %56 : vector<16x32xf32>
    %58 = arith.mulf %57, %57 : vector<16x32xf32>
    %cst_30 = arith.constant dense<0.000000e+00> : vector<16xf32>
    %59 = vector.multi_reduction <add>, %58, %cst_30 [1] : vector<16x32xf32> to vector<16xf32>
    %60 = vector.shape_cast %59 : vector<16xf32> to vector<16x1xf32>
    %cst_31 = arith.constant 3.200000e+01 : f32
    %61 = vector.broadcast %cst_31 : f32 to vector<16x1xf32>
    %62 = arith.divf %60, %61 : vector<16x1xf32>
    %63 = vector.broadcast %55 : vector<16x1xf32> to vector<16x32xf32>
    %64 = arith.subf %49, %63 : vector<16x32xf32>
    %cst_32 = arith.constant 9.99999996E-13 : f32
    %65 = vector.broadcast %cst_32 : f32 to vector<16x1xf32>
    %66 = arith.addf %62, %65 : vector<16x1xf32>
    %67 = math.rsqrt %66 : vector<16x1xf32>
    %68 = vector.broadcast %67 : vector<16x1xf32> to vector<16x32xf32>
    %69 = arith.mulf %64, %68 : vector<16x32xf32>
    %70 = vector.broadcast %50 : vector<1x32xf32> to vector<16x32xf32>
    %71 = arith.mulf %69, %70 : vector<16x32xf32>
    %72 = vector.broadcast %51 : vector<1x32xf32> to vector<16x32xf32>
    %73 = arith.addf %71, %72 : vector<16x32xf32>
    %c5 = arith.constant 5 : index
    %c0_33 = arith.constant 0 : index
    %74 = vector.load %arg4[%c5, %c0_33] : memref<48x128xf32, #tpu.memory_space<vmem>>, vector<1x32xf32>
    %c6 = arith.constant 6 : index
    %c0_34 = arith.constant 0 : index
    %75 = vector.load %arg4[%c6, %c0_34] : memref<48x128xf32, #tpu.memory_space<vmem>>, vector<1x32xf32>
    %c7 = arith.constant 7 : index
    %c0_35 = arith.constant 0 : index
    %76 = vector.load %arg4[%c7, %c0_35] : memref<48x128xf32, #tpu.memory_space<vmem>>, vector<1x32xf32>
    %c8 = arith.constant 8 : index
    %c0_36 = arith.constant 0 : index
    %77 = vector.load %arg4[%c8, %c0_36] : memref<48x128xf32, #tpu.memory_space<vmem>>, vector<1x32xf32>
    %c9 = arith.constant 9 : index
    %c0_37 = arith.constant 0 : index
    %78 = vector.load %arg4[%c9, %c0_37] : memref<48x128xf32, #tpu.memory_space<vmem>>, vector<1x32xf32>
    %c10 = arith.constant 10 : index
    %c0_38 = arith.constant 0 : index
    %79 = vector.load %arg4[%c10, %c0_38] : memref<48x128xf32, #tpu.memory_space<vmem>>, vector<1x32xf32>
    %c11 = arith.constant 11 : index
    %c0_39 = arith.constant 0 : index
    %80 = vector.load %arg4[%c11, %c0_39] : memref<48x128xf32, #tpu.memory_space<vmem>>, vector<1x64xf32>
    %c12 = arith.constant 12 : index
    %c0_40 = arith.constant 0 : index
    %81 = vector.load %arg4[%c12, %c0_40] : memref<48x128xf32, #tpu.memory_space<vmem>>, vector<1x32xf32>
    %c13 = arith.constant 13 : index
    %c0_41 = arith.constant 0 : index
    %82 = vector.load %arg4[%c13, %c0_41] : memref<48x128xf32, #tpu.memory_space<vmem>>, vector<1x32xf32>
    %c14 = arith.constant 14 : index
    %c0_42 = arith.constant 0 : index
    %83 = vector.load %arg4[%c14, %c0_42] : memref<48x128xf32, #tpu.memory_space<vmem>>, vector<1x32xf32>
    %84 = arith.truncf %73 : vector<16x32xf32> to vector<16x32xbf16>
    %cst_43 = arith.constant 0.000000e+00 : f32
    %85 = vector.broadcast %cst_43 : f32 to vector<16x32xf32>
    %c0_44 = arith.constant 0 : index
    %c0_45 = arith.constant 0 : index
    %c0_46 = arith.constant 0 : index
    %c0_47 = arith.constant 0 : index
    %c0_48 = arith.constant 0 : index
    %86 = vector.load %arg5[%c0_44, %c0_45, %c0_46, %c0_47, %c0_48] : memref<2x4x4x32x8xbf16, #tpu.memory_space<vmem>>, vector<1x1x1x32x8xbf16>
    %87 = vector.shape_cast %86 : vector<1x1x1x32x8xbf16> to vector<32x8xbf16>
    %cst_49 = arith.constant dense<0.000000e+00> : vector<16x8xf32>
    %88 = tpu.matmul %84, %87, %cst_49 {dimension_numbers = #tpu.dot_dimension_numbers<[1], [0], [0], [1], [0, 0, 1, 1], [], []>} : vector<16x32xbf16>, vector<32x8xbf16>, vector<16x8xf32> -> vector<16x8xf32>
    %89 = vector.extract_strided_slice %74 {offsets = [0, 0], sizes = [1, 8], strides = [1, 1]} : vector<1x32xf32> to vector<1x8xf32>
    %90 = vector.broadcast %89 : vector<1x8xf32> to vector<16x8xf32>
    %91 = arith.addf %88, %90 : vector<16x8xf32>
    %c0_50 = arith.constant 0 : index
    %c1_51 = arith.constant 1 : index
    %c0_52 = arith.constant 0 : index
    %c0_53 = arith.constant 0 : index
    %c0_54 = arith.constant 0 : index
    %92 = vector.load %arg5[%c0_50, %c1_51, %c0_52, %c0_53, %c0_54] : memref<2x4x4x32x8xbf16, #tpu.memory_space<vmem>>, vector<1x1x1x32x8xbf16>
    %93 = vector.shape_cast %92 : vector<1x1x1x32x8xbf16> to vector<32x8xbf16>
    %cst_55 = arith.constant dense<0.000000e+00> : vector<16x8xf32>
    %94 = tpu.matmul %84, %93, %cst_55 {dimension_numbers = #tpu.dot_dimension_numbers<[1], [0], [0], [1], [0, 0, 1, 1], [], []>} : vector<16x32xbf16>, vector<32x8xbf16>, vector<16x8xf32> -> vector<16x8xf32>
    %95 = vector.extract_strided_slice %75 {offsets = [0, 0], sizes = [1, 8], strides = [1, 1]} : vector<1x32xf32> to vector<1x8xf32>
    %96 = vector.broadcast %95 : vector<1x8xf32> to vector<16x8xf32>
    %97 = arith.addf %94, %96 : vector<16x8xf32>
    %c0_56 = arith.constant 0 : index
    %c2 = arith.constant 2 : index
    %c0_57 = arith.constant 0 : index
    %c0_58 = arith.constant 0 : index
    %c0_59 = arith.constant 0 : index
    %98 = vector.load %arg5[%c0_56, %c2, %c0_57, %c0_58, %c0_59] : memref<2x4x4x32x8xbf16, #tpu.memory_space<vmem>>, vector<1x1x1x32x8xbf16>
    %99 = vector.shape_cast %98 : vector<1x1x1x32x8xbf16> to vector<32x8xbf16>
    %cst_60 = arith.constant dense<0.000000e+00> : vector<16x8xf32>
    %100 = tpu.matmul %84, %99, %cst_60 {dimension_numbers = #tpu.dot_dimension_numbers<[1], [0], [0], [1], [0, 0, 1, 1], [], []>} : vector<16x32xbf16>, vector<32x8xbf16>, vector<16x8xf32> -> vector<16x8xf32>
    %101 = vector.extract_strided_slice %76 {offsets = [0, 0], sizes = [1, 8], strides = [1, 1]} : vector<1x32xf32> to vector<1x8xf32>
    %102 = vector.broadcast %101 : vector<1x8xf32> to vector<16x8xf32>
    %103 = arith.addf %100, %102 : vector<16x8xf32>
    %cst_61 = arith.constant dense<0.000000e+00> : vector<16x16xf32>
    %104 = tpu.matmul %91, %97, %cst_61 {dimension_numbers = #tpu.dot_dimension_numbers<[1], [1], [0], [0], [0, 0, 1, 0], [], []>} : vector<16x8xf32>, vector<16x8xf32>, vector<16x16xf32> -> vector<16x16xf32>
    %cst_62 = arith.constant 0.353553385 : f32
    %105 = vector.broadcast %cst_62 : f32 to vector<16x16xf32>
    %106 = arith.mulf %104, %105 : vector<16x16xf32>
    %cst_63 = arith.constant dense<0xFF800000> : vector<16xf32>
    %107 = vector.multi_reduction <maximumf>, %106, %cst_63 [1] : vector<16x16xf32> to vector<16xf32>
    %108 = vector.shape_cast %107 : vector<16xf32> to vector<16x1xf32>
    %109 = vector.broadcast %108 : vector<16x1xf32> to vector<16x16xf32>
    %110 = arith.subf %106, %109 : vector<16x16xf32>
    %111 = math.exp %110 : vector<16x16xf32>
    %cst_64 = arith.constant dense<0.000000e+00> : vector<16xf32>
    %112 = vector.multi_reduction <add>, %111, %cst_64 [1] : vector<16x16xf32> to vector<16xf32>
    %113 = vector.shape_cast %112 : vector<16xf32> to vector<16x1xf32>
    %114 = tpu.reciprocal %113 {approx = true} : vector<16x1xf32> -> vector<16x1xf32>
    %115 = vector.broadcast %114 : vector<16x1xf32> to vector<16x16xf32>
    %116 = arith.mulf %111, %115 : vector<16x16xf32>
    %117 = arith.truncf %116 : vector<16x16xf32> to vector<16x16xbf16>
    %118 = arith.truncf %103 : vector<16x8xf32> to vector<16x8xbf16>
    %cst_65 = arith.constant dense<0.000000e+00> : vector<16x8xf32>
    %119 = tpu.matmul %117, %118, %cst_65 {dimension_numbers = #tpu.dot_dimension_numbers<[1], [0], [0], [1], [0, 0, 1, 1], [], []>} : vector<16x16xbf16>, vector<16x8xbf16>, vector<16x8xf32> -> vector<16x8xf32>
    %120 = arith.truncf %119 : vector<16x8xf32> to vector<16x8xbf16>
    %c0_66 = arith.constant 0 : index
    %c3 = arith.constant 3 : index
    %c0_67 = arith.constant 0 : index
    %c0_68 = arith.constant 0 : index
    %c0_69 = arith.constant 0 : index
    %121 = vector.load %arg5[%c0_66, %c3, %c0_67, %c0_68, %c0_69] : memref<2x4x4x32x8xbf16, #tpu.memory_space<vmem>>, vector<1x1x1x32x8xbf16>
    %122 = vector.shape_cast %121 : vector<1x1x1x32x8xbf16> to vector<32x8xbf16>
    %cst_70 = arith.constant dense<0.000000e+00> : vector<16x32xf32>
    %123 = tpu.matmul %120, %122, %cst_70 {dimension_numbers = #tpu.dot_dimension_numbers<[1], [1], [0], [0], [0, 0, 1, 0], [], []>} : vector<16x8xbf16>, vector<32x8xbf16>, vector<16x32xf32> -> vector<16x32xf32>
    %124 = arith.addf %85, %123 : vector<16x32xf32>
    %c0_71 = arith.constant 0 : index
    %c0_72 = arith.constant 0 : index
    %c1_73 = arith.constant 1 : index
    %c0_74 = arith.constant 0 : index
    %c0_75 = arith.constant 0 : index
    %125 = vector.load %arg5[%c0_71, %c0_72, %c1_73, %c0_74, %c0_75] : memref<2x4x4x32x8xbf16, #tpu.memory_space<vmem>>, vector<1x1x1x32x8xbf16>
    %126 = vector.shape_cast %125 : vector<1x1x1x32x8xbf16> to vector<32x8xbf16>
    %cst_76 = arith.constant dense<0.000000e+00> : vector<16x8xf32>
    %127 = tpu.matmul %84, %126, %cst_76 {dimension_numbers = #tpu.dot_dimension_numbers<[1], [0], [0], [1], [0, 0, 1, 1], [], []>} : vector<16x32xbf16>, vector<32x8xbf16>, vector<16x8xf32> -> vector<16x8xf32>
    %128 = vector.extract_strided_slice %74 {offsets = [0, 8], sizes = [1, 8], strides = [1, 1]} : vector<1x32xf32> to vector<1x8xf32>
    %129 = vector.broadcast %128 : vector<1x8xf32> to vector<16x8xf32>
    %130 = arith.addf %127, %129 : vector<16x8xf32>
    %c0_77 = arith.constant 0 : index
    %c1_78 = arith.constant 1 : index
    %c1_79 = arith.constant 1 : index
    %c0_80 = arith.constant 0 : index
    %c0_81 = arith.constant 0 : index
    %131 = vector.load %arg5[%c0_77, %c1_78, %c1_79, %c0_80, %c0_81] : memref<2x4x4x32x8xbf16, #tpu.memory_space<vmem>>, vector<1x1x1x32x8xbf16>
    %132 = vector.shape_cast %131 : vector<1x1x1x32x8xbf16> to vector<32x8xbf16>
    %cst_82 = arith.constant dense<0.000000e+00> : vector<16x8xf32>
    %133 = tpu.matmul %84, %132, %cst_82 {dimension_numbers = #tpu.dot_dimension_numbers<[1], [0], [0], [1], [0, 0, 1, 1], [], []>} : vector<16x32xbf16>, vector<32x8xbf16>, vector<16x8xf32> -> vector<16x8xf32>
    %134 = vector.extract_strided_slice %75 {offsets = [0, 8], sizes = [1, 8], strides = [1, 1]} : vector<1x32xf32> to vector<1x8xf32>
    %135 = vector.broadcast %134 : vector<1x8xf32> to vector<16x8xf32>
    %136 = arith.addf %133, %135 : vector<16x8xf32>
    %c0_83 = arith.constant 0 : index
    %c2_84 = arith.constant 2 : index
    %c1_85 = arith.constant 1 : index
    %c0_86 = arith.constant 0 : index
    %c0_87 = arith.constant 0 : index
    %137 = vector.load %arg5[%c0_83, %c2_84, %c1_85, %c0_86, %c0_87] : memref<2x4x4x32x8xbf16, #tpu.memory_space<vmem>>, vector<1x1x1x32x8xbf16>
    %138 = vector.shape_cast %137 : vector<1x1x1x32x8xbf16> to vector<32x8xbf16>
    %cst_88 = arith.constant dense<0.000000e+00> : vector<16x8xf32>
    %139 = tpu.matmul %84, %138, %cst_88 {dimension_numbers = #tpu.dot_dimension_numbers<[1], [0], [0], [1], [0, 0, 1, 1], [], []>} : vector<16x32xbf16>, vector<32x8xbf16>, vector<16x8xf32> -> vector<16x8xf32>
    %140 = vector.extract_strided_slice %76 {offsets = [0, 8], sizes = [1, 8], strides = [1, 1]} : vector<1x32xf32> to vector<1x8xf32>
    %141 = vector.broadcast %140 : vector<1x8xf32> to vector<16x8xf32>
    %142 = arith.addf %139, %141 : vector<16x8xf32>
    %cst_89 = arith.constant dense<0.000000e+00> : vector<16x16xf32>
    %143 = tpu.matmul %130, %136, %cst_89 {dimension_numbers = #tpu.dot_dimension_numbers<[1], [1], [0], [0], [0, 0, 1, 0], [], []>} : vector<16x8xf32>, vector<16x8xf32>, vector<16x16xf32> -> vector<16x16xf32>
    %cst_90 = arith.constant 0.353553385 : f32
    %144 = vector.broadcast %cst_90 : f32 to vector<16x16xf32>
    %145 = arith.mulf %143, %144 : vector<16x16xf32>
    %cst_91 = arith.constant dense<0xFF800000> : vector<16xf32>
    %146 = vector.multi_reduction <maximumf>, %145, %cst_91 [1] : vector<16x16xf32> to vector<16xf32>
    %147 = vector.shape_cast %146 : vector<16xf32> to vector<16x1xf32>
    %148 = vector.broadcast %147 : vector<16x1xf32> to vector<16x16xf32>
    %149 = arith.subf %145, %148 : vector<16x16xf32>
    %150 = math.exp %149 : vector<16x16xf32>
    %cst_92 = arith.constant dense<0.000000e+00> : vector<16xf32>
    %151 = vector.multi_reduction <add>, %150, %cst_92 [1] : vector<16x16xf32> to vector<16xf32>
    %152 = vector.shape_cast %151 : vector<16xf32> to vector<16x1xf32>
    %153 = tpu.reciprocal %152 {approx = true} : vector<16x1xf32> -> vector<16x1xf32>
    %154 = vector.broadcast %153 : vector<16x1xf32> to vector<16x16xf32>
    %155 = arith.mulf %150, %154 : vector<16x16xf32>
    %156 = arith.truncf %155 : vector<16x16xf32> to vector<16x16xbf16>
    %157 = arith.truncf %142 : vector<16x8xf32> to vector<16x8xbf16>
    %cst_93 = arith.constant dense<0.000000e+00> : vector<16x8xf32>
    %158 = tpu.matmul %156, %157, %cst_93 {dimension_numbers = #tpu.dot_dimension_numbers<[1], [0], [0], [1], [0, 0, 1, 1], [], []>} : vector<16x16xbf16>, vector<16x8xbf16>, vector<16x8xf32> -> vector<16x8xf32>
    %159 = arith.truncf %158 : vector<16x8xf32> to vector<16x8xbf16>
    %c0_94 = arith.constant 0 : index
    %c3_95 = arith.constant 3 : index
    %c1_96 = arith.constant 1 : index
    %c0_97 = arith.constant 0 : index
    %c0_98 = arith.constant 0 : index
    %160 = vector.load %arg5[%c0_94, %c3_95, %c1_96, %c0_97, %c0_98] : memref<2x4x4x32x8xbf16, #tpu.memory_space<vmem>>, vector<1x1x1x32x8xbf16>
    %161 = vector.shape_cast %160 : vector<1x1x1x32x8xbf16> to vector<32x8xbf16>
    %cst_99 = arith.constant dense<0.000000e+00> : vector<16x32xf32>
    %162 = tpu.matmul %159, %161, %cst_99 {dimension_numbers = #tpu.dot_dimension_numbers<[1], [1], [0], [0], [0, 0, 1, 0], [], []>} : vector<16x8xbf16>, vector<32x8xbf16>, vector<16x32xf32> -> vector<16x32xf32>
    %163 = arith.addf %124, %162 : vector<16x32xf32>
    %c0_100 = arith.constant 0 : index
    %c0_101 = arith.constant 0 : index
    %c2_102 = arith.constant 2 : index
    %c0_103 = arith.constant 0 : index
    %c0_104 = arith.constant 0 : index
    %164 = vector.load %arg5[%c0_100, %c0_101, %c2_102, %c0_103, %c0_104] : memref<2x4x4x32x8xbf16, #tpu.memory_space<vmem>>, vector<1x1x1x32x8xbf16>
    %165 = vector.shape_cast %164 : vector<1x1x1x32x8xbf16> to vector<32x8xbf16>
    %cst_105 = arith.constant dense<0.000000e+00> : vector<16x8xf32>
    %166 = tpu.matmul %84, %165, %cst_105 {dimension_numbers = #tpu.dot_dimension_numbers<[1], [0], [0], [1], [0, 0, 1, 1], [], []>} : vector<16x32xbf16>, vector<32x8xbf16>, vector<16x8xf32> -> vector<16x8xf32>
    %167 = vector.extract_strided_slice %74 {offsets = [0, 16], sizes = [1, 8], strides = [1, 1]} : vector<1x32xf32> to vector<1x8xf32>
    %168 = vector.broadcast %167 : vector<1x8xf32> to vector<16x8xf32>
    %169 = arith.addf %166, %168 : vector<16x8xf32>
    %c0_106 = arith.constant 0 : index
    %c1_107 = arith.constant 1 : index
    %c2_108 = arith.constant 2 : index
    %c0_109 = arith.constant 0 : index
    %c0_110 = arith.constant 0 : index
    %170 = vector.load %arg5[%c0_106, %c1_107, %c2_108, %c0_109, %c0_110] : memref<2x4x4x32x8xbf16, #tpu.memory_space<vmem>>, vector<1x1x1x32x8xbf16>
    %171 = vector.shape_cast %170 : vector<1x1x1x32x8xbf16> to vector<32x8xbf16>
    %cst_111 = arith.constant dense<0.000000e+00> : vector<16x8xf32>
    %172 = tpu.matmul %84, %171, %cst_111 {dimension_numbers = #tpu.dot_dimension_numbers<[1], [0], [0], [1], [0, 0, 1, 1], [], []>} : vector<16x32xbf16>, vector<32x8xbf16>, vector<16x8xf32> -> vector<16x8xf32>
    %173 = vector.extract_strided_slice %75 {offsets = [0, 16], sizes = [1, 8], strides = [1, 1]} : vector<1x32xf32> to vector<1x8xf32>
    %174 = vector.broadcast %173 : vector<1x8xf32> to vector<16x8xf32>
    %175 = arith.addf %172, %174 : vector<16x8xf32>
    %c0_112 = arith.constant 0 : index
    %c2_113 = arith.constant 2 : index
    %c2_114 = arith.constant 2 : index
    %c0_115 = arith.constant 0 : index
    %c0_116 = arith.constant 0 : index
    %176 = vector.load %arg5[%c0_112, %c2_113, %c2_114, %c0_115, %c0_116] : memref<2x4x4x32x8xbf16, #tpu.memory_space<vmem>>, vector<1x1x1x32x8xbf16>
    %177 = vector.shape_cast %176 : vector<1x1x1x32x8xbf16> to vector<32x8xbf16>
    %cst_117 = arith.constant dense<0.000000e+00> : vector<16x8xf32>
    %178 = tpu.matmul %84, %177, %cst_117 {dimension_numbers = #tpu.dot_dimension_numbers<[1], [0], [0], [1], [0, 0, 1, 1], [], []>} : vector<16x32xbf16>, vector<32x8xbf16>, vector<16x8xf32> -> vector<16x8xf32>
    %179 = vector.extract_strided_slice %76 {offsets = [0, 16], sizes = [1, 8], strides = [1, 1]} : vector<1x32xf32> to vector<1x8xf32>
    %180 = vector.broadcast %179 : vector<1x8xf32> to vector<16x8xf32>
    %181 = arith.addf %178, %180 : vector<16x8xf32>
    %cst_118 = arith.constant dense<0.000000e+00> : vector<16x16xf32>
    %182 = tpu.matmul %169, %175, %cst_118 {dimension_numbers = #tpu.dot_dimension_numbers<[1], [1], [0], [0], [0, 0, 1, 0], [], []>} : vector<16x8xf32>, vector<16x8xf32>, vector<16x16xf32> -> vector<16x16xf32>
    %cst_119 = arith.constant 0.353553385 : f32
    %183 = vector.broadcast %cst_119 : f32 to vector<16x16xf32>
    %184 = arith.mulf %182, %183 : vector<16x16xf32>
    %cst_120 = arith.constant dense<0xFF800000> : vector<16xf32>
    %185 = vector.multi_reduction <maximumf>, %184, %cst_120 [1] : vector<16x16xf32> to vector<16xf32>
    %186 = vector.shape_cast %185 : vector<16xf32> to vector<16x1xf32>
    %187 = vector.broadcast %186 : vector<16x1xf32> to vector<16x16xf32>
    %188 = arith.subf %184, %187 : vector<16x16xf32>
    %189 = math.exp %188 : vector<16x16xf32>
    %cst_121 = arith.constant dense<0.000000e+00> : vector<16xf32>
    %190 = vector.multi_reduction <add>, %189, %cst_121 [1] : vector<16x16xf32> to vector<16xf32>
    %191 = vector.shape_cast %190 : vector<16xf32> to vector<16x1xf32>
    %192 = tpu.reciprocal %191 {approx = true} : vector<16x1xf32> -> vector<16x1xf32>
    %193 = vector.broadcast %192 : vector<16x1xf32> to vector<16x16xf32>
    %194 = arith.mulf %189, %193 : vector<16x16xf32>
    %195 = arith.truncf %194 : vector<16x16xf32> to vector<16x16xbf16>
    %196 = arith.truncf %181 : vector<16x8xf32> to vector<16x8xbf16>
    %cst_122 = arith.constant dense<0.000000e+00> : vector<16x8xf32>
    %197 = tpu.matmul %195, %196, %cst_122 {dimension_numbers = #tpu.dot_dimension_numbers<[1], [0], [0], [1], [0, 0, 1, 1], [], []>} : vector<16x16xbf16>, vector<16x8xbf16>, vector<16x8xf32> -> vector<16x8xf32>
    %198 = arith.truncf %197 : vector<16x8xf32> to vector<16x8xbf16>
    %c0_123 = arith.constant 0 : index
    %c3_124 = arith.constant 3 : index
    %c2_125 = arith.constant 2 : index
    %c0_126 = arith.constant 0 : index
    %c0_127 = arith.constant 0 : index
    %199 = vector.load %arg5[%c0_123, %c3_124, %c2_125, %c0_126, %c0_127] : memref<2x4x4x32x8xbf16, #tpu.memory_space<vmem>>, vector<1x1x1x32x8xbf16>
    %200 = vector.shape_cast %199 : vector<1x1x1x32x8xbf16> to vector<32x8xbf16>
    %cst_128 = arith.constant dense<0.000000e+00> : vector<16x32xf32>
    %201 = tpu.matmul %198, %200, %cst_128 {dimension_numbers = #tpu.dot_dimension_numbers<[1], [1], [0], [0], [0, 0, 1, 0], [], []>} : vector<16x8xbf16>, vector<32x8xbf16>, vector<16x32xf32> -> vector<16x32xf32>
    %202 = arith.addf %163, %201 : vector<16x32xf32>
    %c0_129 = arith.constant 0 : index
    %c0_130 = arith.constant 0 : index
    %c3_131 = arith.constant 3 : index
    %c0_132 = arith.constant 0 : index
    %c0_133 = arith.constant 0 : index
    %203 = vector.load %arg5[%c0_129, %c0_130, %c3_131, %c0_132, %c0_133] : memref<2x4x4x32x8xbf16, #tpu.memory_space<vmem>>, vector<1x1x1x32x8xbf16>
    %204 = vector.shape_cast %203 : vector<1x1x1x32x8xbf16> to vector<32x8xbf16>
    %cst_134 = arith.constant dense<0.000000e+00> : vector<16x8xf32>
    %205 = tpu.matmul %84, %204, %cst_134 {dimension_numbers = #tpu.dot_dimension_numbers<[1], [0], [0], [1], [0, 0, 1, 1], [], []>} : vector<16x32xbf16>, vector<32x8xbf16>, vector<16x8xf32> -> vector<16x8xf32>
    %206 = vector.extract_strided_slice %74 {offsets = [0, 24], sizes = [1, 8], strides = [1, 1]} : vector<1x32xf32> to vector<1x8xf32>
    %207 = vector.broadcast %206 : vector<1x8xf32> to vector<16x8xf32>
    %208 = arith.addf %205, %207 : vector<16x8xf32>
    %c0_135 = arith.constant 0 : index
    %c1_136 = arith.constant 1 : index
    %c3_137 = arith.constant 3 : index
    %c0_138 = arith.constant 0 : index
    %c0_139 = arith.constant 0 : index
    %209 = vector.load %arg5[%c0_135, %c1_136, %c3_137, %c0_138, %c0_139] : memref<2x4x4x32x8xbf16, #tpu.memory_space<vmem>>, vector<1x1x1x32x8xbf16>
    %210 = vector.shape_cast %209 : vector<1x1x1x32x8xbf16> to vector<32x8xbf16>
    %cst_140 = arith.constant dense<0.000000e+00> : vector<16x8xf32>
    %211 = tpu.matmul %84, %210, %cst_140 {dimension_numbers = #tpu.dot_dimension_numbers<[1], [0], [0], [1], [0, 0, 1, 1], [], []>} : vector<16x32xbf16>, vector<32x8xbf16>, vector<16x8xf32> -> vector<16x8xf32>
    %212 = vector.extract_strided_slice %75 {offsets = [0, 24], sizes = [1, 8], strides = [1, 1]} : vector<1x32xf32> to vector<1x8xf32>
    %213 = vector.broadcast %212 : vector<1x8xf32> to vector<16x8xf32>
    %214 = arith.addf %211, %213 : vector<16x8xf32>
    %c0_141 = arith.constant 0 : index
    %c2_142 = arith.constant 2 : index
    %c3_143 = arith.constant 3 : index
    %c0_144 = arith.constant 0 : index
    %c0_145 = arith.constant 0 : index
    %215 = vector.load %arg5[%c0_141, %c2_142, %c3_143, %c0_144, %c0_145] : memref<2x4x4x32x8xbf16, #tpu.memory_space<vmem>>, vector<1x1x1x32x8xbf16>
    %216 = vector.shape_cast %215 : vector<1x1x1x32x8xbf16> to vector<32x8xbf16>
    %cst_146 = arith.constant dense<0.000000e+00> : vector<16x8xf32>
    %217 = tpu.matmul %84, %216, %cst_146 {dimension_numbers = #tpu.dot_dimension_numbers<[1], [0], [0], [1], [0, 0, 1, 1], [], []>} : vector<16x32xbf16>, vector<32x8xbf16>, vector<16x8xf32> -> vector<16x8xf32>
    %218 = vector.extract_strided_slice %76 {offsets = [0, 24], sizes = [1, 8], strides = [1, 1]} : vector<1x32xf32> to vector<1x8xf32>
    %219 = vector.broadcast %218 : vector<1x8xf32> to vector<16x8xf32>
    %220 = arith.addf %217, %219 : vector<16x8xf32>
    %cst_147 = arith.constant dense<0.000000e+00> : vector<16x16xf32>
    %221 = tpu.matmul %208, %214, %cst_147 {dimension_numbers = #tpu.dot_dimension_numbers<[1], [1], [0], [0], [0, 0, 1, 0], [], []>} : vector<16x8xf32>, vector<16x8xf32>, vector<16x16xf32> -> vector<16x16xf32>
    %cst_148 = arith.constant 0.353553385 : f32
    %222 = vector.broadcast %cst_148 : f32 to vector<16x16xf32>
    %223 = arith.mulf %221, %222 : vector<16x16xf32>
    %cst_149 = arith.constant dense<0xFF800000> : vector<16xf32>
    %224 = vector.multi_reduction <maximumf>, %223, %cst_149 [1] : vector<16x16xf32> to vector<16xf32>
    %225 = vector.shape_cast %224 : vector<16xf32> to vector<16x1xf32>
    %226 = vector.broadcast %225 : vector<16x1xf32> to vector<16x16xf32>
    %227 = arith.subf %223, %226 : vector<16x16xf32>
    %228 = math.exp %227 : vector<16x16xf32>
    %cst_150 = arith.constant dense<0.000000e+00> : vector<16xf32>
    %229 = vector.multi_reduction <add>, %228, %cst_150 [1] : vector<16x16xf32> to vector<16xf32>
    %230 = vector.shape_cast %229 : vector<16xf32> to vector<16x1xf32>
    %231 = tpu.reciprocal %230 {approx = true} : vector<16x1xf32> -> vector<16x1xf32>
    %232 = vector.broadcast %231 : vector<16x1xf32> to vector<16x16xf32>
    %233 = arith.mulf %228, %232 : vector<16x16xf32>
    %234 = arith.truncf %233 : vector<16x16xf32> to vector<16x16xbf16>
    %235 = arith.truncf %220 : vector<16x8xf32> to vector<16x8xbf16>
    %cst_151 = arith.constant dense<0.000000e+00> : vector<16x8xf32>
    %236 = tpu.matmul %234, %235, %cst_151 {dimension_numbers = #tpu.dot_dimension_numbers<[1], [0], [0], [1], [0, 0, 1, 1], [], []>} : vector<16x16xbf16>, vector<16x8xbf16>, vector<16x8xf32> -> vector<16x8xf32>
    %237 = arith.truncf %236 : vector<16x8xf32> to vector<16x8xbf16>
    %c0_152 = arith.constant 0 : index
    %c3_153 = arith.constant 3 : index
    %c3_154 = arith.constant 3 : index
    %c0_155 = arith.constant 0 : index
    %c0_156 = arith.constant 0 : index
    %238 = vector.load %arg5[%c0_152, %c3_153, %c3_154, %c0_155, %c0_156] : memref<2x4x4x32x8xbf16, #tpu.memory_space<vmem>>, vector<1x1x1x32x8xbf16>
    %239 = vector.shape_cast %238 : vector<1x1x1x32x8xbf16> to vector<32x8xbf16>
    %cst_157 = arith.constant dense<0.000000e+00> : vector<16x32xf32>
    %240 = tpu.matmul %237, %239, %cst_157 {dimension_numbers = #tpu.dot_dimension_numbers<[1], [1], [0], [0], [0, 0, 1, 0], [], []>} : vector<16x8xbf16>, vector<32x8xbf16>, vector<16x32xf32> -> vector<16x32xf32>
    %241 = arith.addf %202, %240 : vector<16x32xf32>
    %242 = arith.addf %73, %241 : vector<16x32xf32>
    %243 = vector.broadcast %77 : vector<1x32xf32> to vector<16x32xf32>
    %244 = arith.addf %242, %243 : vector<16x32xf32>
    %cst_158 = arith.constant dense<0.000000e+00> : vector<16xf32>
    %245 = vector.multi_reduction <add>, %244, %cst_158 [1] : vector<16x32xf32> to vector<16xf32>
    %246 = vector.shape_cast %245 : vector<16xf32> to vector<16x1xf32>
    %cst_159 = arith.constant 3.200000e+01 : f32
    %247 = vector.broadcast %cst_159 : f32 to vector<16x1xf32>
    %248 = arith.divf %246, %247 : vector<16x1xf32>
    %249 = vector.broadcast %248 : vector<16x1xf32> to vector<16x32xf32>
    %250 = arith.subf %244, %249 : vector<16x32xf32>
    %251 = arith.mulf %250, %250 : vector<16x32xf32>
    %cst_160 = arith.constant dense<0.000000e+00> : vector<16xf32>
    %252 = vector.multi_reduction <add>, %251, %cst_160 [1] : vector<16x32xf32> to vector<16xf32>
    %253 = vector.shape_cast %252 : vector<16xf32> to vector<16x1xf32>
    %cst_161 = arith.constant 3.200000e+01 : f32
    %254 = vector.broadcast %cst_161 : f32 to vector<16x1xf32>
    %255 = arith.divf %253, %254 : vector<16x1xf32>
    %256 = vector.broadcast %248 : vector<16x1xf32> to vector<16x32xf32>
    %257 = arith.subf %244, %256 : vector<16x32xf32>
    %cst_162 = arith.constant 9.99999996E-13 : f32
    %258 = vector.broadcast %cst_162 : f32 to vector<16x1xf32>
    %259 = arith.addf %255, %258 : vector<16x1xf32>
    %260 = math.rsqrt %259 : vector<16x1xf32>
    %261 = vector.broadcast %260 : vector<16x1xf32> to vector<16x32xf32>
    %262 = arith.mulf %257, %261 : vector<16x32xf32>
    %263 = vector.broadcast %78 : vector<1x32xf32> to vector<16x32xf32>
    %264 = arith.mulf %262, %263 : vector<16x32xf32>
    %265 = vector.broadcast %79 : vector<1x32xf32> to vector<16x32xf32>
    %266 = arith.addf %264, %265 : vector<16x32xf32>
    %267 = arith.truncf %266 : vector<16x32xf32> to vector<16x32xbf16>
    %c0_163 = arith.constant 0 : index
    %c0_164 = arith.constant 0 : index
    %c0_165 = arith.constant 0 : index
    %268 = vector.load %arg6[%c0_163, %c0_164, %c0_165] : memref<5x64x64xbf16, #tpu.memory_space<vmem>>, vector<1x32x64xbf16>
    %269 = vector.shape_cast %268 : vector<1x32x64xbf16> to vector<32x64xbf16>
    %cst_166 = arith.constant dense<0.000000e+00> : vector<16x64xf32>
    %270 = tpu.matmul %267, %269, %cst_166 {dimension_numbers = #tpu.dot_dimension_numbers<[1], [0], [0], [1], [0, 0, 1, 1], [], []>} : vector<16x32xbf16>, vector<32x64xbf16>, vector<16x64xf32> -> vector<16x64xf32>
    %271 = vector.broadcast %80 : vector<1x64xf32> to vector<16x64xf32>
    %272 = arith.addf %270, %271 : vector<16x64xf32>
    %273 = arith.mulf %272, %272 : vector<16x64xf32>
    %274 = arith.mulf %272, %273 : vector<16x64xf32>
    %cst_167 = arith.constant 4.471500e-02 : f32
    %275 = vector.broadcast %cst_167 : f32 to vector<16x64xf32>
    %276 = arith.mulf %275, %274 : vector<16x64xf32>
    %277 = arith.addf %272, %276 : vector<16x64xf32>
    %cst_168 = arith.constant 0.797884583 : f32
    %278 = vector.broadcast %cst_168 : f32 to vector<16x64xf32>
    %279 = arith.mulf %278, %277 : vector<16x64xf32>
    %280 = math.tanh %279 : vector<16x64xf32>
    %cst_169 = arith.constant 1.000000e+00 : f32
    %281 = vector.broadcast %cst_169 : f32 to vector<16x64xf32>
    %282 = arith.addf %281, %280 : vector<16x64xf32>
    %cst_170 = arith.constant 5.000000e-01 : f32
    %283 = vector.broadcast %cst_170 : f32 to vector<16x64xf32>
    %284 = arith.mulf %283, %282 : vector<16x64xf32>
    %285 = arith.mulf %272, %284 : vector<16x64xf32>
    %286 = arith.truncf %285 : vector<16x64xf32> to vector<16x64xbf16>
    %c1_171 = arith.constant 1 : index
    %c0_172 = arith.constant 0 : index
    %c0_173 = arith.constant 0 : index
    %287 = vector.load %arg6[%c1_171, %c0_172, %c0_173] : memref<5x64x64xbf16, #tpu.memory_space<vmem>>, vector<1x64x32xbf16>
    %288 = vector.shape_cast %287 : vector<1x64x32xbf16> to vector<64x32xbf16>
    %cst_174 = arith.constant dense<0.000000e+00> : vector<16x32xf32>
    %289 = tpu.matmul %286, %288, %cst_174 {dimension_numbers = #tpu.dot_dimension_numbers<[1], [0], [0], [1], [0, 0, 1, 1], [], []>} : vector<16x64xbf16>, vector<64x32xbf16>, vector<16x32xf32> -> vector<16x32xf32>
    %290 = vector.broadcast %81 : vector<1x32xf32> to vector<16x32xf32>
    %291 = arith.addf %289, %290 : vector<16x32xf32>
    %292 = arith.addf %266, %291 : vector<16x32xf32>
    %cst_175 = arith.constant dense<0.000000e+00> : vector<16xf32>
    %293 = vector.multi_reduction <add>, %292, %cst_175 [1] : vector<16x32xf32> to vector<16xf32>
    %294 = vector.shape_cast %293 : vector<16xf32> to vector<16x1xf32>
    %cst_176 = arith.constant 3.200000e+01 : f32
    %295 = vector.broadcast %cst_176 : f32 to vector<16x1xf32>
    %296 = arith.divf %294, %295 : vector<16x1xf32>
    %297 = vector.broadcast %296 : vector<16x1xf32> to vector<16x32xf32>
    %298 = arith.subf %292, %297 : vector<16x32xf32>
    %299 = arith.mulf %298, %298 : vector<16x32xf32>
    %cst_177 = arith.constant dense<0.000000e+00> : vector<16xf32>
    %300 = vector.multi_reduction <add>, %299, %cst_177 [1] : vector<16x32xf32> to vector<16xf32>
    %301 = vector.shape_cast %300 : vector<16xf32> to vector<16x1xf32>
    %cst_178 = arith.constant 3.200000e+01 : f32
    %302 = vector.broadcast %cst_178 : f32 to vector<16x1xf32>
    %303 = arith.divf %301, %302 : vector<16x1xf32>
    %304 = vector.broadcast %296 : vector<16x1xf32> to vector<16x32xf32>
    %305 = arith.subf %292, %304 : vector<16x32xf32>
    %cst_179 = arith.constant 9.99999996E-13 : f32
    %306 = vector.broadcast %cst_179 : f32 to vector<16x1xf32>
    %307 = arith.addf %303, %306 : vector<16x1xf32>
    %308 = math.rsqrt %307 : vector<16x1xf32>
    %309 = vector.broadcast %308 : vector<16x1xf32> to vector<16x32xf32>
    %310 = arith.mulf %305, %309 : vector<16x32xf32>
    %311 = vector.broadcast %82 : vector<1x32xf32> to vector<16x32xf32>
    %312 = arith.mulf %310, %311 : vector<16x32xf32>
    %313 = vector.broadcast %83 : vector<1x32xf32> to vector<16x32xf32>
    %314 = arith.addf %312, %313 : vector<16x32xf32>
    %c15 = arith.constant 15 : index
    %c0_180 = arith.constant 0 : index
    %315 = vector.load %arg4[%c15, %c0_180] : memref<48x128xf32, #tpu.memory_space<vmem>>, vector<1x32xf32>
    %c16 = arith.constant 16 : index
    %c0_181 = arith.constant 0 : index
    %316 = vector.load %arg4[%c16, %c0_181] : memref<48x128xf32, #tpu.memory_space<vmem>>, vector<1x32xf32>
    %c17 = arith.constant 17 : index
    %c0_182 = arith.constant 0 : index
    %317 = vector.load %arg4[%c17, %c0_182] : memref<48x128xf32, #tpu.memory_space<vmem>>, vector<1x32xf32>
    %c18 = arith.constant 18 : index
    %c0_183 = arith.constant 0 : index
    %318 = vector.load %arg4[%c18, %c0_183] : memref<48x128xf32, #tpu.memory_space<vmem>>, vector<1x32xf32>
    %c19 = arith.constant 19 : index
    %c0_184 = arith.constant 0 : index
    %319 = vector.load %arg4[%c19, %c0_184] : memref<48x128xf32, #tpu.memory_space<vmem>>, vector<1x32xf32>
    %c20 = arith.constant 20 : index
    %c0_185 = arith.constant 0 : index
    %320 = vector.load %arg4[%c20, %c0_185] : memref<48x128xf32, #tpu.memory_space<vmem>>, vector<1x32xf32>
    %c21 = arith.constant 21 : index
    %c0_186 = arith.constant 0 : index
    %321 = vector.load %arg4[%c21, %c0_186] : memref<48x128xf32, #tpu.memory_space<vmem>>, vector<1x64xf32>
    %c22 = arith.constant 22 : index
    %c0_187 = arith.constant 0 : index
    %322 = vector.load %arg4[%c22, %c0_187] : memref<48x128xf32, #tpu.memory_space<vmem>>, vector<1x32xf32>
    %c23 = arith.constant 23 : index
    %c0_188 = arith.constant 0 : index
    %323 = vector.load %arg4[%c23, %c0_188] : memref<48x128xf32, #tpu.memory_space<vmem>>, vector<1x32xf32>
    %c24 = arith.constant 24 : index
    %c0_189 = arith.constant 0 : index
    %324 = vector.load %arg4[%c24, %c0_189] : memref<48x128xf32, #tpu.memory_space<vmem>>, vector<1x32xf32>
    %325 = arith.truncf %314 : vector<16x32xf32> to vector<16x32xbf16>
    %cst_190 = arith.constant 0.000000e+00 : f32
    %326 = vector.broadcast %cst_190 : f32 to vector<16x32xf32>
    %c1_191 = arith.constant 1 : index
    %c0_192 = arith.constant 0 : index
    %c0_193 = arith.constant 0 : index
    %c0_194 = arith.constant 0 : index
    %c0_195 = arith.constant 0 : index
    %327 = vector.load %arg5[%c1_191, %c0_192, %c0_193, %c0_194, %c0_195] : memref<2x4x4x32x8xbf16, #tpu.memory_space<vmem>>, vector<1x1x1x32x8xbf16>
    %328 = vector.shape_cast %327 : vector<1x1x1x32x8xbf16> to vector<32x8xbf16>
    %cst_196 = arith.constant dense<0.000000e+00> : vector<16x8xf32>
    %329 = tpu.matmul %325, %328, %cst_196 {dimension_numbers = #tpu.dot_dimension_numbers<[1], [0], [0], [1], [0, 0, 1, 1], [], []>} : vector<16x32xbf16>, vector<32x8xbf16>, vector<16x8xf32> -> vector<16x8xf32>
    %330 = vector.extract_strided_slice %315 {offsets = [0, 0], sizes = [1, 8], strides = [1, 1]} : vector<1x32xf32> to vector<1x8xf32>
    %331 = vector.broadcast %330 : vector<1x8xf32> to vector<16x8xf32>
    %332 = arith.addf %329, %331 : vector<16x8xf32>
    %c1_197 = arith.constant 1 : index
    %c1_198 = arith.constant 1 : index
    %c0_199 = arith.constant 0 : index
    %c0_200 = arith.constant 0 : index
    %c0_201 = arith.constant 0 : index
    %333 = vector.load %arg5[%c1_197, %c1_198, %c0_199, %c0_200, %c0_201] : memref<2x4x4x32x8xbf16, #tpu.memory_space<vmem>>, vector<1x1x1x32x8xbf16>
    %334 = vector.shape_cast %333 : vector<1x1x1x32x8xbf16> to vector<32x8xbf16>
    %cst_202 = arith.constant dense<0.000000e+00> : vector<16x8xf32>
    %335 = tpu.matmul %325, %334, %cst_202 {dimension_numbers = #tpu.dot_dimension_numbers<[1], [0], [0], [1], [0, 0, 1, 1], [], []>} : vector<16x32xbf16>, vector<32x8xbf16>, vector<16x8xf32> -> vector<16x8xf32>
    %336 = vector.extract_strided_slice %316 {offsets = [0, 0], sizes = [1, 8], strides = [1, 1]} : vector<1x32xf32> to vector<1x8xf32>
    %337 = vector.broadcast %336 : vector<1x8xf32> to vector<16x8xf32>
    %338 = arith.addf %335, %337 : vector<16x8xf32>
    %c1_203 = arith.constant 1 : index
    %c2_204 = arith.constant 2 : index
    %c0_205 = arith.constant 0 : index
    %c0_206 = arith.constant 0 : index
    %c0_207 = arith.constant 0 : index
    %339 = vector.load %arg5[%c1_203, %c2_204, %c0_205, %c0_206, %c0_207] : memref<2x4x4x32x8xbf16, #tpu.memory_space<vmem>>, vector<1x1x1x32x8xbf16>
    %340 = vector.shape_cast %339 : vector<1x1x1x32x8xbf16> to vector<32x8xbf16>
    %cst_208 = arith.constant dense<0.000000e+00> : vector<16x8xf32>
    %341 = tpu.matmul %325, %340, %cst_208 {dimension_numbers = #tpu.dot_dimension_numbers<[1], [0], [0], [1], [0, 0, 1, 1], [], []>} : vector<16x32xbf16>, vector<32x8xbf16>, vector<16x8xf32> -> vector<16x8xf32>
    %342 = vector.extract_strided_slice %317 {offsets = [0, 0], sizes = [1, 8], strides = [1, 1]} : vector<1x32xf32> to vector<1x8xf32>
    %343 = vector.broadcast %342 : vector<1x8xf32> to vector<16x8xf32>
    %344 = arith.addf %341, %343 : vector<16x8xf32>
    %cst_209 = arith.constant dense<0.000000e+00> : vector<16x16xf32>
    %345 = tpu.matmul %332, %338, %cst_209 {dimension_numbers = #tpu.dot_dimension_numbers<[1], [1], [0], [0], [0, 0, 1, 0], [], []>} : vector<16x8xf32>, vector<16x8xf32>, vector<16x16xf32> -> vector<16x16xf32>
    %cst_210 = arith.constant 0.353553385 : f32
    %346 = vector.broadcast %cst_210 : f32 to vector<16x16xf32>
    %347 = arith.mulf %345, %346 : vector<16x16xf32>
    %cst_211 = arith.constant dense<0xFF800000> : vector<16xf32>
    %348 = vector.multi_reduction <maximumf>, %347, %cst_211 [1] : vector<16x16xf32> to vector<16xf32>
    %349 = vector.shape_cast %348 : vector<16xf32> to vector<16x1xf32>
    %350 = vector.broadcast %349 : vector<16x1xf32> to vector<16x16xf32>
    %351 = arith.subf %347, %350 : vector<16x16xf32>
    %352 = math.exp %351 : vector<16x16xf32>
    %cst_212 = arith.constant dense<0.000000e+00> : vector<16xf32>
    %353 = vector.multi_reduction <add>, %352, %cst_212 [1] : vector<16x16xf32> to vector<16xf32>
    %354 = vector.shape_cast %353 : vector<16xf32> to vector<16x1xf32>
    %355 = tpu.reciprocal %354 {approx = true} : vector<16x1xf32> -> vector<16x1xf32>
    %356 = vector.broadcast %355 : vector<16x1xf32> to vector<16x16xf32>
    %357 = arith.mulf %352, %356 : vector<16x16xf32>
    %358 = arith.truncf %357 : vector<16x16xf32> to vector<16x16xbf16>
    %359 = arith.truncf %344 : vector<16x8xf32> to vector<16x8xbf16>
    %cst_213 = arith.constant dense<0.000000e+00> : vector<16x8xf32>
    %360 = tpu.matmul %358, %359, %cst_213 {dimension_numbers = #tpu.dot_dimension_numbers<[1], [0], [0], [1], [0, 0, 1, 1], [], []>} : vector<16x16xbf16>, vector<16x8xbf16>, vector<16x8xf32> -> vector<16x8xf32>
    %361 = arith.truncf %360 : vector<16x8xf32> to vector<16x8xbf16>
    %c1_214 = arith.constant 1 : index
    %c3_215 = arith.constant 3 : index
    %c0_216 = arith.constant 0 : index
    %c0_217 = arith.constant 0 : index
    %c0_218 = arith.constant 0 : index
    %362 = vector.load %arg5[%c1_214, %c3_215, %c0_216, %c0_217, %c0_218] : memref<2x4x4x32x8xbf16, #tpu.memory_space<vmem>>, vector<1x1x1x32x8xbf16>
    %363 = vector.shape_cast %362 : vector<1x1x1x32x8xbf16> to vector<32x8xbf16>
    %cst_219 = arith.constant dense<0.000000e+00> : vector<16x32xf32>
    %364 = tpu.matmul %361, %363, %cst_219 {dimension_numbers = #tpu.dot_dimension_numbers<[1], [1], [0], [0], [0, 0, 1, 0], [], []>} : vector<16x8xbf16>, vector<32x8xbf16>, vector<16x32xf32> -> vector<16x32xf32>
    %365 = arith.addf %326, %364 : vector<16x32xf32>
    %c1_220 = arith.constant 1 : index
    %c0_221 = arith.constant 0 : index
    %c1_222 = arith.constant 1 : index
    %c0_223 = arith.constant 0 : index
    %c0_224 = arith.constant 0 : index
    %366 = vector.load %arg5[%c1_220, %c0_221, %c1_222, %c0_223, %c0_224] : memref<2x4x4x32x8xbf16, #tpu.memory_space<vmem>>, vector<1x1x1x32x8xbf16>
    %367 = vector.shape_cast %366 : vector<1x1x1x32x8xbf16> to vector<32x8xbf16>
    %cst_225 = arith.constant dense<0.000000e+00> : vector<16x8xf32>
    %368 = tpu.matmul %325, %367, %cst_225 {dimension_numbers = #tpu.dot_dimension_numbers<[1], [0], [0], [1], [0, 0, 1, 1], [], []>} : vector<16x32xbf16>, vector<32x8xbf16>, vector<16x8xf32> -> vector<16x8xf32>
    %369 = vector.extract_strided_slice %315 {offsets = [0, 8], sizes = [1, 8], strides = [1, 1]} : vector<1x32xf32> to vector<1x8xf32>
    %370 = vector.broadcast %369 : vector<1x8xf32> to vector<16x8xf32>
    %371 = arith.addf %368, %370 : vector<16x8xf32>
    %c1_226 = arith.constant 1 : index
    %c1_227 = arith.constant 1 : index
    %c1_228 = arith.constant 1 : index
    %c0_229 = arith.constant 0 : index
    %c0_230 = arith.constant 0 : index
    %372 = vector.load %arg5[%c1_226, %c1_227, %c1_228, %c0_229, %c0_230] : memref<2x4x4x32x8xbf16, #tpu.memory_space<vmem>>, vector<1x1x1x32x8xbf16>
    %373 = vector.shape_cast %372 : vector<1x1x1x32x8xbf16> to vector<32x8xbf16>
    %cst_231 = arith.constant dense<0.000000e+00> : vector<16x8xf32>
    %374 = tpu.matmul %325, %373, %cst_231 {dimension_numbers = #tpu.dot_dimension_numbers<[1], [0], [0], [1], [0, 0, 1, 1], [], []>} : vector<16x32xbf16>, vector<32x8xbf16>, vector<16x8xf32> -> vector<16x8xf32>
    %375 = vector.extract_strided_slice %316 {offsets = [0, 8], sizes = [1, 8], strides = [1, 1]} : vector<1x32xf32> to vector<1x8xf32>
    %376 = vector.broadcast %375 : vector<1x8xf32> to vector<16x8xf32>
    %377 = arith.addf %374, %376 : vector<16x8xf32>
    %c1_232 = arith.constant 1 : index
    %c2_233 = arith.constant 2 : index
    %c1_234 = arith.constant 1 : index
    %c0_235 = arith.constant 0 : index
    %c0_236 = arith.constant 0 : index
    %378 = vector.load %arg5[%c1_232, %c2_233, %c1_234, %c0_235, %c0_236] : memref<2x4x4x32x8xbf16, #tpu.memory_space<vmem>>, vector<1x1x1x32x8xbf16>
    %379 = vector.shape_cast %378 : vector<1x1x1x32x8xbf16> to vector<32x8xbf16>
    %cst_237 = arith.constant dense<0.000000e+00> : vector<16x8xf32>
    %380 = tpu.matmul %325, %379, %cst_237 {dimension_numbers = #tpu.dot_dimension_numbers<[1], [0], [0], [1], [0, 0, 1, 1], [], []>} : vector<16x32xbf16>, vector<32x8xbf16>, vector<16x8xf32> -> vector<16x8xf32>
    %381 = vector.extract_strided_slice %317 {offsets = [0, 8], sizes = [1, 8], strides = [1, 1]} : vector<1x32xf32> to vector<1x8xf32>
    %382 = vector.broadcast %381 : vector<1x8xf32> to vector<16x8xf32>
    %383 = arith.addf %380, %382 : vector<16x8xf32>
    %cst_238 = arith.constant dense<0.000000e+00> : vector<16x16xf32>
    %384 = tpu.matmul %371, %377, %cst_238 {dimension_numbers = #tpu.dot_dimension_numbers<[1], [1], [0], [0], [0, 0, 1, 0], [], []>} : vector<16x8xf32>, vector<16x8xf32>, vector<16x16xf32> -> vector<16x16xf32>
    %cst_239 = arith.constant 0.353553385 : f32
    %385 = vector.broadcast %cst_239 : f32 to vector<16x16xf32>
    %386 = arith.mulf %384, %385 : vector<16x16xf32>
    %cst_240 = arith.constant dense<0xFF800000> : vector<16xf32>
    %387 = vector.multi_reduction <maximumf>, %386, %cst_240 [1] : vector<16x16xf32> to vector<16xf32>
    %388 = vector.shape_cast %387 : vector<16xf32> to vector<16x1xf32>
    %389 = vector.broadcast %388 : vector<16x1xf32> to vector<16x16xf32>
    %390 = arith.subf %386, %389 : vector<16x16xf32>
    %391 = math.exp %390 : vector<16x16xf32>
    %cst_241 = arith.constant dense<0.000000e+00> : vector<16xf32>
    %392 = vector.multi_reduction <add>, %391, %cst_241 [1] : vector<16x16xf32> to vector<16xf32>
    %393 = vector.shape_cast %392 : vector<16xf32> to vector<16x1xf32>
    %394 = tpu.reciprocal %393 {approx = true} : vector<16x1xf32> -> vector<16x1xf32>
    %395 = vector.broadcast %394 : vector<16x1xf32> to vector<16x16xf32>
    %396 = arith.mulf %391, %395 : vector<16x16xf32>
    %397 = arith.truncf %396 : vector<16x16xf32> to vector<16x16xbf16>
    %398 = arith.truncf %383 : vector<16x8xf32> to vector<16x8xbf16>
    %cst_242 = arith.constant dense<0.000000e+00> : vector<16x8xf32>
    %399 = tpu.matmul %397, %398, %cst_242 {dimension_numbers = #tpu.dot_dimension_numbers<[1], [0], [0], [1], [0, 0, 1, 1], [], []>} : vector<16x16xbf16>, vector<16x8xbf16>, vector<16x8xf32> -> vector<16x8xf32>
    %400 = arith.truncf %399 : vector<16x8xf32> to vector<16x8xbf16>
    %c1_243 = arith.constant 1 : index
    %c3_244 = arith.constant 3 : index
    %c1_245 = arith.constant 1 : index
    %c0_246 = arith.constant 0 : index
    %c0_247 = arith.constant 0 : index
    %401 = vector.load %arg5[%c1_243, %c3_244, %c1_245, %c0_246, %c0_247] : memref<2x4x4x32x8xbf16, #tpu.memory_space<vmem>>, vector<1x1x1x32x8xbf16>
    %402 = vector.shape_cast %401 : vector<1x1x1x32x8xbf16> to vector<32x8xbf16>
    %cst_248 = arith.constant dense<0.000000e+00> : vector<16x32xf32>
    %403 = tpu.matmul %400, %402, %cst_248 {dimension_numbers = #tpu.dot_dimension_numbers<[1], [1], [0], [0], [0, 0, 1, 0], [], []>} : vector<16x8xbf16>, vector<32x8xbf16>, vector<16x32xf32> -> vector<16x32xf32>
    %404 = arith.addf %365, %403 : vector<16x32xf32>
    %c1_249 = arith.constant 1 : index
    %c0_250 = arith.constant 0 : index
    %c2_251 = arith.constant 2 : index
    %c0_252 = arith.constant 0 : index
    %c0_253 = arith.constant 0 : index
    %405 = vector.load %arg5[%c1_249, %c0_250, %c2_251, %c0_252, %c0_253] : memref<2x4x4x32x8xbf16, #tpu.memory_space<vmem>>, vector<1x1x1x32x8xbf16>
    %406 = vector.shape_cast %405 : vector<1x1x1x32x8xbf16> to vector<32x8xbf16>
    %cst_254 = arith.constant dense<0.000000e+00> : vector<16x8xf32>
    %407 = tpu.matmul %325, %406, %cst_254 {dimension_numbers = #tpu.dot_dimension_numbers<[1], [0], [0], [1], [0, 0, 1, 1], [], []>} : vector<16x32xbf16>, vector<32x8xbf16>, vector<16x8xf32> -> vector<16x8xf32>
    %408 = vector.extract_strided_slice %315 {offsets = [0, 16], sizes = [1, 8], strides = [1, 1]} : vector<1x32xf32> to vector<1x8xf32>
    %409 = vector.broadcast %408 : vector<1x8xf32> to vector<16x8xf32>
    %410 = arith.addf %407, %409 : vector<16x8xf32>
    %c1_255 = arith.constant 1 : index
    %c1_256 = arith.constant 1 : index
    %c2_257 = arith.constant 2 : index
    %c0_258 = arith.constant 0 : index
    %c0_259 = arith.constant 0 : index
    %411 = vector.load %arg5[%c1_255, %c1_256, %c2_257, %c0_258, %c0_259] : memref<2x4x4x32x8xbf16, #tpu.memory_space<vmem>>, vector<1x1x1x32x8xbf16>
    %412 = vector.shape_cast %411 : vector<1x1x1x32x8xbf16> to vector<32x8xbf16>
    %cst_260 = arith.constant dense<0.000000e+00> : vector<16x8xf32>
    %413 = tpu.matmul %325, %412, %cst_260 {dimension_numbers = #tpu.dot_dimension_numbers<[1], [0], [0], [1], [0, 0, 1, 1], [], []>} : vector<16x32xbf16>, vector<32x8xbf16>, vector<16x8xf32> -> vector<16x8xf32>
    %414 = vector.extract_strided_slice %316 {offsets = [0, 16], sizes = [1, 8], strides = [1, 1]} : vector<1x32xf32> to vector<1x8xf32>
    %415 = vector.broadcast %414 : vector<1x8xf32> to vector<16x8xf32>
    %416 = arith.addf %413, %415 : vector<16x8xf32>
    %c1_261 = arith.constant 1 : index
    %c2_262 = arith.constant 2 : index
    %c2_263 = arith.constant 2 : index
    %c0_264 = arith.constant 0 : index
    %c0_265 = arith.constant 0 : index
    %417 = vector.load %arg5[%c1_261, %c2_262, %c2_263, %c0_264, %c0_265] : memref<2x4x4x32x8xbf16, #tpu.memory_space<vmem>>, vector<1x1x1x32x8xbf16>
    %418 = vector.shape_cast %417 : vector<1x1x1x32x8xbf16> to vector<32x8xbf16>
    %cst_266 = arith.constant dense<0.000000e+00> : vector<16x8xf32>
    %419 = tpu.matmul %325, %418, %cst_266 {dimension_numbers = #tpu.dot_dimension_numbers<[1], [0], [0], [1], [0, 0, 1, 1], [], []>} : vector<16x32xbf16>, vector<32x8xbf16>, vector<16x8xf32> -> vector<16x8xf32>
    %420 = vector.extract_strided_slice %317 {offsets = [0, 16], sizes = [1, 8], strides = [1, 1]} : vector<1x32xf32> to vector<1x8xf32>
    %421 = vector.broadcast %420 : vector<1x8xf32> to vector<16x8xf32>
    %422 = arith.addf %419, %421 : vector<16x8xf32>
    %cst_267 = arith.constant dense<0.000000e+00> : vector<16x16xf32>
    %423 = tpu.matmul %410, %416, %cst_267 {dimension_numbers = #tpu.dot_dimension_numbers<[1], [1], [0], [0], [0, 0, 1, 0], [], []>} : vector<16x8xf32>, vector<16x8xf32>, vector<16x16xf32> -> vector<16x16xf32>
    %cst_268 = arith.constant 0.353553385 : f32
    %424 = vector.broadcast %cst_268 : f32 to vector<16x16xf32>
    %425 = arith.mulf %423, %424 : vector<16x16xf32>
    %cst_269 = arith.constant dense<0xFF800000> : vector<16xf32>
    %426 = vector.multi_reduction <maximumf>, %425, %cst_269 [1] : vector<16x16xf32> to vector<16xf32>
    %427 = vector.shape_cast %426 : vector<16xf32> to vector<16x1xf32>
    %428 = vector.broadcast %427 : vector<16x1xf32> to vector<16x16xf32>
    %429 = arith.subf %425, %428 : vector<16x16xf32>
    %430 = math.exp %429 : vector<16x16xf32>
    %cst_270 = arith.constant dense<0.000000e+00> : vector<16xf32>
    %431 = vector.multi_reduction <add>, %430, %cst_270 [1] : vector<16x16xf32> to vector<16xf32>
    %432 = vector.shape_cast %431 : vector<16xf32> to vector<16x1xf32>
    %433 = tpu.reciprocal %432 {approx = true} : vector<16x1xf32> -> vector<16x1xf32>
    %434 = vector.broadcast %433 : vector<16x1xf32> to vector<16x16xf32>
    %435 = arith.mulf %430, %434 : vector<16x16xf32>
    %436 = arith.truncf %435 : vector<16x16xf32> to vector<16x16xbf16>
    %437 = arith.truncf %422 : vector<16x8xf32> to vector<16x8xbf16>
    %cst_271 = arith.constant dense<0.000000e+00> : vector<16x8xf32>
    %438 = tpu.matmul %436, %437, %cst_271 {dimension_numbers = #tpu.dot_dimension_numbers<[1], [0], [0], [1], [0, 0, 1, 1], [], []>} : vector<16x16xbf16>, vector<16x8xbf16>, vector<16x8xf32> -> vector<16x8xf32>
    %439 = arith.truncf %438 : vector<16x8xf32> to vector<16x8xbf16>
    %c1_272 = arith.constant 1 : index
    %c3_273 = arith.constant 3 : index
    %c2_274 = arith.constant 2 : index
    %c0_275 = arith.constant 0 : index
    %c0_276 = arith.constant 0 : index
    %440 = vector.load %arg5[%c1_272, %c3_273, %c2_274, %c0_275, %c0_276] : memref<2x4x4x32x8xbf16, #tpu.memory_space<vmem>>, vector<1x1x1x32x8xbf16>
    %441 = vector.shape_cast %440 : vector<1x1x1x32x8xbf16> to vector<32x8xbf16>
    %cst_277 = arith.constant dense<0.000000e+00> : vector<16x32xf32>
    %442 = tpu.matmul %439, %441, %cst_277 {dimension_numbers = #tpu.dot_dimension_numbers<[1], [1], [0], [0], [0, 0, 1, 0], [], []>} : vector<16x8xbf16>, vector<32x8xbf16>, vector<16x32xf32> -> vector<16x32xf32>
    %443 = arith.addf %404, %442 : vector<16x32xf32>
    %c1_278 = arith.constant 1 : index
    %c0_279 = arith.constant 0 : index
    %c3_280 = arith.constant 3 : index
    %c0_281 = arith.constant 0 : index
    %c0_282 = arith.constant 0 : index
    %444 = vector.load %arg5[%c1_278, %c0_279, %c3_280, %c0_281, %c0_282] : memref<2x4x4x32x8xbf16, #tpu.memory_space<vmem>>, vector<1x1x1x32x8xbf16>
    %445 = vector.shape_cast %444 : vector<1x1x1x32x8xbf16> to vector<32x8xbf16>
    %cst_283 = arith.constant dense<0.000000e+00> : vector<16x8xf32>
    %446 = tpu.matmul %325, %445, %cst_283 {dimension_numbers = #tpu.dot_dimension_numbers<[1], [0], [0], [1], [0, 0, 1, 1], [], []>} : vector<16x32xbf16>, vector<32x8xbf16>, vector<16x8xf32> -> vector<16x8xf32>
    %447 = vector.extract_strided_slice %315 {offsets = [0, 24], sizes = [1, 8], strides = [1, 1]} : vector<1x32xf32> to vector<1x8xf32>
    %448 = vector.broadcast %447 : vector<1x8xf32> to vector<16x8xf32>
    %449 = arith.addf %446, %448 : vector<16x8xf32>
    %c1_284 = arith.constant 1 : index
    %c1_285 = arith.constant 1 : index
    %c3_286 = arith.constant 3 : index
    %c0_287 = arith.constant 0 : index
    %c0_288 = arith.constant 0 : index
    %450 = vector.load %arg5[%c1_284, %c1_285, %c3_286, %c0_287, %c0_288] : memref<2x4x4x32x8xbf16, #tpu.memory_space<vmem>>, vector<1x1x1x32x8xbf16>
    %451 = vector.shape_cast %450 : vector<1x1x1x32x8xbf16> to vector<32x8xbf16>
    %cst_289 = arith.constant dense<0.000000e+00> : vector<16x8xf32>
    %452 = tpu.matmul %325, %451, %cst_289 {dimension_numbers = #tpu.dot_dimension_numbers<[1], [0], [0], [1], [0, 0, 1, 1], [], []>} : vector<16x32xbf16>, vector<32x8xbf16>, vector<16x8xf32> -> vector<16x8xf32>
    %453 = vector.extract_strided_slice %316 {offsets = [0, 24], sizes = [1, 8], strides = [1, 1]} : vector<1x32xf32> to vector<1x8xf32>
    %454 = vector.broadcast %453 : vector<1x8xf32> to vector<16x8xf32>
    %455 = arith.addf %452, %454 : vector<16x8xf32>
    %c1_290 = arith.constant 1 : index
    %c2_291 = arith.constant 2 : index
    %c3_292 = arith.constant 3 : index
    %c0_293 = arith.constant 0 : index
    %c0_294 = arith.constant 0 : index
    %456 = vector.load %arg5[%c1_290, %c2_291, %c3_292, %c0_293, %c0_294] : memref<2x4x4x32x8xbf16, #tpu.memory_space<vmem>>, vector<1x1x1x32x8xbf16>
    %457 = vector.shape_cast %456 : vector<1x1x1x32x8xbf16> to vector<32x8xbf16>
    %cst_295 = arith.constant dense<0.000000e+00> : vector<16x8xf32>
    %458 = tpu.matmul %325, %457, %cst_295 {dimension_numbers = #tpu.dot_dimension_numbers<[1], [0], [0], [1], [0, 0, 1, 1], [], []>} : vector<16x32xbf16>, vector<32x8xbf16>, vector<16x8xf32> -> vector<16x8xf32>
    %459 = vector.extract_strided_slice %317 {offsets = [0, 24], sizes = [1, 8], strides = [1, 1]} : vector<1x32xf32> to vector<1x8xf32>
    %460 = vector.broadcast %459 : vector<1x8xf32> to vector<16x8xf32>
    %461 = arith.addf %458, %460 : vector<16x8xf32>
    %cst_296 = arith.constant dense<0.000000e+00> : vector<16x16xf32>
    %462 = tpu.matmul %449, %455, %cst_296 {dimension_numbers = #tpu.dot_dimension_numbers<[1], [1], [0], [0], [0, 0, 1, 0], [], []>} : vector<16x8xf32>, vector<16x8xf32>, vector<16x16xf32> -> vector<16x16xf32>
    %cst_297 = arith.constant 0.353553385 : f32
    %463 = vector.broadcast %cst_297 : f32 to vector<16x16xf32>
    %464 = arith.mulf %462, %463 : vector<16x16xf32>
    %cst_298 = arith.constant dense<0xFF800000> : vector<16xf32>
    %465 = vector.multi_reduction <maximumf>, %464, %cst_298 [1] : vector<16x16xf32> to vector<16xf32>
    %466 = vector.shape_cast %465 : vector<16xf32> to vector<16x1xf32>
    %467 = vector.broadcast %466 : vector<16x1xf32> to vector<16x16xf32>
    %468 = arith.subf %464, %467 : vector<16x16xf32>
    %469 = math.exp %468 : vector<16x16xf32>
    %cst_299 = arith.constant dense<0.000000e+00> : vector<16xf32>
    %470 = vector.multi_reduction <add>, %469, %cst_299 [1] : vector<16x16xf32> to vector<16xf32>
    %471 = vector.shape_cast %470 : vector<16xf32> to vector<16x1xf32>
    %472 = tpu.reciprocal %471 {approx = true} : vector<16x1xf32> -> vector<16x1xf32>
    %473 = vector.broadcast %472 : vector<16x1xf32> to vector<16x16xf32>
    %474 = arith.mulf %469, %473 : vector<16x16xf32>
    %475 = arith.truncf %474 : vector<16x16xf32> to vector<16x16xbf16>
    %476 = arith.truncf %461 : vector<16x8xf32> to vector<16x8xbf16>
    %cst_300 = arith.constant dense<0.000000e+00> : vector<16x8xf32>
    %477 = tpu.matmul %475, %476, %cst_300 {dimension_numbers = #tpu.dot_dimension_numbers<[1], [0], [0], [1], [0, 0, 1, 1], [], []>} : vector<16x16xbf16>, vector<16x8xbf16>, vector<16x8xf32> -> vector<16x8xf32>
    %478 = arith.truncf %477 : vector<16x8xf32> to vector<16x8xbf16>
    %c1_301 = arith.constant 1 : index
    %c3_302 = arith.constant 3 : index
    %c3_303 = arith.constant 3 : index
    %c0_304 = arith.constant 0 : index
    %c0_305 = arith.constant 0 : index
    %479 = vector.load %arg5[%c1_301, %c3_302, %c3_303, %c0_304, %c0_305] : memref<2x4x4x32x8xbf16, #tpu.memory_space<vmem>>, vector<1x1x1x32x8xbf16>
    %480 = vector.shape_cast %479 : vector<1x1x1x32x8xbf16> to vector<32x8xbf16>
    %cst_306 = arith.constant dense<0.000000e+00> : vector<16x32xf32>
    %481 = tpu.matmul %478, %480, %cst_306 {dimension_numbers = #tpu.dot_dimension_numbers<[1], [1], [0], [0], [0, 0, 1, 0], [], []>} : vector<16x8xbf16>, vector<32x8xbf16>, vector<16x32xf32> -> vector<16x32xf32>
    %482 = arith.addf %443, %481 : vector<16x32xf32>
    %483 = arith.addf %314, %482 : vector<16x32xf32>
    %484 = vector.broadcast %318 : vector<1x32xf32> to vector<16x32xf32>
    %485 = arith.addf %483, %484 : vector<16x32xf32>
    %cst_307 = arith.constant dense<0.000000e+00> : vector<16xf32>
    %486 = vector.multi_reduction <add>, %485, %cst_307 [1] : vector<16x32xf32> to vector<16xf32>
    %487 = vector.shape_cast %486 : vector<16xf32> to vector<16x1xf32>
    %cst_308 = arith.constant 3.200000e+01 : f32
    %488 = vector.broadcast %cst_308 : f32 to vector<16x1xf32>
    %489 = arith.divf %487, %488 : vector<16x1xf32>
    %490 = vector.broadcast %489 : vector<16x1xf32> to vector<16x32xf32>
    %491 = arith.subf %485, %490 : vector<16x32xf32>
    %492 = arith.mulf %491, %491 : vector<16x32xf32>
    %cst_309 = arith.constant dense<0.000000e+00> : vector<16xf32>
    %493 = vector.multi_reduction <add>, %492, %cst_309 [1] : vector<16x32xf32> to vector<16xf32>
    %494 = vector.shape_cast %493 : vector<16xf32> to vector<16x1xf32>
    %cst_310 = arith.constant 3.200000e+01 : f32
    %495 = vector.broadcast %cst_310 : f32 to vector<16x1xf32>
    %496 = arith.divf %494, %495 : vector<16x1xf32>
    %497 = vector.broadcast %489 : vector<16x1xf32> to vector<16x32xf32>
    %498 = arith.subf %485, %497 : vector<16x32xf32>
    %cst_311 = arith.constant 9.99999996E-13 : f32
    %499 = vector.broadcast %cst_311 : f32 to vector<16x1xf32>
    %500 = arith.addf %496, %499 : vector<16x1xf32>
    %501 = math.rsqrt %500 : vector<16x1xf32>
    %502 = vector.broadcast %501 : vector<16x1xf32> to vector<16x32xf32>
    %503 = arith.mulf %498, %502 : vector<16x32xf32>
    %504 = vector.broadcast %319 : vector<1x32xf32> to vector<16x32xf32>
    %505 = arith.mulf %503, %504 : vector<16x32xf32>
    %506 = vector.broadcast %320 : vector<1x32xf32> to vector<16x32xf32>
    %507 = arith.addf %505, %506 : vector<16x32xf32>
    %508 = arith.truncf %507 : vector<16x32xf32> to vector<16x32xbf16>
    %c2_312 = arith.constant 2 : index
    %c0_313 = arith.constant 0 : index
    %c0_314 = arith.constant 0 : index
    %509 = vector.load %arg6[%c2_312, %c0_313, %c0_314] : memref<5x64x64xbf16, #tpu.memory_space<vmem>>, vector<1x32x64xbf16>
    %510 = vector.shape_cast %509 : vector<1x32x64xbf16> to vector<32x64xbf16>
    %cst_315 = arith.constant dense<0.000000e+00> : vector<16x64xf32>
    %511 = tpu.matmul %508, %510, %cst_315 {dimension_numbers = #tpu.dot_dimension_numbers<[1], [0], [0], [1], [0, 0, 1, 1], [], []>} : vector<16x32xbf16>, vector<32x64xbf16>, vector<16x64xf32> -> vector<16x64xf32>
    %512 = vector.broadcast %321 : vector<1x64xf32> to vector<16x64xf32>
    %513 = arith.addf %511, %512 : vector<16x64xf32>
    %514 = arith.mulf %513, %513 : vector<16x64xf32>
    %515 = arith.mulf %513, %514 : vector<16x64xf32>
    %cst_316 = arith.constant 4.471500e-02 : f32
    %516 = vector.broadcast %cst_316 : f32 to vector<16x64xf32>
    %517 = arith.mulf %516, %515 : vector<16x64xf32>
    %518 = arith.addf %513, %517 : vector<16x64xf32>
    %cst_317 = arith.constant 0.797884583 : f32
    %519 = vector.broadcast %cst_317 : f32 to vector<16x64xf32>
    %520 = arith.mulf %519, %518 : vector<16x64xf32>
    %521 = math.tanh %520 : vector<16x64xf32>
    %cst_318 = arith.constant 1.000000e+00 : f32
    %522 = vector.broadcast %cst_318 : f32 to vector<16x64xf32>
    %523 = arith.addf %522, %521 : vector<16x64xf32>
    %cst_319 = arith.constant 5.000000e-01 : f32
    %524 = vector.broadcast %cst_319 : f32 to vector<16x64xf32>
    %525 = arith.mulf %524, %523 : vector<16x64xf32>
    %526 = arith.mulf %513, %525 : vector<16x64xf32>
    %527 = arith.truncf %526 : vector<16x64xf32> to vector<16x64xbf16>
    %c3_320 = arith.constant 3 : index
    %c0_321 = arith.constant 0 : index
    %c0_322 = arith.constant 0 : index
    %528 = vector.load %arg6[%c3_320, %c0_321, %c0_322] : memref<5x64x64xbf16, #tpu.memory_space<vmem>>, vector<1x64x32xbf16>
    %529 = vector.shape_cast %528 : vector<1x64x32xbf16> to vector<64x32xbf16>
    %cst_323 = arith.constant dense<0.000000e+00> : vector<16x32xf32>
    %530 = tpu.matmul %527, %529, %cst_323 {dimension_numbers = #tpu.dot_dimension_numbers<[1], [0], [0], [1], [0, 0, 1, 1], [], []>} : vector<16x64xbf16>, vector<64x32xbf16>, vector<16x32xf32> -> vector<16x32xf32>
    %531 = vector.broadcast %322 : vector<1x32xf32> to vector<16x32xf32>
    %532 = arith.addf %530, %531 : vector<16x32xf32>
    %533 = arith.addf %507, %532 : vector<16x32xf32>
    %cst_324 = arith.constant dense<0.000000e+00> : vector<16xf32>
    %534 = vector.multi_reduction <add>, %533, %cst_324 [1] : vector<16x32xf32> to vector<16xf32>
    %535 = vector.shape_cast %534 : vector<16xf32> to vector<16x1xf32>
    %cst_325 = arith.constant 3.200000e+01 : f32
    %536 = vector.broadcast %cst_325 : f32 to vector<16x1xf32>
    %537 = arith.divf %535, %536 : vector<16x1xf32>
    %538 = vector.broadcast %537 : vector<16x1xf32> to vector<16x32xf32>
    %539 = arith.subf %533, %538 : vector<16x32xf32>
    %540 = arith.mulf %539, %539 : vector<16x32xf32>
    %cst_326 = arith.constant dense<0.000000e+00> : vector<16xf32>
    %541 = vector.multi_reduction <add>, %540, %cst_326 [1] : vector<16x32xf32> to vector<16xf32>
    %542 = vector.shape_cast %541 : vector<16xf32> to vector<16x1xf32>
    %cst_327 = arith.constant 3.200000e+01 : f32
    %543 = vector.broadcast %cst_327 : f32 to vector<16x1xf32>
    %544 = arith.divf %542, %543 : vector<16x1xf32>
    %545 = vector.broadcast %537 : vector<16x1xf32> to vector<16x32xf32>
    %546 = arith.subf %533, %545 : vector<16x32xf32>
    %cst_328 = arith.constant 9.99999996E-13 : f32
    %547 = vector.broadcast %cst_328 : f32 to vector<16x1xf32>
    %548 = arith.addf %544, %547 : vector<16x1xf32>
    %549 = math.rsqrt %548 : vector<16x1xf32>
    %550 = vector.broadcast %549 : vector<16x1xf32> to vector<16x32xf32>
    %551 = arith.mulf %546, %550 : vector<16x32xf32>
    %552 = vector.broadcast %323 : vector<1x32xf32> to vector<16x32xf32>
    %553 = arith.mulf %551, %552 : vector<16x32xf32>
    %554 = vector.broadcast %324 : vector<1x32xf32> to vector<16x32xf32>
    %555 = arith.addf %553, %554 : vector<16x32xf32>
    %556 = arith.truncf %555 : vector<16x32xf32> to vector<16x32xbf16>
    %c4 = arith.constant 4 : index
    %c0_329 = arith.constant 0 : index
    %c0_330 = arith.constant 0 : index
    %557 = vector.load %arg6[%c4, %c0_329, %c0_330] : memref<5x64x64xbf16, #tpu.memory_space<vmem>>, vector<1x32x32xbf16>
    %558 = vector.shape_cast %557 : vector<1x32x32xbf16> to vector<32x32xbf16>
    %cst_331 = arith.constant dense<0.000000e+00> : vector<16x32xf32>
    %559 = tpu.matmul %556, %558, %cst_331 {dimension_numbers = #tpu.dot_dimension_numbers<[1], [0], [0], [1], [0, 0, 1, 1], [], []>} : vector<16x32xbf16>, vector<32x32xbf16>, vector<16x32xf32> -> vector<16x32xf32>
    %c2_332 = arith.constant 2 : index
    %c0_333 = arith.constant 0 : index
    %560 = vector.load %arg4[%c2_332, %c0_333] : memref<48x128xf32, #tpu.memory_space<vmem>>, vector<1x32xf32>
    %561 = vector.broadcast %560 : vector<1x32xf32> to vector<16x32xf32>
    %562 = arith.addf %559, %561 : vector<16x32xf32>
    %563 = arith.mulf %562, %562 : vector<16x32xf32>
    %564 = arith.mulf %562, %563 : vector<16x32xf32>
    %cst_334 = arith.constant 4.471500e-02 : f32
    %565 = vector.broadcast %cst_334 : f32 to vector<16x32xf32>
    %566 = arith.mulf %565, %564 : vector<16x32xf32>
    %567 = arith.addf %562, %566 : vector<16x32xf32>
    %cst_335 = arith.constant 0.797884583 : f32
    %568 = vector.broadcast %cst_335 : f32 to vector<16x32xf32>
    %569 = arith.mulf %568, %567 : vector<16x32xf32>
    %570 = math.tanh %569 : vector<16x32xf32>
    %cst_336 = arith.constant 1.000000e+00 : f32
    %571 = vector.broadcast %cst_336 : f32 to vector<16x32xf32>
    %572 = arith.addf %571, %570 : vector<16x32xf32>
    %cst_337 = arith.constant 5.000000e-01 : f32
    %573 = vector.broadcast %cst_337 : f32 to vector<16x32xf32>
    %574 = arith.mulf %573, %572 : vector<16x32xf32>
    %575 = arith.mulf %562, %574 : vector<16x32xf32>
    %c3_338 = arith.constant 3 : index
    %c0_339 = arith.constant 0 : index
    %576 = vector.load %arg4[%c3_338, %c0_339] : memref<48x128xf32, #tpu.memory_space<vmem>>, vector<1x32xf32>
    %c4_340 = arith.constant 4 : index
    %c0_341 = arith.constant 0 : index
    %577 = vector.load %arg4[%c4_340, %c0_341] : memref<48x128xf32, #tpu.memory_space<vmem>>, vector<1x32xf32>
    %cst_342 = arith.constant dense<0.000000e+00> : vector<16xf32>
    %578 = vector.multi_reduction <add>, %575, %cst_342 [1] : vector<16x32xf32> to vector<16xf32>
    %579 = vector.shape_cast %578 : vector<16xf32> to vector<16x1xf32>
    %cst_343 = arith.constant 3.200000e+01 : f32
    %580 = vector.broadcast %cst_343 : f32 to vector<16x1xf32>
    %581 = arith.divf %579, %580 : vector<16x1xf32>
    %582 = vector.broadcast %581 : vector<16x1xf32> to vector<16x32xf32>
    %583 = arith.subf %575, %582 : vector<16x32xf32>
    %584 = arith.mulf %583, %583 : vector<16x32xf32>
    %cst_344 = arith.constant dense<0.000000e+00> : vector<16xf32>
    %585 = vector.multi_reduction <add>, %584, %cst_344 [1] : vector<16x32xf32> to vector<16xf32>
    %586 = vector.shape_cast %585 : vector<16xf32> to vector<16x1xf32>
    %cst_345 = arith.constant 3.200000e+01 : f32
    %587 = vector.broadcast %cst_345 : f32 to vector<16x1xf32>
    %588 = arith.divf %586, %587 : vector<16x1xf32>
    %589 = vector.broadcast %581 : vector<16x1xf32> to vector<16x32xf32>
    %590 = arith.subf %575, %589 : vector<16x32xf32>
    %cst_346 = arith.constant 9.99999996E-13 : f32
    %591 = vector.broadcast %cst_346 : f32 to vector<16x1xf32>
    %592 = arith.addf %588, %591 : vector<16x1xf32>
    %593 = math.rsqrt %592 : vector<16x1xf32>
    %594 = vector.broadcast %593 : vector<16x1xf32> to vector<16x32xf32>
    %595 = arith.mulf %590, %594 : vector<16x32xf32>
    %596 = vector.broadcast %576 : vector<1x32xf32> to vector<16x32xf32>
    %597 = arith.mulf %595, %596 : vector<16x32xf32>
    %598 = vector.broadcast %577 : vector<1x32xf32> to vector<16x32xf32>
    %599 = arith.addf %597, %598 : vector<16x32xf32>
    %600 = arith.truncf %599 : vector<16x32xf32> to vector<16x32xbf16>
    %c0_347 = arith.constant 0 : index
    %c0_348 = arith.constant 0 : index
    %601 = vector.load %arg7[%c0_347, %c0_348] : memref<128x32xbf16, #tpu.memory_space<vmem>>, vector<128x32xbf16>
    %cst_349 = arith.constant dense<0.000000e+00> : vector<16x128xf32>
    %602 = tpu.matmul %600, %601, %cst_349 {dimension_numbers = #tpu.dot_dimension_numbers<[1], [1], [0], [0], [0, 0, 1, 0], [], []>} : vector<16x32xbf16>, vector<128x32xbf16>, vector<16x128xf32> -> vector<16x128xf32>
    %c32 = arith.constant 32 : index
    %c0_350 = arith.constant 0 : index
    %603 = vector.load %arg4[%c32, %c0_350] : memref<48x128xf32, #tpu.memory_space<vmem>>, vector<16x128xf32>
    %604 = arith.addf %602, %603 : vector<16x128xf32>
    %c0_351 = arith.constant 0 : index
    %c0_352 = arith.constant 0 : index
    %c0_353 = arith.constant 0 : index
    %605 = vector.load %arg8[%c0_351, %c0_352, %c0_353] : memref<1x16x128xf32, #tpu.memory_space<vmem>>, vector<1x16x128xf32>
    %606 = vector.shape_cast %605 : vector<1x16x128xf32> to vector<16x128xf32>
    %607 = vector.shape_cast %604 : vector<16x128xf32> to vector<1x16x128xf32>
    tpu.vector_store %arg8[%c0_351, %c0_352, %c0_353], %607 {strides = array<i32>} : memref<1x16x128xf32, #tpu.memory_space<vmem>>, vector<1x16x128xf32>,
    return
  }
  func.func @transform_0(%arg0: i32) -> (i32, i32, i32) {
    %c0_i32 = arith.constant 0 : i32
    %c0_i32_0 = arith.constant 0 : i32
    %c0_i32_1 = arith.constant 0 : i32
    return %arg0, %c0_i32, %c0_i32_0 : i32, i32, i32
  }
  func.func @transform_1(%arg0: i32) -> (i32, i32, i32) {
    %c0_i32 = arith.constant 0 : i32
    %c0_i32_0 = arith.constant 0 : i32
    %c0_i32_1 = arith.constant 0 : i32
    return %arg0, %c0_i32, %c0_i32_0 : i32, i32, i32
  }
  func.func @transform_2(%arg0: i32) -> (i32, i32) {
    %c0_i32 = arith.constant 0 : i32
    %c0_i32_0 = arith.constant 0 : i32
    %c0_i32_1 = arith.constant 0 : i32
    return %c0_i32, %c0_i32_0 : i32, i32
  }
  func.func @transform_3(%arg0: i32) -> (i32, i32) {
    %c0_i32 = arith.constant 0 : i32
    %c0_i32_0 = arith.constant 0 : i32
    %c0_i32_1 = arith.constant 0 : i32
    return %c0_i32, %c0_i32_0 : i32, i32
  }
  func.func @transform_4(%arg0: i32) -> (i32, i32, i32, i32, i32) {
    %c0_i32 = arith.constant 0 : i32
    %c0_i32_0 = arith.constant 0 : i32
    %c0_i32_1 = arith.constant 0 : i32
    %c0_i32_2 = arith.constant 0 : i32
    %c0_i32_3 = arith.constant 0 : i32
    %c0_i32_4 = arith.constant 0 : i32
    return %c0_i32, %c0_i32_0, %c0_i32_1, %c0_i32_2, %c0_i32_3 : i32, i32, i32, i32, i32
  }
  func.func @transform_5(%arg0: i32) -> (i32, i32, i32) {
    %c0_i32 = arith.constant 0 : i32
    %c0_i32_0 = arith.constant 0 : i32
    %c0_i32_1 = arith.constant 0 : i32
    %c0_i32_2 = arith.constant 0 : i32
    return %c0_i32, %c0_i32_0, %c0_i32_1 : i32, i32, i32
  }
  func.func @transform_6(%arg0: i32) -> (i32, i32) {
    %c0_i32 = arith.constant 0 : i32
    %c0_i32_0 = arith.constant 0 : i32
    %c0_i32_1 = arith.constant 0 : i32
    return %c0_i32, %c0_i32_0 : i32, i32
  }
  func.func @transform_7(%arg0: i32) -> (i32, i32, i32) {
    %c0_i32 = arith.constant 0 : i32
    %c0_i32_0 = arith.constant 0 : i32
    %c0_i32_1 = arith.constant 0 : i32
    return %arg0, %c0_i32, %c0_i32_0 : i32, i32, i32
  }
  func.func @transform_8(%arg0: i32) -> (i32, i32, i32) {
    %c0_i32 = arith.constant 0 : i32
    %c0_i32_0 = arith.constant 0 : i32
    %c0_i32_1 = arith.constant 0 : i32
    return %arg0, %c0_i32, %c0_i32_0 : i32, i32, i32
  }
}

</mosaic_0001>

<bundles_post_ra>
// kernel: tpu_custom_call.1
= control target key start
LH: loop header
LB: loop body
LE: loop exit
PB: predicated region body
PF: predicated region fallthrough
CT: control target
= control target key end

     0   :  { %14 = vsyncpa [#allocation3], 0  ;;  %s7511_s0 = inlined_call_operand.vmem [shape: f32[2,16,48], index: 0, kind: input, shape index: {}]   ;;  %s7512_s1 = inlined_call_operand.vmem [shape: s32[2,16,1], index: 1, kind: input, shape index: {}]   ;;  %s7513_s2 = inlined_call_operand.vmem [shape: f32[104,32], index: 2, kind: input, shape index: {}]   ;;  %s7514_s3 = inlined_call_operand.vmem [shape: f32[48,128], index: 3, kind: input, shape index: {}]   ;;  %s7515_s4 = inlined_call_operand.vmem [shape: bf16[2,4,4,32,8], index: 4, kind: input, shape index: {}]   ;;  %s7516_s5 = inlined_call_operand.vmem [shape: bf16[5,64,64], index: 5, kind: input, shape index: {}]   ;;  %s7517_s6 = inlined_call_operand.vmem [shape: bf16[128,32], index: 6, kind: input, shape index: {}]   ;;  %s7518_s7 = inlined_call_operand.hbm [shape: f32[2,16,128], index: 7, kind: output, shape index: {0}]   ;;  %s7519_s8 = inlined_call_operand.vmem [shape: s32[2,16,1], index: 8, kind: output, shape index: {1}]  }
   0x1   :  { %16 = vsyncpa [#allocation3 + $0x1], 0  ;;  %s6405_s27 = smov 0   ;;  %s6407_s28 = smov 0  }
   0x2   :  { %s6409_s29 = smov 0   ;;  %s6411_s30 = smov 0  }
   0x3 LB: > { %s6426_s9 = sadd.s32 4294967295, %s6348_s30   ;;  %s4933_s10 = sadd.s32 4294967294, %s6348_s30   ;;  %s6348_s30 = sphi %s6411_s30, %s7529_s30   ;;  %s6344_s29 = sphi %s6409_s29, %s7528_s29   ;;  %s6340_s28 = sphi %s6407_s28, %s7527_s28   ;;  %s6336_s27 = sphi %s6405_s27, %s7526_s27  }
   0x4   : > { %s6430_s11 = sadd.s32 1, %s6348_s30   ;;  %s186_s12 = sadd.s32 1, %s6344_s29 }
   0x5   : > { %s183_s13 = ssub.s32 %s6348_s30, %s6430_s11  ;;  %p196_p0 = scmp.ne.s32.totalorder %s6344_s29, %s6340_s28 }
   0x6   : > { %p184_p1 = scmp.eq.s32.totalorder %s183_s13, 0  ;;  %p197_p2 = scmp.eq.s32.totalorder %s6426_s9, 1 }
   0x7   : > { %p202_p3 = scmp.ne.s32.totalorder %s6340_s28, %s6336_s27  ;;  %p203_p4 = scmp.eq.s32.totalorder %s4933_s10, 1 }
   0x8   : > { %s6441_s14 = scalar_select %p184_p1, %s6344_s29, %s186_s12  }
   0x9   : > { %p6443_p5 = por %p197_p2, %p196_p0  ;;  %p6447_p6 = por %p203_p4, %p202_p3 }
   0xa   : > { %p4936_p7 = scmp.ge.s32.totalorder %s6348_s30, 1  ;;  %p278_p8 = scmp.lt.s32.totalorder %s6348_s30, 3 }
   0xc   : > { %p279_p9 = pnand %p4936_p7, %p278_p8 }
   0xd   : > { %v340_v0 = vld [vmem:[%s7513_s2] sm:$0xff] (!%p279_p9)  ;;  %v341_v1 = vld [vmem:[%s7513_s2 + $0x8] sm:$0xff] (!%p279_p9)  ;;  %v342_v2 = vld [vmem:[%s7513_s2 + $0x10] sm:$0xff] (!%p279_p9)  ;;  %p322_p10 = scmp.lt.s32.totalorder (!%p279_p9), %s6426_s9, 1  ;;  %vm441_vm0 = vcmask (!%p279_p9), 261120   ;;  %vm357_vm1 = vcmask (!%p279_p9), 392192   ;;  %v565_v35 = vlaneseq (!%p279_p9) }
   0xe   : > { %282 = sbr.rel (%p279_p9) target bundleno = 12018 (0x2ef2), region = 48  ;;  %v5970_v3 = vpack.c.bf16 (!%p279_p9), %v341_v1, %v340_v0  ;;  %v343_v4 = vld [vmem:[%s7513_s2 + $0x18] sm:$0xff] (!%p279_p9)  ;;  %v344_v6 = vld [vmem:[%s7513_s2 + $0x20] sm:$0xff] (!%p279_p9)  ;;  %v345_v7 = vld [vmem:[%s7513_s2 + $0x28] sm:$0xff] (!%p279_p9)  ;;  %vm576_vm3 = vcmask (!%p279_p9), 130112   ;;  %vm583_vm4 = vcmask (!%p279_p9), 195712  }
   0xf   : > { %v5974_v5 = vpack.c.bf16 (!%p279_p9), %v343_v4, %v342_v2  ;;  %v347_v8 = vld [vmem:[%s7513_s2 + $0x38] sm:$0xff] (!%p279_p9)  ;;  %v349_v9 = vld [vmem:[%s7513_s2 + $0x48] sm:$0xff] (!%p279_p9)  ;;  %v5978_v12 = vpack.c.bf16 (!%p279_p9), %v345_v7, %v344_v6  ;;  %v348_v13 = vld [vmem:[%s7513_s2 + $0x40] sm:$0xff] (!%p279_p9)  ;;  %v6518_v36 = vand.u32 (!%p279_p9), 127, %v565_v35  ;;  %v568_v37 = vshrl.u32 (!%p279_p9), %v565_v35, 7  ;;  %s6354_s18 = smov (!%p279_p9), 120  }
  0x10   : > { %5971 = vmatprep.subr.bf16.mxu0 (!%p279_p9), %v5970_v3  ;;  %v448_v10 = vmul.f32 (!%p279_p9), %v347_v8, %v347_v8  ;;  %v450_v11 = vmul.f32 (!%p279_p9), %v349_v9, %v349_v9  ;;  %vm6491_vm2 = vmpackc.low (!%p279_p9), %vm441_vm0, %vm441_vm0  ;;  %v5982_v18 = vpack.c.bf16 (!%p279_p9), %v348_v13, %v347_v8  ;;  %v350_v20 = vld [vmem:[%s7513_s2 + $0x50] sm:$0xff] (!%p279_p9)  ;;  %v449_v23 = vmul.f32 (!%p279_p9), %v348_v13, %v348_v13  ;;  %s6356_s12 = smov (!%p279_p9), 104  }
  0x11   : > { %5973 = vmatpush3.bf16.msra.mxu0 (!%p279_p9), %v5970_v3  ;;  %v5988_v21 = vpack.c.bf16 (!%p279_p9), %v350_v20, %v349_v9  ;;  %v451_v22 = vmul.f32 (!%p279_p9), %v350_v20, %v350_v20  ;;  %v4944_v26 = vld [vmem:[%s7513_s2 + $0x30] ss:$0 sm:$0xff] (!%p279_p9)  ;;  %v571_v38 = vadd.s32 (!%p279_p9), 4294967288, %v6518_v36  ;;  %v578_v40 = vadd.s32 (!%p279_p9), 4294967280, %v6518_v36 }
  0x12   : > { %5975 = vmatprep.subr.bf16.mxu0 (!%p279_p9), %v5974_v5  ;;  %v452_v14 = vsel (!%p279_p9), %vm441_vm0, %v448_v10, 0.0  ;;  %v458_v17 = vsel (!%p279_p9), %vm441_vm0, %v450_v11, 0.0  ;;  %v455_v25 = vsel (!%p279_p9), %vm441_vm0, %v449_v23, 0.0  ;;  %v569_v42 = vsub.s32 (!%p279_p9), %v6518_v36, %v568_v37  ;;  %v6092_v23 = vld [vmem:[%s7517_s6] sm:$0xff] (!%p279_p9)  }
  0x13   : > { %453 = vadd.xlane.f32.xlu0 (!%p279_p9), %v452_v14  ;;  %459 = vadd.xlane.f32.xlu1 (!%p279_p9), %v458_v17  ;;  %v461_v24 = vsel (!%p279_p9), %vm441_vm0, %v451_v22, 0.0  ;;  %v574_v43 = vsub.s32 (!%p279_p9), %v571_v38, %v568_v37  ;;  %v585_v44 = vadd.s32 (!%p279_p9), 4294967272, %v6518_v36  ;;  %v581_v45 = vsub.s32 (!%p279_p9), %v578_v40, %v568_v37 }
  0x14   : > { %vm590_vm5 = vcmask (!%p279_p9), 261312   ;;  %v6350_v22 = vmov (!%p279_p9), 0   ;;  %vm647_vm10 = vcmask (!%p279_p9), 7168   ;;  %vm6352_vm13 = vmmov (!%p279_p9), 0  }
  0x15   : > { %s323_s13 = scalar_select %p322_p10, %s6426_s9, 1  ;;  %5977 = vmatpush3.bf16.msra.mxu0 %v5974_v5  ;;  %v588_v49 = vsub.s32 %v585_v44, %v568_v37  ;;  %6091 = vset.pattern.permute.xlu1 %v6350_v22  ;;  %v6099_v44 = vld [vmem:[%s7517_s6 + $0x38] sm:$0xff]  }
  0x16   : > { %5979 = vmatprep.subr.bf16.mxu0 %v5978_v12  ;;  %6090 = vset.pattern.permute.xlu0 %v6350_v22 }
  0x17   : > { %s6479_s21 = sshll.u32 %s323_s13, 4  ;;  %462 = vadd.xlane.f32.xlu1 %v461_v24  ;;  %456 = vadd.xlane.f32.xlu0 %v455_v25  ;;  %v6351_v24 = vmov 0.0   ;;  %v6093_v25 = vld [vmem:[%s7517_s6 + $0x8] sm:$0xff]  }
  0x18   : > { %s326_s24 = scalar_lea.vmem %s7511_s0, %s6479_s21  ;;  %5542 = vmatprep.subr.bf16.mxu1 %v6351_v24  ;;  %s331_s23 = scalar_lea.vmem %s7512_s1, %s6479_s21  ;;  %5546 = vmatprep.mubr.msk.bf16.mxu1 %vm6352_vm13, %v6351_v24 }
  0x19   : > { %v338_v15 = vld [vmem:[%s326_s24] sm:$0xff]  ;;  %v339_v19 = vld [vmem:[%s326_s24 + $0x8] sm:$0xff]  ;;  %5981 = vmatpush3.bf16.msra.mxu0 %v5978_v12  ;;  %s336_s26 = scalar_lea.vmem %s7519_s8, %s6479_s21  ;;  %s6355_s24 = smov 112  }
  0x1a   : > { %5508 = vmatprep.mubr.msk.f32.mxu0 %vm357_vm1, %v338_v15  ;;  %5984 = vmatprep.subr.msk.bf16.mxu0 %vm6491_vm2, %v5982_v18  ;;  %v650_v35 = vld [vmem:[%s331_s23] sm:$0xff] }
  0x1b   : > { %vm652_vm12 = vcmp.ne.s32.totalorder %v650_v35, 0  ;;  %v6647_v35 = vld [vmem:[%s7514_s3 + $0x6] ss:$0 sm:$0xff] }
  0x1c   : > { %5509 = vmatmul.mubr.msk.f32.vlgmr.msra.gmra.mrb[0].mxu0 %vm357_vm1, %v339_v19 }
  0x22   : > { %5987 = vmatpush3.bf16.xpose.msk.msra.mxu0 %vm6491_vm2, %v5982_v18 }
  0x23   : > { %5990 = vmatprep.subr.msk.bf16.mxu0 %vm6491_vm2, %v5988_v21 }
  0x2a   : > { %5993 = vmatpush3.bf16.xpose.msk.msra.mxu0 %vm6491_vm2, %v5988_v21  ;;  %vm1012_vm2 = vcmask 64512  }
  0x2b   : > { %5522 = vmatprep.subr.bf16.mxu0 %v6351_v24 }
  0xa0   : > { %v454_v39 = vpop.xlane.xlu0 %453  ;;  %v460_v41 = vpop.xlane.xlu1 %459 }
  0xa1   : > { %v570_v47 = vrot.slane %v454_v39, %v569_v42  ;;  %v582_v51 = vrot.slane %v460_v41, %v581_v45 }
  0xa4   : > { %v457_v46 = vpop.xlane.xlu0 %456  ;;  %v463_v50 = vpop.xlane.xlu1 %462 }
  0xa5   : > { %v575_v48 = vrot.slane %v457_v46, %v574_v43  ;;  %v589_v53 = vrot.slane %v463_v50, %v588_v49  ;;  %v6353_v49 = vmov 1.0|1.0   ;;  %v351_v50 = vld [vmem:[%s7513_s2 + $0x58] sm:$0xff] }
  0xa7   : > { %v577_v52 = vsel %vm576_vm3, %v575_v48, %v570_v47  ;;  %vm6653_vm3 = vmpackc.low %vm1012_vm2, %vm1012_vm2 }
  0xa8   : > { %v584_v57 = vsel %vm583_vm4, %v582_v51, %v577_v52  ;;  %v352_v52 = vld [vmem:[%s7513_s2 + $0x60] sm:$0xff]  ;;  %vm1102_vm4 = vcmask 130048  }
  0xa9   : > { %v591_v63 = vsel %vm590_vm5, %v589_v53, %v584_v57  ;;  %vm2629_vm5 = vcmask 523264  }
  0xef   : > { %v5510_v27 = vpop.f32.mrb[0].mxu0 }
  0xf0   : > { %v436_v28 = vadd.f32 %v5510_v27, %v4944_v26  ;;  %v430_v29 = vpop.f32.mrb[1].mxu0  ;;  %v6095_v27 = vld [vmem:[%s7517_s6 + $0x18] sm:$0xff]  }
  0xf1   : > { %v431_v30 = vadd.f32 %v4944_v26, %v430_v29  ;;  %v6094_v26 = vld [vmem:[%s7517_s6 + $0x10] sm:$0xff]   ;;  %v6097_v29 = vld [vmem:[%s7517_s6 + $0x28] sm:$0xff]  }
  0xf2   : > { %v440_v31 = vmul.f32 %v436_v28, %v436_v28 }
  0xf3   : > { %5519 = vmatprep.mubr.msk.f32.mxu0 %vm441_vm0, %v431_v30  ;;  %v439_v32 = vmul.f32 %v431_v30, %v431_v30  ;;  %v6098_v30 = vld [vmem:[%s7517_s6 + $0x30] sm:$0xff]  }
  0xf4   : > { %5520 = vmatmul.mubr.msk.f32.vlgmr.msra.gmra.mrb[2].mxu0 %vm441_vm0, %v436_v28  ;;  %v445_v33 = vsel %vm441_vm0, %v440_v31, 0.0  ;;  %v6096_v28 = vld [vmem:[%s7517_s6 + $0x20] sm:$0xff]  }
  0xf5   : > { %446 = vadd.xlane.f32.xlu1 %v445_v33  ;;  %v442_v34 = vsel %vm441_vm0, %v439_v32, 0.0  ;;  %5523 = vmatpush3.bf16.msra.mxu0 %v6092_v23  ;;  %v651_v33 = vld [vmem:[%s331_s23 + $0x8] sm:$0xff]  ;;  %v6102_v23 = vld [vmem:[%s7515_s4 + $0x40] sm:$0xff]  }
  0xf6   : > { %443 = vadd.xlane.f32.xlu0 %v442_v34  ;;  %5524 = vmatprep.subr.bf16.mxu0 %v6351_v24  ;;  %vm653_vm11 = vcmp.ne.s32.totalorder %v651_v33, 0 }
  0xf7   : > { %5538 = vmatprep.mubr.msk.bf16.mxu0 %vm6352_vm13, %v6351_v24 }
  0xf9   : > { %5525 = vmatpush3.bf16.msra.mxu0 %v6093_v25 }
  0xfa   : > { %5526 = vmatprep.subr.bf16.mxu0 %v6351_v24 }
  0xfd   : > { %5527 = vmatpush3.bf16.msra.mxu0 %v6094_v26  ;;  %v6103_v26 = vld [vmem:[%s7515_s4 + $0x48] sm:$0xff]  }
  0xfe   : > { %5528 = vmatprep.subr.bf16.mxu0 %v6351_v24 }
 0x101   : > { %5529 = vmatpush3.bf16.msra.mxu0 %v6095_v27  ;;  %v6104_v27 = vld [vmem:[%s7515_s4 + $0x80] sm:$0xff]  }
 0x102   : > { %5530 = vmatprep.subr.bf16.mxu0 %v6351_v24 }
 0x105   : > { %5531 = vmatpush3.bf16.msra.mxu0 %v6096_v28  ;;  %v6105_v28 = vld [vmem:[%s7515_s4 + $0x88] sm:$0xff]  }
 0x106   : > { %5532 = vmatprep.subr.bf16.mxu0 %v6351_v24 }
 0x109   : > { %5533 = vmatpush3.bf16.msra.mxu0 %v6097_v29  ;;  %v6640_v29 = vld [vmem:[%s7514_s3 + $0x5] ss:$0 sm:$0xff] }
 0x10a   : > { %5534 = vmatprep.subr.bf16.mxu0 %v6351_v24 }
 0x10d   : > { %5535 = vmatpush3.bf16.msra.mxu0 %v6098_v30 }
 0x10e   : > { %5536 = vmatprep.subr.bf16.mxu0 %v6351_v24 }
 0x111   : > { %5537 = vmatpush3.bf16.msra.mxu0 %v6099_v44 }
 0x112   : > { %5573 = vmatprep.subr.bf16.mxu0 %v6351_v24 }
 0x182   : > { %v447_v58 = vpop.xlane.xlu1 %446 }
 0x183   : > { %v444_v60 = vpop.xlane.xlu0 %443 }
 0x1c7   : > { %v5521_v54 = vpop.f32.mrb[2].mxu0 }
 0x1c8   : > { %v558_v55 = vmul.f32 2.0, %v5521_v54  ;;  %v548_v56 = vpop.f32.mrb[3].mxu0 }
 0x1c9   : > { %v557_v59 = vmul.f32 2.0, %v548_v56 }
 0x1ca   : > { %v560_v61 = vsub.f32 %v447_v58, %v558_v55 }
 0x1cb   : > { %v559_v62 = vsub.f32 %v444_v60, %v557_v59 }
 0x1cc   : > { %v606_v0 = vadd.f32 %v591_v63, %v560_v61 }
 0x1cd   : > { %v605_v1 = vadd.f32 %v591_v63, %v559_v62 }
 0x1ce   : > { %v610_v2 = vsel %vm441_vm0, %v606_v0, inf }
 0x1cf   : > { %611 = vmin.xlane.f32.xlu1 %v610_v2  ;;  %v607_v3 = vsel %vm441_vm0, %v605_v1, inf }
 0x1d0   : > { %608 = vmin.xlane.f32.xlu0 %v607_v3 }
 0x25c   : > { %v612_v4 = vpop.xlane.xlu1 %611 }
 0x25d   : > { %vm614_vm6 = vcmp.le.f32.partialorder %v606_v0, %v612_v4  ;;  %v609_v5 = vpop.xlane.xlu0 %608 }
 0x25e   : > { %v616_v6 = vsel %vm614_vm6, %v6518_v36, 32  ;;  %vm613_vm7 = vcmp.le.f32.partialorder %v605_v1, %v609_v5  ;;  %v6100_v5 = vld [vmem:[%s7515_s4] sm:$0xff]  }
 0x25f   : > { %v615_v7 = vsel %vm613_vm7, %v6518_v36, 32  ;;  %v632_v8 = vsel %vm441_vm0, %v616_v6, 2147483647  ;;  %5543 = vmatpush3.bf16.msra.mxu1 %v6100_v5  ;;  %v6101_v6 = vld [vmem:[%s7515_s4 + $0x8] sm:$0xff]  }
 0x260   : > { %v617_v9 = vsel %vm441_vm0, %v615_v7, 2147483647  ;;  %v634_v10 = vshra.s32 %v632_v8, 16  ;;  %v633_v14 = vand.u32 65535, %v632_v8  ;;  %5544 = vmatprep.subr.bf16.mxu1 %v6351_v24 }
 0x261   : > { %v619_v11 = vshra.s32 %v617_v9, 16  ;;  %v618_v15 = vand.u32 65535, %v617_v9 }
 0x262   : > { %v636_v12 = vcvt.s32.f32 %v634_v10  ;;  %v635_v17 = vcvt.s32.f32 %v633_v14 }
 0x263   : > { %v621_v13 = vcvt.s32.f32 %v619_v11  ;;  %v620_v19 = vcvt.s32.f32 %v618_v15  ;;  %5545 = vmatpush3.bf16.msra.mxu1 %v6101_v6  ;;  %v4963_v15 = vld [vmem:[%s7514_s3] ss:$0 sm:$0xff] }
 0x264   : > { %637 = vmin.xlane.f32.xlu1 %v636_v12  ;;  %5550 = vmatprep.subr.bf16.mxu1 %v6351_v24 }
 0x265   : > { %622 = vmin.xlane.f32.xlu0 %v621_v13 }
 0x2f1   : > { %v638_v16 = vpop.xlane.xlu1 %637 }
 0x2f2   : > { %v623_v18 = vpop.xlane.xlu0 %622  ;;  %vm639_vm8 = vcmp.eq.f32.partialorder %v636_v12, %v638_v16  ;;  %v644_v31 = vcvt.f32.s32 %v638_v16 }
 0x2f3   : > { %v640_v20 = vsel %vm639_vm8, %v635_v17, inf  ;;  %vm624_vm9 = vcmp.eq.f32.partialorder %v621_v13, %v623_v18  ;;  %v629_v32 = vcvt.f32.s32 %v623_v18 }
 0x2f4   : > { %641 = vmin.xlane.f32.xlu1 %v640_v20  ;;  %v625_v21 = vsel %vm624_vm9, %v620_v19, inf  ;;  %v645_v37 = vshll.u32 %v644_v31, 16  ;;  %v4964_v19 = vld [vmem:[%s7514_s3 + $0x1] ss:$0 sm:$0xff] }
 0x2f5   : > { %626 = vmin.xlane.f32.xlu0 %v625_v21  ;;  %v630_v40 = vshll.u32 %v629_v32, 16 }
 0x381   : > { %v642_v34 = vpop.xlane.xlu1 %641 }
 0x382   : > { %v643_v38 = vcvt.f32.s32 %v642_v34  ;;  %v627_v39 = vpop.xlane.xlu0 %626 }
 0x383   : > { %v628_v41 = vcvt.f32.s32 %v627_v39 }
 0x384   : > { %v646_v42 = vadd.s32 %v645_v37, %v643_v38 }
 0x385   : > { %v631_v43 = vadd.s32 %v630_v40, %v628_v41 }
 0x386   : > { %v655_v45 = vsel %vm653_vm11, 32, %v646_v42  ;;  %649 = vst.msk [vmem:[%s336_s26 + $0x8] sm:$0xff] %vm647_vm10, %v646_v42 }
 0x387   : > { %648 = vst.msk [vmem:[%s336_s26] sm:$0xff] %vm647_vm10, %v631_v43  ;;  %660 = vperm.xlu1 %6091, %v655_v45   ;;  %v654_v46 = vsel %vm652_vm12, 32, %v631_v43  ;;  %v6662_v45 = vld [vmem:[%s7514_s3 + $0x7] ss:$0 sm:$0xff] }
 0x388   : > { %657 = vperm.xlu0 %6090, %v654_v46  }
 0x406   : > { %v661_v47 = vpop.permute.xlu1 %660 }
 0x407   : > { %vm663_vm14 = vcmp.eq.s32.totalorder %v6518_v36, %v661_v47  ;;  %v658_v48 = vpop.permute.xlu0 %657 }
 0x408   : > { %vm662_vm15 = vcmp.eq.s32.totalorder %v6518_v36, %v658_v48 }
 0x409   : > { %vm4961_vm1 = vmpackc.low %vm663_vm14, %vm662_vm15 }
 0x40a   : > { %5539 = vmatmul.mubr.msk.bf16.vlgmr.msra.gmra.mrb[4].mxu0 %vm4961_vm1, %v6353_v49 }
 0x40b   : > { %5575 = vmatprep.mubr.msk.bf16.mxu0 %vm6352_vm13, %v6351_v24 }
 0x4dd   : > { %v765_v51 = vpop.f32.mrb[4].mxu0 }
 0x4de   : > { %v766_v53 = vadd.f32 %v765_v51, %v351_v50  ;;  %v5540_v54 = vpop.f32.mrb[5].mxu0 }
 0x4df   : > { %v768_v55 = vpop.f32.mrb[6].mxu0 }
 0x4e0   : > { %v769_v56 = vadd.f32 %v768_v55, %v352_v52  ;;  %v5541_v36 = vpop.f32.mrb[7].mxu0  ;;  %v774_v57 = vsel %vm441_vm0, %v766_v53, 0.0  ;;  %v6106_v52 = vld [vmem:[%s7515_s4 + $0x10] sm:$0xff]   ;;  %v6107_v55 = vld [vmem:[%s7515_s4 + $0x18] sm:$0xff]  }
 0x4e1   : > { %775 = vadd.xlane.f32.xlu1 %v774_v57  ;;  %v6109_v36 = vld [vmem:[%s7515_s4 + $0x98] sm:$0xff]   ;;  %v6110_v57 = vld [vmem:[%s7515_s4 + $0x20] sm:$0xff]  }
 0x4e2   : > { %v777_v58 = vsel %vm441_vm0, %v769_v56, 0.0 }
 0x4e3   : > { %778 = vadd.xlane.f32.xlu0 %v777_v58  ;;  %v6111_v58 = vld [vmem:[%s7515_s4 + $0x28] sm:$0xff]  }
 0x4f9   : > { %1257 = vrot.lane.b32.xlu0 %v6647_v35, %s6354_s18 }
 0x56e   : > { %v776_v59 = vpop.xlane.xlu1 %775 }
 0x56f   : > { %v781_v60 = vmul.f32 0.03125, %v776_v59  ;;  %v6112_v59 = vld [vmem:[%s7515_s4 + $0xa0] sm:$0xff]  }
 0x570   : > { %v779_v61 = vpop.xlane.xlu0 %778 }
 0x571   : > { %v783_v62 = vsub.f32 %v766_v53, %v781_v60  ;;  %v782_v63 = vmul.f32 0.03125, %v779_v61  ;;  %v6113_v60 = vld [vmem:[%s7515_s4 + $0xa8] sm:$0xff]  }
 0x573   : > { %v784_v0 = vsub.f32 %v769_v56, %v782_v63  ;;  %v785_v1 = vmul.f32 %v783_v62, %v783_v62  ;;  %v6108_v56 = vld [vmem:[%s7515_s4 + $0x90] sm:$0xff]  }
 0x575   : > { %v787_v2 = vsel %vm441_vm0, %v785_v1, 0.0  ;;  %v786_v3 = vmul.f32 %v784_v0, %v784_v0 }
 0x576   : > { %788 = vadd.xlane.f32.xlu1 %v787_v2 }
 0x577   : > { %v790_v4 = vsel %vm441_vm0, %v786_v3, 0.0 }
 0x57a   : > { %791 = vadd.xlane.f32.xlu1 %v790_v4 }
 0x603   : > { %v789_v7 = vpop.xlane.xlu1 %788 }
 0x604   : > { %v793_v8 = vmul.f32 0.03125, %v789_v7 }
 0x606   : > { %v795_v9 = vadd.f32 1e-12, %v793_v8 }
 0x607   : > { %v792_v10 = vpop.xlane.xlu1 %791 }
 0x608   : > { %6178 = vrsqrt.f32 %v795_v9  ;;  %v794_v11 = vmul.f32 0.03125, %v792_v10 }
 0x60a   : > { %v796_v12 = vadd.f32 1e-12, %v794_v11 }
 0x60c   : > { %6180 = vrsqrt.f32 %v796_v12 }
 0x612   : > { %v6179_v13 = vpop.eup %6178 }
 0x613   : > { %v799_v14 = vmul.f32 %v6179_v13, %v783_v62 }
 0x615   : > { %v805_v17 = vmul.f32 %v4963_v15, %v799_v14 }
 0x616   : > { %v6181_v16 = vpop.eup %6180 }
 0x617   : > { %v800_v18 = vmul.f32 %v6181_v16, %v784_v0  ;;  %v6604_v21 = vadd.f32 %v4964_v19, %v805_v17 }
 0x619   : > { %v806_v20 = vmul.f32 %v4963_v15, %v800_v18 }
 0x61b   : > { %v6606_v22 = vadd.f32 %v4964_v19, %v806_v20 }
 0x61d   : > { %v6613_v25 = vpack.c.bf16 %v6606_v22, %v6604_v21 }
 0x61f   : > { %5547 = vmatmul.mubr.msk.bf16.vlgmr.msra.gmra.mrb[0].mxu1 %vm441_vm0, %v6613_v25 }
 0x620   : > { %5551 = vmatpush3.bf16.msra.mxu1 %v6102_v23  ;;  %5554 = vmatprep.mubr.msk.bf16.mxu1 %vm6352_vm13, %v6351_v24 }
 0x621   : > { %5552 = vmatprep.subr.bf16.mxu1 %v6351_v24 }
 0x624   : > { %5553 = vmatpush3.bf16.msra.mxu1 %v6103_v26 }
 0x625   : > { %5558 = vmatprep.subr.bf16.mxu1 %v6351_v24 }
 0x627   : > { %5555 = vmatmul.mubr.msk.bf16.vlgmr.msra.gmra.mrb[4].mxu1 %vm441_vm0, %v6613_v25 }
 0x628   : > { %5559 = vmatpush3.bf16.msra.mxu1 %v6104_v27  ;;  %5562 = vmatprep.mubr.msk.bf16.mxu1 %vm6352_vm13, %v6351_v24 }
 0x629   : > { %5560 = vmatprep.subr.bf16.mxu1 %v6351_v24 }
 0x62c   : > { %5561 = vmatpush3.bf16.msra.mxu1 %v6105_v28 }
 0x62f   : > { %5563 = vmatmul.mubr.msk.bf16.vlgmr.msra.gmra.mrb[8].mxu1 %vm441_vm0, %v6613_v25 }
 0x6f2   : > { %v881_v30 = vpop.f32.mrb[0].mxu1 }
 0x6f3   : > { %v882_v31 = vadd.f32 %v6640_v29, %v881_v30  ;;  %v5548_v32 = vpop.f32.mrb[1].mxu1 }
 0x6f4   : > { %v884_v33 = vpop.f32.mrb[2].mxu1 }
 0x6f5   : > { %v5549_v34 = vpop.f32.mrb[3].mxu1  ;;  %5570 = vmatprep.mubr.msk.f32.mxu1 %vm1012_vm2, %v882_v31  ;;  %v885_v53 = vadd.f32 %v6640_v29, %v884_v33 }
 0x6fa   : > { %v943_v37 = vpop.f32.mrb[4].mxu1 }
 0x6fb   : > { %v5556_v38 = vpop.f32.mrb[5].mxu1  ;;  %v944_v40 = vadd.f32 %v6647_v35, %v943_v37 }
 0x6fc   : > { %v946_v39 = vpop.f32.mrb[6].mxu1 }
 0x6fd   : > { %v947_v41 = vadd.f32 %v6647_v35, %v946_v39  ;;  %v5557_v42 = vpop.f32.mrb[7].mxu1 }
 0x6fe   : > { %v6114_v42 = vld [vmem:[%s7515_s4 + $0x50] sm:$0xff]  }
 0x6ff   : > { %v5994_v44 = vpack.c.bf16 %v947_v41, %v944_v40 }
 0x701   : > { %5996 = vmatprep.subr.msk.bf16.mxu1 %vm6653_vm3, %v5994_v44 }
 0x702   : > { %v1005_v46 = vpop.f32.mrb[8].mxu1  ;;  %5999 = vmatpush3.bf16.xpose.msk.msra.mxu1 %vm6653_vm3, %v5994_v44 }
 0x703   : > { %v5564_v47 = vpop.f32.mrb[9].mxu1  ;;  %5579 = vmatprep.subr.bf16.mxu1 %v6351_v24  ;;  %v1006_v49 = vadd.f32 %v6662_v45, %v1005_v46  ;;  %v6115_v46 = vld [vmem:[%s7515_s4 + $0x58] sm:$0xff]  }
 0x704   : > { %v1008_v48 = vpop.f32.mrb[10].mxu1 }
 0x705   : > { %v1009_v50 = vadd.f32 %v6662_v45, %v1008_v48  ;;  %v5565_v51 = vpop.f32.mrb[11].mxu1 }
 0x707   : > { %v1126_v54 = vpack.c.bf16 %v1009_v50, %v1006_v49 }
 0x709   : > { %5571 = vmatmul.mubr.msk.f32.vlgmr.msra.gmra.mrb[12].mxu1 %vm1012_vm2, %v885_v53  ;;  %5574 = vmatpush3.bf16.msra.mxu0 %v1126_v54  ;;  %v1258_v54 = vpop.permute.xlu0 %1257 }
 0x70a   : > { %5580 = vmatpush3.bf16.msra.mxu1 %v6106_v52  ;;  %5583 = vmatprep.mubr.msk.bf16.mxu1 %vm6352_vm13, %v6351_v24 }
 0x70b   : > { %5581 = vmatprep.subr.bf16.mxu1 %v6351_v24  ;;  %5587 = vmatprep.subr.bf16.mxu0 %v6351_v24 }
 0x70e   : > { %5582 = vmatpush3.bf16.msra.mxu1 %v6107_v55 }
 0x70f   : > { %5595 = vmatprep.subr.bf16.mxu1 %v6351_v24 }
 0x711   : > { %5584 = vmatmul.mubr.msk.bf16.vlgmr.msra.gmra.mrb[16].mxu1 %vm441_vm0, %v6613_v25 }
 0x712   : > { %5596 = vmatpush3.bf16.msra.mxu1 %v6108_v56  ;;  %5599 = vmatprep.mubr.msk.bf16.mxu1 %vm6352_vm13, %v6351_v24 }
 0x713   : > { %5597 = vmatprep.subr.bf16.mxu1 %v6351_v24 }
 0x716   : > { %5598 = vmatpush3.bf16.msra.mxu1 %v6109_v36 }
 0x717   : > { %5632 = vmatprep.subr.bf16.mxu1 %v6351_v24 }
 0x719   : > { %5600 = vmatmul.mubr.msk.bf16.vlgmr.msra.gmra.mrb[20].mxu1 %vm441_vm0, %v6613_v25 }
 0x71a   : > { %5633 = vmatpush3.bf16.msra.mxu1 %v6110_v57  ;;  %5636 = vmatprep.mubr.msk.bf16.mxu1 %vm6352_vm13, %v6351_v24 }
 0x71b   : > { %5634 = vmatprep.subr.bf16.mxu1 %v6351_v24 }
 0x71e   : > { %5635 = vmatpush3.bf16.msra.mxu1 %v6111_v58 }
 0x71f   : > { %5648 = vmatprep.subr.bf16.mxu1 %v6351_v24 }
 0x721   : > { %5637 = vmatmul.mubr.msk.bf16.vlgmr.msra.gmra.mrb[24].mxu1 %vm441_vm0, %v6613_v25 }
 0x722   : > { %5649 = vmatpush3.bf16.msra.mxu1 %v6112_v59  ;;  %5652 = vmatprep.mubr.msk.bf16.mxu1 %vm6352_vm13, %v6351_v24 }
 0x723   : > { %5650 = vmatprep.subr.bf16.mxu1 %v6351_v24 }
 0x726   : > { %5651 = vmatpush3.bf16.msra.mxu1 %v6113_v60 }
 0x727   : > { %5663 = vmatprep.subr.bf16.mxu1 %v6351_v24 }
 0x729   : > { %5653 = vmatmul.mubr.msk.bf16.vlgmr.msra.gmra.mrb[28].mxu1 %vm441_vm0, %v6613_v25 }
 0x72a   : > { %5665 = vmatprep.mubr.msk.bf16.mxu1 %vm6352_vm13, %v6351_v24 }
 0x7dc   : > { %v5572_v61 = vpop.f32.mrb[12].mxu1 }
 0x7dd   : > { %v1091_v62 = vpop.f32.mrb[13].mxu1  ;;  %v1101_v0 = vmul.f32 0.35355338, %v5572_v61 }
 0x7de   : > { %v1100_v63 = vmul.f32 0.35355338, %v1091_v62 }
 0x7df   : > { %v1106_v3 = vsel %vm1102_vm4, %v1101_v0, -inf }
 0x7e0   : > { %v1103_v1 = vsel %vm1102_vm4, %v1100_v63, -inf }
 0x7e1   : > { %1104 = vmax.xlane.f32.xlu1 %v1103_v1 }
 0x7e4   : > { %v1232_v2 = vpop.f32.mrb[16].mxu1 }
 0x7e5   : > { %v5585_v4 = vpop.f32.mrb[17].mxu1  ;;  %1107 = vmax.xlane.f32.xlu1 %v1106_v3 }
 0x7e6   : > { %v6724_v5 = vpop.f32.mrb[18].mxu1 }
 0x7e7   : > { %v5586_v6 = vpop.f32.mrb[19].mxu1 }
 0x7ec   : > { %v6726_v7 = vpop.f32.mrb[20].mxu1 }
 0x7ed   : > { %v5601_v8 = vpop.f32.mrb[21].mxu1 }
 0x7ee   : > { %v6728_v9 = vpop.f32.mrb[22].mxu1 }
 0x7ef   : > { %v5602_v10 = vpop.f32.mrb[23].mxu1 }
 0x7f4   : > { %v6730_v11 = vpop.f32.mrb[24].mxu1 }
 0x7f5   : > { %v5638_v12 = vpop.f32.mrb[25].mxu1 }
 0x7f6   : > { %v6732_v13 = vpop.f32.mrb[26].mxu1 }
 0x7f7   : > { %v5639_v14 = vpop.f32.mrb[27].mxu1 }
 0x7fc   : > { %v6734_v15 = vpop.f32.mrb[28].mxu1 }
 0x7fd   : > { %v5654_v16 = vpop.f32.mrb[29].mxu1 }
 0x7fe   : > { %v6736_v17 = vpop.f32.mrb[30].mxu1 }
 0x7ff   : > { %v5655_v18 = vpop.f32.mrb[31].mxu1 }
 0x86e   : > { %v1105_v19 = vpop.xlane.xlu1 %1104 }
 0x86f   : > { %v1109_v20 = vsub.f32 %v1100_v63, %v1105_v19 }
 0x871   : > { %v1111_v23 = vmul.f32 1.442695, %v1109_v20 }
 0x872   : > { %v1108_v26 = vpop.xlane.xlu1 %1107 }
 0x873   : > { %6182 = vpow2.f32 %v1111_v23  ;;  %v1110_v27 = vsub.f32 %v1101_v0, %v1108_v26 }
 0x875   : > { %v1113_v28 = vmul.f32 1.442695, %v1110_v27 }
 0x877   : > { %6184 = vpow2.f32 %v1113_v28 }
 0x87d   : > { %v6183_v30 = vpop.eup %6182 }
 0x87e   : > { %v1115_v31 = vsel %vm1102_vm4, %v6183_v30, 0.0 }
 0x87f   : > { %1116 = vadd.xlane.f32.xlu1 %v1115_v31 }
 0x881   : > { %v6185_v32 = vpop.eup %6184 }
 0x882   : > { %v1118_v33 = vsel %vm1102_vm4, %v6185_v32, 0.0 }
 0x883   : > { %1119 = vadd.xlane.f32.xlu1 %v1118_v33 }
 0x894   : > { %1195 = vrot.lane.b32.xlu1 %v6640_v29, %s6354_s18 }
 0x90c   : > { %v1117_v34 = vpop.xlane.xlu1 %1116 }
 0x90d   : > { %6186 = vrcp.f32 %v1117_v34  ;;  %v6116_v34 = vld [vmem:[%s7515_s4 + $0xd0] sm:$0xff]  }
 0x910   : > { %v1120_v37 = vpop.xlane.xlu1 %1119 }
 0x911   : > { %6188 = vrcp.f32 %v1120_v37 }
 0x914   : > { %v1196_v47 = vpop.permute.xlu1 %1195 }
 0x915   : > { %v1233_v48 = vadd.f32 %v1232_v2, %v1196_v47  ;;  %v1236_v61 = vadd.f32 %v6724_v5, %v1196_v47 }
 0x917   : > { %v6187_v38 = vpop.eup %6186 }
 0x918   : > { %v1123_v40 = vmul.f32 %v6187_v38, %v6183_v30 }
 0x91b   : > { %v6189_v39 = vpop.eup %6188 }
 0x91c   : > { %v1124_v41 = vmul.f32 %v6189_v39, %v6185_v32  ;;  %v1540_v39 = vsel %vm1012_vm2, %v6116_v34, 0 }
 0x91e   : > { %v1125_v44 = vpack.c.bf16 %v1124_v41, %v1123_v40  ;;  %v6118_v40 = vld [vmem:[%s7515_s4 + $0xc0] sm:$0xff]  }
 0x920   : > { %5576 = vmatmul.mubr.msk.bf16.vlgmr.msra.gmra.mrb[8].mxu0 %vm1102_vm4, %v1125_v44 }
 0x921   : > { %5588 = vmatpush3.bf16.msra.mxu0 %v6114_v42  ;;  %5591 = vmatprep.mubr.msk.bf16.mxu0 %vm6352_vm13, %v6351_v24 }
 0x922   : > { %5589 = vmatprep.subr.bf16.mxu0 %v6351_v24 }
 0x925   : > { %5590 = vmatpush3.bf16.msra.mxu0 %v6115_v46 }
 0x928   : > { %5592 = vmatmul.mubr.msk.bf16.vlgmr.msra.gmra.mrb[12].mxu0 %vm441_vm0, %v6613_v25 }
 0x929   : > { %5607 = vmatprep.mubr.msk.f32.mxu0 %vm1012_vm2, %v1233_v48  ;;  %v1600_v48 = vsel %vm1012_vm2, %v6118_v40, 0 }
 0x9f3   : > { %v6757_v49 = vpop.f32.mrb[8].mxu0 }
 0x9f4   : > { %v5577_v50 = vpop.f32.mrb[9].mxu0 }
 0x9f5   : > { %v6759_v51 = vpop.f32.mrb[10].mxu0  ;;  %v6119_v50 = vld [vmem:[%s7515_s4 + $0xc8] sm:$0xff]  }
 0x9f6   : > { %v1171_v52 = vpack.c.bf16 %v6759_v51, %v6757_v49  ;;  %v5578_v53 = vpop.f32.mrb[11].mxu0 }
 0x9f7   : > { %v1603_v53 = vsel %vm1012_vm2, %v6119_v50, 0  ;;  %v6124_v50 = vld [vmem:[%s7515_s4 + $0x70] sm:$0xff]  }
 0x9fb   : > { %v1294_v55 = vpop.f32.mrb[12].mxu0 }
 0x9fc   : > { %v5593_v56 = vpop.f32.mrb[13].mxu0  ;;  %v1295_v57 = vadd.f32 %v1294_v55, %v1258_v54 }
 0x9fd   : > { %v1297_v36 = vpop.f32.mrb[14].mxu0  ;;  %v6121_v56 = vld [vmem:[%s7515_s4 + $0x68] sm:$0xff]  }
 0x9fe   : > { %v1298_v58 = vadd.f32 %v1297_v36, %v1258_v54  ;;  %v5594_v59 = vpop.f32.mrb[15].mxu0  ;;  %v6120_v54 = vld [vmem:[%s7515_s4 + $0x60] sm:$0xff]  }
 0xa00   : > { %v6000_v60 = vpack.c.bf16 %v1298_v58, %v1295_v57 }
 0xa02   : > { %6002 = vmatprep.subr.msk.bf16.mxu0 %vm6653_vm3, %v6000_v60 }
 0xa03   : > { %6005 = vmatpush3.bf16.xpose.msk.msra.mxu0 %vm6653_vm3, %v6000_v60 }
 0xa04   : > { %5610 = vmatprep.subr.bf16.mxu0 %v6351_v24 }
 0xa0a   : > { %5608 = vmatmul.mubr.msk.f32.vlgmr.msra.gmra.mrb[16].mxu0 %vm1012_vm2, %v1236_v61 }
 0xa0b   : > { %5612 = vmatprep.mubr.msk.bf16.mxu0 %vm6352_vm13, %v6351_v24 }
 0xadd   : > { %v5609_v62 = vpop.f32.mrb[16].mxu0 }
 0xade   : > { %v1451_v63 = vmul.f32 0.35355338, %v5609_v62  ;;  %v1441_v0 = vpop.f32.mrb[17].mxu0 }
 0xadf   : > { %v1450_v1 = vmul.f32 0.35355338, %v1441_v0 }
 0xae0   : > { %v1455_v2 = vsel %vm1102_vm4, %v1451_v63, -inf }
 0xae1   : > { %1456 = vmax.xlane.f32.xlu0 %v1455_v2  ;;  %v1452_v3 = vsel %vm1102_vm4, %v1450_v1, -inf }
 0xae2   : > { %1453 = vmax.xlane.f32.xlu1 %v1452_v3 }
 0xb6e   : > { %v1457_v4 = vpop.xlane.xlu0 %1456 }
 0xb6f   : > { %v1459_v6 = vsub.f32 %v1451_v63, %v1457_v4  ;;  %v1454_v8 = vpop.xlane.xlu1 %1453 }
 0xb70   : > { %v1458_v10 = vsub.f32 %v1450_v1, %v1454_v8 }
 0xb71   : > { %v1462_v5 = vmul.f32 1.442695, %v1459_v6 }
 0xb72   : > { %v1460_v12 = vmul.f32 1.442695, %v1458_v10 }
 0xb73   : > { %6190 = vpow2.f32 %v1462_v5 }
 0xb74   : > { %6192 = vpow2.f32 %v1460_v12 }
 0xb7d   : > { %v6191_v14 = vpop.eup %6190 }
 0xb7e   : > { %v6193_v16 = vpop.eup %6192  ;;  %v1467_v18 = vsel %vm1102_vm4, %v6191_v14, 0.0 }
 0xb7f   : > { %1468 = vadd.xlane.f32.xlu1 %v1467_v18  ;;  %v1464_v19 = vsel %vm1102_vm4, %v6193_v16, 0.0 }
 0xb80   : > { %1465 = vadd.xlane.f32.xlu0 %v1464_v19 }
 0xb90   : > { %1724 = vrot.lane.b32.xlu1 %v6647_v35, %s6355_s24 }
 0xb94   : > { %1663 = vrot.lane.b32.xlu1 %v6640_v29, %s6355_s24 }
 0xb96   : > { %1319 = vrot.lane.b32.xlu0 %v6662_v45, %s6354_s18 }
 0xc0c   : > { %v1469_v20 = vpop.xlane.xlu1 %1468 }
 0xc0d   : > { %6194 = vrcp.f32 %v1469_v20  ;;  %v1466_v23 = vpop.xlane.xlu0 %1465 }
 0xc0e   : > { %6196 = vrcp.f32 %v1466_v23 }
 0xc10   : > { %v1725_v55 = vpop.permute.xlu1 %1724 }
 0xc11   : > { %v1320_v26 = vpop.permute.xlu0 %1319 }
 0xc12   : > { %v1357_v27 = vadd.f32 %v6726_v7, %v1320_v26  ;;  %v1360_v28 = vadd.f32 %v6728_v9, %v1320_v26  ;;  %v6117_v7 = vld [vmem:[%s7515_s4 + $0xd8] sm:$0xff]  }
 0xc13   : > { %v1543_v9 = vsel %vm1012_vm2, %v6117_v7, 0  ;;  %v6127_v7 = vld [vmem:[%s7515_s4 + $0xe8] sm:$0xff]  }
 0xc14   : > { %v1475_v30 = vpack.c.bf16 %v1360_v28, %v1357_v27  ;;  %v1664_v36 = vpop.permute.xlu1 %1663 }
 0xc15   : > { %v1701_v57 = vadd.f32 %v6730_v11, %v1664_v36  ;;  %v1704_v10 = vadd.f32 %v6732_v13, %v1664_v36  ;;  %v6128_v36 = vld [vmem:[%s7515_s4 + $0xb0] sm:$0xff]  }
 0xc16   : > { %5611 = vmatpush3.bf16.msra.mxu0 %v1475_v30 }
 0xc17   : > { %v6195_v31 = vpop.eup %6194  ;;  %5616 = vmatprep.subr.bf16.mxu0 %v6351_v24 }
 0xc18   : > { %v6197_v32 = vpop.eup %6196  ;;  %v1473_v33 = vmul.f32 %v6195_v31, %v6191_v14 }
 0xc19   : > { %v1472_v37 = vmul.f32 %v6197_v32, %v6193_v16 }
 0xc1b   : > { %v1474_v38 = vpack.c.bf16 %v1473_v33, %v1472_v37 }
 0xc1d   : > { %5613 = vmatmul.mubr.msk.bf16.vlgmr.msra.gmra.mrb[20].mxu0 %vm1102_vm4, %v1474_v38 }
 0xc1e   : > { %5620 = vmatprep.mubr.msk.bf16.mxu0 %vm6352_vm13, %v6351_v24 }
 0xc1f   : > { %5617 = vmatpush3.bf16.xpose.msra.mxu0 %v1540_v39 }
 0xc20   : > { %5618 = vmatprep.subr.bf16.mxu0 %v6351_v24 }
 0xc27   : > { %5619 = vmatpush3.bf16.xpose.msra.mxu0 %v1543_v9  ;;  %v2009_v9 = vsel %vm1012_vm2, %v6127_v7, 0 }
 0xc28   : > { %5624 = vmatprep.subr.bf16.mxu0 %v6351_v24 }
 0xcf0   : > { %v1513_v41 = vpop.f32.mrb[20].mxu0 }
 0xcf1   : > { %v5614_v42 = vpop.f32.mrb[21].mxu0 }
 0xcf2   : > { %v1516_v44 = vpop.f32.mrb[22].mxu0 }
 0xcf3   : > { %v1520_v46 = vpack.c.bf16 %v1516_v44, %v1513_v41  ;;  %v5615_v47 = vpop.f32.mrb[23].mxu0 }
 0xcf5   : > { %5621 = vmatmul.mubr.msk.bf16.vlgmr.msra.gmra.mrb[24].mxu0 %vm1012_vm2, %v1520_v46  ;;  %v6122_v46 = vld [vmem:[%s7515_s4 + $0x30] sm:$0xff]  }
 0xcf6   : > { %5625 = vmatpush3.bf16.xpose.msra.mxu0 %v1600_v48  ;;  %5628 = vmatprep.mubr.msk.bf16.mxu0 %vm6352_vm13, %v6351_v24  ;;  %v6123_v48 = vld [vmem:[%s7515_s4 + $0x38] sm:$0xff]  }
 0xcf7   : > { %5626 = vmatprep.subr.bf16.mxu0 %v6351_v24 }
 0xcfe   : > { %5627 = vmatpush3.bf16.xpose.msra.mxu0 %v1603_v53  ;;  %v6125_v53 = vld [vmem:[%s7515_s4 + $0x78] sm:$0xff]  }
 0xcff   : > { %5640 = vmatprep.subr.bf16.mxu0 %v6351_v24 }
 0xd05   : > { %5629 = vmatmul.mubr.msk.bf16.vlgmr.msra.gmra.mrb[28].mxu0 %vm1012_vm2, %v1171_v52 }
 0xd06   : > { %5641 = vmatpush3.bf16.msra.mxu0 %v6120_v54  ;;  %5644 = vmatprep.mubr.msk.bf16.mxu0 %vm6352_vm13, %v6351_v24 }
 0xd07   : > { %5642 = vmatprep.subr.bf16.mxu0 %v6351_v24 }
 0xd0a   : > { %5643 = vmatpush3.bf16.msra.mxu0 %v6121_v56 }
 0xd0d   : > { %5645 = vmatmul.mubr.msk.bf16.vlgmr.msra.gmra.mrb[32].mxu0 %vm441_vm0, %v6613_v25 }
 0xd0e   : > { %5660 = vmatprep.mubr.msk.f32.mxu0 %vm1012_vm2, %v1701_v57 }
 0xdc8   : > { %v1579_v49 = vpop.f32.mrb[24].mxu0 }
 0xdc9   : > { %v5622_v51 = vpop.f32.mrb[25].mxu0 }
 0xdca   : > { %v1582_v52 = vpop.f32.mrb[26].mxu0 }
 0xdcb   : > { %v5623_v58 = vpop.f32.mrb[27].mxu0 }
 0xdd8   : > { %v1639_v59 = vpop.f32.mrb[28].mxu0 }
 0xdd9   : > { %v6828_v60 = vadd.f32 %v1639_v59, %v1579_v49  ;;  %v5630_v61 = vpop.f32.mrb[29].mxu0 }
 0xdda   : > { %v1642_v62 = vpop.f32.mrb[30].mxu0 }
 0xddb   : > { %v6830_v63 = vadd.f32 %v1642_v62, %v1582_v52  ;;  %v5631_v0 = vpop.f32.mrb[31].mxu0  ;;  %v6129_v52 = vld [vmem:[%s7515_s4 + $0xb8] sm:$0xff]  }
 0xde0   : > { %v1761_v1 = vpop.f32.mrb[32].mxu0 }
 0xde1   : > { %v5646_v2 = vpop.f32.mrb[33].mxu0  ;;  %v1762_v3 = vadd.f32 %v1761_v1, %v1725_v55 }
 0xde2   : > { %v1764_v11 = vpop.f32.mrb[34].mxu0 }
 0xde3   : > { %v1765_v4 = vadd.f32 %v1764_v11, %v1725_v55  ;;  %v5647_v6 = vpop.f32.mrb[35].mxu0 }
 0xde5   : > { %v6006_v8 = vpack.c.bf16 %v1765_v4, %v1762_v3 }
 0xde7   : > { %6008 = vmatprep.subr.msk.bf16.mxu0 %vm6653_vm3, %v6006_v8 }
 0xde8   : > { %6011 = vmatpush3.bf16.xpose.msk.msra.mxu0 %vm6653_vm3, %v6006_v8 }
 0xde9   : > { %5669 = vmatprep.subr.bf16.mxu0 %v6351_v24 }
 0xdef   : > { %5661 = vmatmul.mubr.msk.f32.vlgmr.msra.gmra.mrb[18].mxu0 %vm1012_vm2, %v1704_v10 }
 0xdf0   : > { %5673 = vmatprep.mubr.msk.bf16.mxu0 %vm6352_vm13, %v6351_v24 }
 0xec2   : > { %v5662_v5 = vpop.f32.mrb[18].mxu0 }
 0xec3   : > { %v1917_v12 = vmul.f32 0.35355338, %v5662_v5  ;;  %v1907_v14 = vpop.f32.mrb[19].mxu0 }
 0xec4   : > { %v1916_v16 = vmul.f32 0.35355338, %v1907_v14 }
 0xec5   : > { %v1921_v18 = vsel %vm1102_vm4, %v1917_v12, -inf }
 0xec6   : > { %1922 = vmax.xlane.f32.xlu1 %v1921_v18  ;;  %v1918_v19 = vsel %vm1102_vm4, %v1916_v16, -inf }
 0xec7   : > { %1919 = vmax.xlane.f32.xlu0 %v1918_v19 }
 0xed7   : > { %1785 = vrot.lane.b32.xlu1 %v6662_v45, %s6355_s24 }
 0xedb   : > { %2071 = vrot.lane.b32.xlu1 %v6640_v29, %s6356_s12 }
 0xf53   : > { %v1923_v20 = vpop.xlane.xlu1 %1922 }
 0xf54   : > { %v1925_v13 = vsub.f32 %v1917_v12, %v1923_v20  ;;  %v1920_v23 = vpop.xlane.xlu0 %1919 }
 0xf55   : > { %v1924_v26 = vsub.f32 %v1916_v16, %v1920_v23 }
 0xf56   : > { %v1928_v27 = vmul.f32 1.442695, %v1925_v13 }
 0xf57   : > { %v1926_v28 = vmul.f32 1.442695, %v1924_v26  ;;  %v1786_v30 = vpop.permute.xlu1 %1785 }
 0xf58   : > { %v1823_v31 = vadd.f32 %v6734_v15, %v1786_v30  ;;  %v1826_v32 = vadd.f32 %v6736_v17, %v1786_v30  ;;  %v6126_v15 = vld [vmem:[%s7515_s4 + $0xe0] sm:$0xff]  }
 0xf59   : > { %6198 = vpow2.f32 %v1926_v28  ;;  %v2006_v17 = vsel %vm1012_vm2, %v6126_v15, 0 }
 0xf5a   : > { %v1941_v33 = vpack.c.bf16 %v1826_v32, %v1823_v31  ;;  %6200 = vpow2.f32 %v1928_v27  ;;  %5670 = vmatpush3.bf16.xpose.msra.mxu0 %v2006_v17 }
 0xf5b   : > { %5671 = vmatprep.subr.bf16.mxu0 %v6351_v24  ;;  %v2072_v51 = vpop.permute.xlu1 %2071 }
 0xf5c   : > { %5664 = vmatpush3.bf16.msra.mxu1 %v1941_v33 }
 0xf5d   : > { %5677 = vmatprep.subr.bf16.mxu1 %v6351_v24 }
 0xf62   : > { %5672 = vmatpush3.bf16.xpose.msra.mxu0 %v2009_v9 }
 0xf63   : > { %v6199_v34 = vpop.eup %6198  ;;  %5693 = vmatprep.subr.bf16.mxu0 %v6351_v24 }
 0xf64   : > { %v1930_v37 = vsel %vm1102_vm4, %v6199_v34, 0.0  ;;  %v6201_v38 = vpop.eup %6200 }
 0xf65   : > { %1931 = vadd.xlane.f32.xlu0 %v1930_v37  ;;  %v1933_v39 = vsel %vm1102_vm4, %v6201_v38, 0.0 }
 0xf69   : > { %1934 = vadd.xlane.f32.xlu0 %v1933_v39 }
 0xf7f   : > { %2132 = vrot.lane.b32.xlu0 %v6647_v35, %s6356_s12 }
 0xff2   : > { %v1932_v40 = vpop.xlane.xlu0 %1931 }
 0xff3   : > { %6202 = vrcp.f32 %v1932_v40  ;;  %v6130_v40 = vld [vmem:[%s7515_s4 + $0xf0] sm:$0xff]  }
 0xff6   : > { %v1935_v29 = vpop.xlane.xlu0 %1934 }
 0xff7   : > { %6204 = vrcp.f32 %v1935_v29  ;;  %v2414_v29 = vsel %vm1012_vm2, %v6130_v40, 0  ;;  %v6134_v40 = vld [vmem:[%s7516_s5 + $0x20] sm:$0xff]  }
 0xffa   : > { %v2133_v2 = vpop.permute.xlu0 %2132 }
 0xffd   : > { %v6203_v41 = vpop.eup %6202 }
 0xffe   : > { %v1938_v42 = vmul.f32 %v6203_v41, %v6199_v34  ;;  %v6131_v41 = vld [vmem:[%s7515_s4 + $0xf8] sm:$0xff]  }
0x1001   : > { %v6205_v35 = vpop.eup %6204 }
0x1002   : > { %v1939_v44 = vmul.f32 %v6205_v35, %v6201_v38  ;;  %v2417_v35 = vsel %vm1012_vm2, %v6131_v41, 0  ;;  %v6136_v41 = vld [vmem:[%s7516_s5 + $0x30] sm:$0xff]  }
0x1004   : > { %v1940_v47 = vpack.c.bf16 %v1939_v44, %v1938_v42 }
0x1006   : > { %5666 = vmatmul.mubr.msk.bf16.vlgmr.msra.gmra.mrb[32].mxu1 %vm1102_vm4, %v1940_v47 }
0x1007   : > { %5678 = vmatpush3.bf16.msra.mxu1 %v6122_v46  ;;  %5681 = vmatprep.mubr.msk.bf16.mxu1 %vm6352_vm13, %v6351_v24 }
0x1008   : > { %5679 = vmatprep.subr.bf16.mxu1 %v6351_v24 }
0x100b   : > { %5680 = vmatpush3.bf16.msra.mxu1 %v6123_v48 }
0x100c   : > { %5685 = vmatprep.subr.bf16.mxu1 %v6351_v24 }
0x100e   : > { %5682 = vmatmul.mubr.msk.bf16.vlgmr.msra.gmra.mrb[36].mxu1 %vm441_vm0, %v6613_v25 }
0x100f   : > { %5686 = vmatpush3.bf16.msra.mxu1 %v6124_v50  ;;  %5689 = vmatprep.mubr.msk.bf16.mxu1 %vm6352_vm13, %v6351_v24 }
0x1010   : > { %5687 = vmatprep.subr.bf16.mxu1 %v6351_v24 }
0x1013   : > { %5688 = vmatpush3.bf16.msra.mxu1 %v6125_v53 }
0x1016   : > { %5690 = vmatmul.mubr.msk.bf16.vlgmr.msra.gmra.mrb[40].mxu1 %vm441_vm0, %v6613_v25 }
0x10d9   : > { %v1979_v54 = vpop.f32.mrb[32].mxu1 }
0x10da   : > { %v5667_v55 = vpop.f32.mrb[33].mxu1 }
0x10db   : > { %v1982_v56 = vpop.f32.mrb[34].mxu1 }
0x10dc   : > { %v1986_v57 = vpack.c.bf16 %v1982_v56, %v1979_v54  ;;  %v5668_v49 = vpop.f32.mrb[35].mxu1 }
0x10de   : > { %5674 = vmatmul.mubr.msk.bf16.vlgmr.msra.gmra.mrb[36].mxu0 %vm1012_vm2, %v1986_v57 }
0x10df   : > { %5694 = vmatpush3.bf16.msra.mxu0 %v6128_v36  ;;  %5697 = vmatprep.mubr.msk.bf16.mxu0 %vm6352_vm13, %v6351_v24 }
0x10e0   : > { %5695 = vmatprep.subr.bf16.mxu0 %v6351_v24 }
0x10e1   : > { %v2108_v58 = vpop.f32.mrb[36].mxu1 }
0x10e2   : > { %v2109_v59 = vadd.f32 %v2108_v58, %v2072_v51  ;;  %v5683_v61 = vpop.f32.mrb[37].mxu1 }
0x10e3   : > { %v2111_v62 = vpop.f32.mrb[38].mxu1  ;;  %5696 = vmatpush3.bf16.msra.mxu0 %v6129_v52 }
0x10e4   : > { %v5684_v0 = vpop.f32.mrb[39].mxu1  ;;  %5705 = vmatprep.mubr.msk.f32.mxu1 %vm1012_vm2, %v2109_v59  ;;  %5714 = vmatprep.subr.bf16.mxu0 %v6351_v24 }
0x10e5   : > { %v5096_v0 = vld [vmem:[%s7514_s3 + $0x8] ss:$0 sm:$0xff] }
0x10e6   : > { %5698 = vmatmul.mubr.msk.bf16.vlgmr.msra.gmra.mrb[40].mxu0 %vm441_vm0, %v6613_v25  ;;  %v2112_v25 = vadd.f32 %v2111_v62, %v2072_v51 }
0x10e7   : > { %5718 = vmatprep.mubr.msk.bf16.mxu0 %vm6352_vm13, %v6351_v24 }
0x10e9   : > { %v2169_v1 = vpop.f32.mrb[40].mxu1 }
0x10ea   : > { %v5691_v11 = vpop.f32.mrb[41].mxu1  ;;  %v2170_v4 = vadd.f32 %v2169_v1, %v2133_v2 }
0x10eb   : > { %v2172_v3 = vpop.f32.mrb[42].mxu1 }
0x10ec   : > { %v2173_v6 = vadd.f32 %v2172_v3, %v2133_v2  ;;  %v5692_v8 = vpop.f32.mrb[43].mxu1  ;;  %5715 = vmatpush3.bf16.xpose.msra.mxu0 %v2414_v29  ;;  %v6135_v29 = vld [vmem:[%s7516_s5 + $0x28] sm:$0xff]  }
0x10ed   : > { %5716 = vmatprep.subr.bf16.mxu0 %v6351_v24 }
0x10ee   : > { %v6012_v10 = vpack.c.bf16 %v2173_v6, %v2170_v4 }
0x10f0   : > { %6014 = vmatprep.subr.msk.bf16.mxu1 %vm6653_vm3, %v6012_v10 }
0x10f1   : > { %6017 = vmatpush3.bf16.xpose.msk.msra.mxu1 %vm6653_vm3, %v6012_v10 }
0x10f2   : > { %5708 = vmatprep.subr.bf16.mxu1 %v6351_v24 }
0x10f4   : > { %5717 = vmatpush3.bf16.xpose.msra.mxu0 %v2417_v35  ;;  %v6137_v35 = vld [vmem:[%s7516_s5 + $0x38] sm:$0xff]  }
0x10f5   : > { %5742 = vmatprep.subr.bf16.mxu0 %v6351_v24 }
0x10f8   : > { %5706 = vmatmul.mubr.msk.f32.vlgmr.msra.gmra.mrb[14].mxu1 %vm1012_vm2, %v2112_v25 }
0x10f9   : > { %5710 = vmatprep.mubr.msk.bf16.mxu1 %vm6352_vm13, %v6351_v24 }
0x11b1   : > { %v2045_v5 = vpop.f32.mrb[36].mxu0 }
0x11b2   : > { %v6913_v12 = vadd.f32 %v2045_v5, %v6828_v60  ;;  %v5675_v14 = vpop.f32.mrb[37].mxu0 }
0x11b3   : > { %v2048_v16 = vpop.f32.mrb[38].mxu0 }
0x11b4   : > { %v6916_v18 = vadd.f32 %v2048_v16, %v6830_v63  ;;  %v5676_v19 = vpop.f32.mrb[39].mxu0 }
0x11b9   : > { %v2230_v20 = vpop.f32.mrb[40].mxu0 }
0x11ba   : > { %v5699_v13 = vpop.f32.mrb[41].mxu0 }
0x11bb   : > { %v2233_v23 = vpop.f32.mrb[42].mxu0  ;;  %v6132_v13 = vld [vmem:[%s7516_s5] sm:$0xff]  }
0x11bc   : > { %v5700_v26 = vpop.f32.mrb[43].mxu0 }
0x11cb   : > { %v5707_v27 = vpop.f32.mrb[14].mxu1 }
0x11cc   : > { %v2325_v28 = vmul.f32 0.35355338, %v5707_v27  ;;  %v2315_v30 = vpop.f32.mrb[15].mxu1 }
0x11cd   : > { %v2324_v31 = vmul.f32 0.35355338, %v2315_v30 }
0x11ce   : > { %v2329_v32 = vsel %vm1102_vm4, %v2325_v28, -inf }
0x11cf   : > { %2330 = vmax.xlane.f32.xlu0 %v2329_v32  ;;  %v2326_v60 = vsel %vm1102_vm4, %v2324_v31, -inf }
0x11d0   : > { %2327 = vmax.xlane.f32.xlu1 %v2326_v60 }
0x125c   : > { %v2331_v33 = vpop.xlane.xlu0 %2330 }
0x125d   : > { %v2333_v34 = vsub.f32 %v2325_v28, %v2331_v33  ;;  %v2328_v37 = vpop.xlane.xlu1 %2327 }
0x125e   : > { %v2332_v63 = vsub.f32 %v2324_v31, %v2328_v37 }
0x125f   : > { %v2336_v38 = vmul.f32 1.442695, %v2333_v34  ;;  %v5097_v34 = vld [vmem:[%s7514_s3 + $0x9] ss:$0 sm:$0xff] }
0x1260   : > { %v2334_v39 = vmul.f32 1.442695, %v2332_v63 }
0x1261   : > { %6206 = vpow2.f32 %v2336_v38 }
0x1262   : > { %6208 = vpow2.f32 %v2334_v39  ;;  %v5098_v39 = vld [vmem:[%s7514_s3 + $0xa] ss:$0 sm:$0xff] }
0x126b   : > { %v6207_v15 = vpop.eup %6206 }
0x126c   : > { %v6209_v17 = vpop.eup %6208  ;;  %v2341_v7 = vsel %vm1102_vm4, %v6207_v15, 0.0 }
0x126d   : > { %2342 = vadd.xlane.f32.xlu1 %v2341_v7  ;;  %v2338_v9 = vsel %vm1102_vm4, %v6209_v17, 0.0 }
0x126e   : > { %2339 = vadd.xlane.f32.xlu0 %v2338_v9 }
0x1284   : > { %2193 = vrot.lane.b32.xlu0 %v6662_v45, %s6356_s12 }
0x12fa   : > { %v2343_v42 = vpop.xlane.xlu1 %2342 }
0x12fb   : > { %6210 = vrcp.f32 %v2343_v42  ;;  %v2340_v45 = vpop.xlane.xlu0 %2339  ;;  %v5099_v42 = vld [vmem:[%s7514_s3 + $0xb] ss:$0 sm:$0xff] }
0x12fc   : > { %6212 = vrcp.f32 %v2340_v45 }
0x12ff   : > { %v2194_v44 = vpop.permute.xlu0 %2193 }
0x1300   : > { %v2231_v46 = vadd.f32 %v2230_v20, %v2194_v44  ;;  %v2234_v47 = vadd.f32 %v2233_v23, %v2194_v44  ;;  %v6133_v23 = vld [vmem:[%s7516_s5 + $0x8] sm:$0xff]  }
0x1302   : > { %v2349_v48 = vpack.c.bf16 %v2234_v47, %v2231_v46 }
0x1304   : > { %5709 = vmatpush3.bf16.msra.mxu1 %v2349_v48 }
0x1305   : > { %v6211_v50 = vpop.eup %6210  ;;  %5722 = vmatprep.subr.bf16.mxu1 %v6351_v24 }
0x1306   : > { %v6213_v53 = vpop.eup %6212  ;;  %v2347_v54 = vmul.f32 %v6211_v50, %v6207_v15 }
0x1307   : > { %v2346_v55 = vmul.f32 %v6213_v53, %v6209_v17 }
0x1309   : > { %v2348_v56 = vpack.c.bf16 %v2347_v54, %v2346_v55 }
0x130b   : > { %5711 = vmatmul.mubr.msk.bf16.vlgmr.msra.gmra.mrb[44].mxu1 %vm1102_vm4, %v2348_v56 }
0x130c   : > { %5726 = vmatprep.mubr.msk.bf16.mxu1 %vm6352_vm13, %v6351_v24  ;;  %5723 = vmatpush3.bf16.msra.mxu1 %v6132_v13 }
0x130d   : > { %5724 = vmatprep.subr.bf16.mxu1 %v6351_v24 }
0x1310   : > { %5725 = vmatpush3.bf16.msra.mxu1 %v6133_v23 }
0x1311   : > { %5730 = vmatprep.subr.bf16.mxu1 %v6351_v24 }
0x13de   : > { %v2387_v36 = vpop.f32.mrb[44].mxu1 }
0x13df   : > { %v5712_v57 = vpop.f32.mrb[45].mxu1 }
0x13e0   : > { %v2390_v49 = vpop.f32.mrb[46].mxu1 }
0x13e1   : > { %v2394_v51 = vpack.c.bf16 %v2390_v49, %v2387_v36  ;;  %v5713_v52 = vpop.f32.mrb[47].mxu1 }
0x13e3   : > { %5719 = vmatmul.mubr.msk.bf16.vlgmr.msra.gmra.mrb[44].mxu0 %vm1012_vm2, %v2394_v51 }
0x13e4   : > { %5746 = vmatprep.mubr.msk.bf16.mxu0 %vm6352_vm13, %v6351_v24 }
0x14b6   : > { %v2453_v58 = vpop.f32.mrb[44].mxu0 }
0x14b7   : > { %v2460_v59 = vadd.f32 %v2453_v58, %v6913_v12  ;;  %v5720_v61 = vpop.f32.mrb[45].mxu0 }
0x14b8   : > { %v2456_v62 = vpop.f32.mrb[46].mxu0 }
0x14b9   : > { %v2462_v1 = vadd.f32 %v2460_v59, %v6604_v21  ;;  %v2461_v2 = vadd.f32 %v2456_v62, %v6916_v18  ;;  %v5721_v11 = vpop.f32.mrb[47].mxu0 }
0x14bb   : > { %v2463_v3 = vadd.f32 %v2461_v2, %v6606_v22  ;;  %v2468_v4 = vadd.f32 %v5096_v0, %v2462_v1 }
0x14bd   : > { %v2470_v6 = vsel %vm441_vm0, %v2468_v4, 0.0  ;;  %v2469_v8 = vadd.f32 %v5096_v0, %v2463_v3 }
0x14be   : > { %2471 = vadd.xlane.f32.xlu1 %v2470_v6  ;;  %v5111_v6 = vld [vmem:[%s7514_s3 + $0xc] ss:$0 sm:$0xff] }
0x14bf   : > { %v2473_v10 = vsel %vm441_vm0, %v2469_v8, 0.0 }
0x14c2   : > { %2474 = vadd.xlane.f32.xlu1 %v2473_v10 }
0x154b   : > { %v2472_v25 = vpop.xlane.xlu1 %2471 }
0x154c   : > { %v2476_v5 = vmul.f32 0.03125, %v2472_v25 }
0x154e   : > { %v2478_v12 = vsub.f32 %v2468_v4, %v2476_v5 }
0x154f   : > { %v2475_v14 = vpop.xlane.xlu1 %2474 }
0x1550   : > { %v2477_v16 = vmul.f32 0.03125, %v2475_v14  ;;  %v2480_v19 = vmul.f32 %v2478_v12, %v2478_v12 }
0x1552   : > { %v2479_v21 = vsub.f32 %v2469_v8, %v2477_v16  ;;  %v2482_v18 = vsel %vm441_vm0, %v2480_v19, 0.0 }
0x1553   : > { %2483 = vadd.xlane.f32.xlu1 %v2482_v18 }
0x1554   : > { %v2481_v20 = vmul.f32 %v2479_v21, %v2479_v21 }
0x1556   : > { %v2485_v22 = vsel %vm441_vm0, %v2481_v20, 0.0 }
0x1557   : > { %2486 = vadd.xlane.f32.xlu1 %v2485_v22 }
0x15e0   : > { %v2484_v26 = vpop.xlane.xlu1 %2483 }
0x15e1   : > { %v2488_v27 = vmul.f32 0.03125, %v2484_v26 }
0x15e3   : > { %v2490_v28 = vadd.f32 1e-12, %v2488_v27 }
0x15e4   : > { %v2487_v30 = vpop.xlane.xlu1 %2486 }
0x15e5   : > { %6214 = vrsqrt.f32 %v2490_v28  ;;  %v2489_v31 = vmul.f32 0.03125, %v2487_v30 }
0x15e7   : > { %v2491_v32 = vadd.f32 1e-12, %v2489_v31 }
0x15e9   : > { %6216 = vrsqrt.f32 %v2491_v32 }
0x15ef   : > { %v6215_v60 = vpop.eup %6214 }
0x15f0   : > { %v2494_v33 = vmul.f32 %v6215_v60, %v2478_v12  ;;  %v6138_v60 = vld [vmem:[%s7515_s4 + $0x100] sm:$0xff]  }
0x15f1   : > { %5743 = vmatpush3.bf16.msra.mxu0 %v6138_v60 }
0x15f2   : > { %v2500_v63 = vmul.f32 %v5097_v34, %v2494_v33  ;;  %v6139_v33 = vld [vmem:[%s7515_s4 + $0x180] sm:$0xff]   ;;  %5744 = vmatprep.subr.bf16.mxu0 %v6351_v24 }
0x15f3   : > { %v6217_v37 = vpop.eup %6216 }
0x15f4   : > { %v2495_v38 = vmul.f32 %v6217_v37, %v2479_v21  ;;  %v2506_v17 = vadd.f32 %v5098_v39, %v2500_v63  ;;  %v6141_v37 = vld [vmem:[%s7515_s4 + $0x188] sm:$0xff]  }
0x15f5   : > { %v7017_v63 = vld [vmem:[%s7514_s3 + $0xf] ss:$0 sm:$0xff] }
0x15f6   : > { %v2501_v15 = vmul.f32 %v5097_v34, %v2495_v38  ;;  %v6140_v34 = vld [vmem:[%s7515_s4 + $0x108] sm:$0xff]  }
0x15f7   : > { %5745 = vmatpush3.bf16.msra.mxu0 %v6140_v34 }
0x15f8   : > { %v2507_v7 = vadd.f32 %v5098_v39, %v2501_v15  ;;  %5750 = vmatprep.subr.bf16.mxu0 %v6351_v24 }
0x15fa   : > { %v2508_v9 = vpack.c.bf16 %v2507_v7, %v2506_v17 }
0x15fc   : > { %5727 = vmatmul.mubr.msk.bf16.vlgmr.msra.gmra.mrb[48].mxu1 %vm441_vm0, %v2508_v9 }
0x15fd   : > { %5738 = vmatprep.mubr.msk.bf16.mxu1 %vm6352_vm13, %v6351_v24  ;;  %5731 = vmatpush3.bf16.msra.mxu1 %v6134_v40 }
0x15fe   : > { %5732 = vmatprep.subr.bf16.mxu1 %v6351_v24 }
0x1601   : > { %5733 = vmatpush3.bf16.msra.mxu1 %v6135_v29 }
0x1602   : > { %5734 = vmatprep.subr.bf16.mxu1 %v6351_v24 }
0x1605   : > { %5735 = vmatpush3.bf16.msra.mxu1 %v6136_v41  ;;  %v5117_v41 = vld [vmem:[%s7514_s3 + $0xd] ss:$0 sm:$0xff] }
0x1606   : > { %5736 = vmatprep.subr.bf16.mxu1 %v6351_v24 }
0x1609   : > { %5737 = vmatpush3.bf16.msra.mxu1 %v6137_v35 }
0x160a   : > { %5758 = vmatprep.subr.bf16.mxu1 %v6351_v24 }
0x16cf   : > { %v2566_v45 = vpop.f32.mrb[48].mxu1 }
0x16d0   : > { %v2567_v44 = vadd.f32 %v5099_v42, %v2566_v45  ;;  %v5728_v46 = vpop.f32.mrb[49].mxu1 }
0x16d1   : > { %v2569_v47 = vpop.f32.mrb[50].mxu1 }
0x16d2   : > { %v2573_v48 = vmul.f32 %v2567_v44, %v2567_v44  ;;  %v2570_v50 = vadd.f32 %v5099_v42, %v2569_v47  ;;  %v5729_v53 = vpop.f32.mrb[51].mxu1 }
0x16d3   : > { %v6143_v53 = vld [vmem:[%s7515_s4 + $0x110] sm:$0xff]  }
0x16d4   : > { %v2575_v54 = vmul.f32 %v2573_v48, %v2567_v44  ;;  %v2574_v55 = vmul.f32 %v2570_v50, %v2570_v50 }
0x16d6   : > { %v2577_v56 = vmul.f32 0.044715, %v2575_v54  ;;  %v2576_v36 = vmul.f32 %v2574_v55, %v2570_v50  ;;  %v6144_v55 = vld [vmem:[%s7515_s4 + $0x148] sm:$0xff]  }
0x16d8   : > { %v2579_v57 = vadd.f32 %v2577_v56, %v2567_v44  ;;  %v2578_v49 = vmul.f32 0.044715, %v2576_v36  ;;  %v6145_v56 = vld [vmem:[%s7515_s4 + $0x118] sm:$0xff]   ;;  %v6146_v36 = vld [vmem:[%s7515_s4 + $0x190] sm:$0xff]  }
0x16da   : > { %v2581_v51 = vmul.f32 0.7978846, %v2579_v57  ;;  %v2580_v52 = vadd.f32 %v2578_v49, %v2570_v50  ;;  %v6147_v57 = vld [vmem:[%s7515_s4 + $0x198] sm:$0xff]  }
0x16dc   : > { %6218 = vtanh.f32 %v2581_v51  ;;  %v2582_v58 = vmul.f32 0.7978846, %v2580_v52  ;;  %v7079_v51 = vld [vmem:[%s7514_s3 + $0x11] ss:$0 sm:$0xff] }
0x16de   : > { %6220 = vtanh.f32 %v2582_v58 }
0x16e6   : > { %v6219_v59 = vpop.eup %6218 }
0x16e7   : > { %v2585_v61 = vadd.f32 1.0, %v6219_v59 }
0x16e8   : > { %v6221_v62 = vpop.eup %6220 }
0x16e9   : > { %v2587_v0 = vmul.f32 0.5, %v2585_v61  ;;  %v2586_v1 = vadd.f32 1.0, %v6221_v62 }
0x16eb   : > { %v2588_v2 = vmul.f32 0.5, %v2586_v1  ;;  %v2589_v11 = vmul.f32 %v2587_v0, %v2567_v44  ;;  %v5118_v44 = vld [vmem:[%s7514_s3 + $0xe] ss:$0 sm:$0xff] }
0x16ed   : > { %v2590_v3 = vmul.f32 %v2588_v2, %v2570_v50  ;;  %v6142_v50 = vld [vmem:[%s7515_s4 + $0x140] sm:$0xff]  }
0x16ef   : > { %v2591_v4 = vpack.c.bf16 %v2590_v3, %v2589_v11 }
0x16f1   : > { %5739 = vmatmul.mubr.msk.bf16.vlgmr.msra.gmra.mrb[52].mxu1 %vm2629_vm5, %v2591_v4 }
0x16f2   : > { %5762 = vmatprep.mubr.msk.bf16.mxu1 %vm6352_vm13, %v6351_v24  ;;  %5759 = vmatpush3.bf16.msra.mxu1 %v6139_v33 }
0x16f3   : > { %5760 = vmatprep.subr.bf16.mxu1 %v6351_v24 }
0x16f6   : > { %5761 = vmatpush3.bf16.msra.mxu1 %v6141_v37 }
0x16f7   : > { %5779 = vmatprep.subr.bf16.mxu1 %v6351_v24 }
0x17c4   : > { %v2667_v8 = vpop.f32.mrb[52].mxu1 }
0x17c5   : > { %v2668_v10 = vadd.f32 %v5111_v6, %v2667_v8  ;;  %v5740_v25 = vpop.f32.mrb[53].mxu1 }
0x17c6   : > { %v2670_v5 = vpop.f32.mrb[54].mxu1 }
0x17c7   : > { %v2671_v12 = vadd.f32 %v5111_v6, %v2670_v5  ;;  %v5741_v14 = vpop.f32.mrb[55].mxu1  ;;  %v2674_v16 = vadd.f32 %v2668_v10, %v2506_v17  ;;  %v7088_v6 = vld [vmem:[%s7514_s3 + $0x10] ss:$0 sm:$0xff] }
0x17c9   : > { %v2676_v19 = vsel %vm441_vm0, %v2674_v16, 0.0  ;;  %v2675_v21 = vadd.f32 %v2671_v12, %v2507_v7 }
0x17ca   : > { %2677 = vadd.xlane.f32.xlu1 %v2676_v19 }
0x17cb   : > { %v2679_v18 = vsel %vm441_vm0, %v2675_v21, 0.0 }
0x17cc   : > { %2680 = vadd.xlane.f32.xlu0 %v2679_v18 }
0x17e2   : > { %3095 = vrot.lane.b32.xlu0 %v7017_v63, %s6354_s18 }
0x1857   : > { %v2678_v20 = vpop.xlane.xlu1 %2677 }
0x1858   : > { %v2682_v22 = vmul.f32 0.03125, %v2678_v20 }
0x1859   : > { %v2681_v13 = vpop.xlane.xlu0 %2680 }
0x185a   : > { %v2684_v23 = vsub.f32 %v2674_v16, %v2682_v22  ;;  %v2683_v26 = vmul.f32 0.03125, %v2681_v13 }
0x185c   : > { %v2685_v27 = vsub.f32 %v2675_v21, %v2683_v26  ;;  %v2686_v28 = vmul.f32 %v2684_v23, %v2684_v23 }
0x185e   : > { %v2688_v30 = vsel %vm441_vm0, %v2686_v28, 0.0  ;;  %v2687_v31 = vmul.f32 %v2685_v27, %v2685_v27 }
0x185f   : > { %2689 = vadd.xlane.f32.xlu1 %v2688_v30 }
0x1860   : > { %v2691_v32 = vsel %vm441_vm0, %v2687_v31, 0.0 }
0x1863   : > { %2692 = vadd.xlane.f32.xlu1 %v2691_v32 }
0x18ec   : > { %v2690_v38 = vpop.xlane.xlu1 %2689 }
0x18ed   : > { %v2694_v39 = vmul.f32 0.03125, %v2690_v38 }
0x18ef   : > { %v2696_v15 = vadd.f32 1e-12, %v2694_v39 }
0x18f0   : > { %v2693_v17 = vpop.xlane.xlu1 %2692 }
0x18f1   : > { %6222 = vrsqrt.f32 %v2696_v15  ;;  %v2695_v7 = vmul.f32 0.03125, %v2693_v17 }
0x18f3   : > { %v2697_v9 = vadd.f32 1e-12, %v2695_v7 }
0x18f5   : > { %6224 = vrsqrt.f32 %v2697_v9 }
0x18fb   : > { %v6223_v40 = vpop.eup %6222 }
0x18fc   : > { %v2700_v29 = vmul.f32 %v6223_v40, %v2684_v23 }
0x18fe   : > { %v2706_v42 = vmul.f32 %v5117_v41, %v2700_v29 }
0x18ff   : > { %v6225_v35 = vpop.eup %6224 }
0x1900   : > { %v2701_v45 = vmul.f32 %v6225_v35, %v2685_v27  ;;  %v7027_v47 = vadd.f32 %v5118_v44, %v2706_v42 }
0x1902   : > { %v2707_v46 = vmul.f32 %v5117_v41, %v2701_v45 }
0x1904   : > { %v7029_v48 = vadd.f32 %v5118_v44, %v2707_v46 }
0x1906   : > { %v7039_v54 = vpack.c.bf16 %v7029_v48, %v7027_v47 }
0x1908   : > { %5747 = vmatmul.mubr.msk.bf16.vlgmr.msra.gmra.mrb[48].mxu0 %vm441_vm0, %v7039_v54  ;;  %5763 = vmatmul.mubr.msk.bf16.vlgmr.msra.gmra.mrb[56].mxu1 %vm441_vm0, %v7039_v54 }
0x1909   : > { %5751 = vmatpush3.bf16.msra.mxu0 %v6142_v50  ;;  %5780 = vmatpush3.bf16.msra.mxu1 %v6143_v53  ;;  %v6148_v50 = vld [vmem:[%s7515_s4 + $0x150] sm:$0xff]  }
0x190a   : > { %5752 = vmatprep.subr.bf16.mxu0 %v6351_v24  ;;  %5781 = vmatprep.subr.bf16.mxu1 %v6351_v24 }
0x190b   : > { %5754 = vmatprep.mubr.msk.bf16.mxu0 %vm6352_vm13, %v6351_v24  ;;  %5783 = vmatprep.mubr.msk.bf16.mxu1 %vm6352_vm13, %v6351_v24 }
0x190d   : > { %5753 = vmatpush3.bf16.msra.mxu0 %v6144_v55  ;;  %5782 = vmatpush3.bf16.msra.mxu1 %v6145_v56  ;;  %v6149_v55 = vld [vmem:[%s7515_s4 + $0x158] sm:$0xff]   ;;  %v3096_v56 = vpop.permute.xlu0 %3095 }
0x190e   : > { %5795 = vmatprep.subr.bf16.mxu1 %v6351_v24 }
0x1910   : > { %5755 = vmatmul.mubr.msk.bf16.vlgmr.msra.gmra.mrb[52].mxu0 %vm441_vm0, %v7039_v54  ;;  %5784 = vmatmul.mubr.msk.bf16.vlgmr.msra.gmra.mrb[60].mxu1 %vm441_vm0, %v7039_v54 }
0x1911   : > { %5796 = vmatpush3.bf16.msra.mxu1 %v6146_v36  ;;  %5799 = vmatprep.mubr.msk.bf16.mxu1 %vm6352_vm13, %v6351_v24 }
0x1912   : > { %5797 = vmatprep.subr.bf16.mxu1 %v6351_v24 }
0x1915   : > { %5798 = vmatpush3.bf16.msra.mxu1 %v6147_v57 }
0x1916   : > { %5810 = vmatprep.subr.bf16.mxu1 %v6351_v24 }
0x1918   : > { %5800 = vmatmul.mubr.msk.bf16.vlgmr.msra.gmra.mrb[64].mxu1 %vm441_vm0, %v7039_v54 }
0x1919   : > { %5812 = vmatprep.mubr.msk.bf16.mxu1 %vm6352_vm13, %v6351_v24 }
0x19db   : > { %v2783_v49 = vpop.f32.mrb[48].mxu0  ;;  %v2907_v52 = vpop.f32.mrb[56].mxu1 }
0x19dc   : > { %v2784_v58 = vadd.f32 %v7017_v63, %v2783_v49  ;;  %v5748_v59 = vpop.f32.mrb[49].mxu0  ;;  %v5764_v61 = vpop.f32.mrb[57].mxu1  ;;  %v2908_v1 = vadd.f32 %v7079_v51, %v2907_v52 }
0x19dd   : > { %v2786_v62 = vpop.f32.mrb[50].mxu0  ;;  %v2910_v0 = vpop.f32.mrb[58].mxu1 }
0x19de   : > { %v2911_v2 = vadd.f32 %v7079_v51, %v2910_v0  ;;  %v5749_v11 = vpop.f32.mrb[51].mxu0  ;;  %v5765_v3 = vpop.f32.mrb[59].mxu1  ;;  %5770 = vmatprep.mubr.msk.f32.mxu0 %vm1012_vm2, %v2784_v58  ;;  %v2787_v27 = vadd.f32 %v7017_v63, %v2786_v62 }
0x19e0   : > { %v3026_v4 = vpack.c.bf16 %v2911_v2, %v2908_v1 }
0x19e3   : > { %v2845_v8 = vpop.f32.mrb[52].mxu0  ;;  %v3132_v10 = vpop.f32.mrb[60].mxu1 }
0x19e4   : > { %v5756_v25 = vpop.f32.mrb[53].mxu0  ;;  %v5785_v5 = vpop.f32.mrb[61].mxu1  ;;  %v2846_v16 = vadd.f32 %v7088_v6, %v2845_v8  ;;  %v3133_v36 = vadd.f32 %v3132_v10, %v3096_v56 }
0x19e5   : > { %v2848_v12 = vpop.f32.mrb[54].mxu0  ;;  %v7090_v14 = vpop.f32.mrb[62].mxu1 }
0x19e6   : > { %v2849_v19 = vadd.f32 %v7088_v6, %v2848_v12  ;;  %v5757_v21 = vpop.f32.mrb[55].mxu0  ;;  %v5786_v18 = vpop.f32.mrb[63].mxu1  ;;  %v3136_v8 = vadd.f32 %v7090_v14, %v3096_v56  ;;  %v6156_v56 = vld [vmem:[%s7515_s4 + $0x120] sm:$0xff]  }
0x19e8   : > { %v6018_v20 = vpack.c.bf16 %v2849_v19, %v2846_v16 }
0x19ea   : > { %6020 = vmatprep.subr.msk.bf16.mxu0 %vm6653_vm3, %v6018_v20 }
0x19eb   : > { %6023 = vmatpush3.bf16.xpose.msk.msra.mxu0 %vm6653_vm3, %v6018_v20  ;;  %v7098_v22 = vpop.f32.mrb[64].mxu1 }
0x19ec   : > { %v5801_v13 = vpop.f32.mrb[65].mxu1  ;;  %5773 = vmatprep.subr.bf16.mxu0 %v6351_v24 }
0x19ed   : > { %v7101_v23 = vpop.f32.mrb[66].mxu1 }
0x19ee   : > { %v5802_v26 = vpop.f32.mrb[67].mxu1 }
0x19f2   : > { %5771 = vmatmul.mubr.msk.f32.vlgmr.msra.gmra.mrb[56].mxu0 %vm1012_vm2, %v2787_v27 }
0x19f3   : > { %5774 = vmatpush3.bf16.msra.mxu0 %v3026_v4  ;;  %5775 = vmatprep.mubr.msk.bf16.mxu0 %vm6352_vm13, %v6351_v24 }
0x19f4   : > { %5787 = vmatprep.subr.bf16.mxu0 %v6351_v24 }
0x1ac5   : > { %v5772_v28 = vpop.f32.mrb[56].mxu0 }
0x1ac6   : > { %v2992_v30 = vpop.f32.mrb[57].mxu0  ;;  %v3002_v32 = vmul.f32 0.35355338, %v5772_v28 }
0x1ac7   : > { %v3001_v31 = vmul.f32 0.35355338, %v2992_v30 }
0x1ac8   : > { %v3006_v33 = vsel %vm1102_vm4, %v3002_v32, -inf }
0x1ac9   : > { %v3003_v60 = vsel %vm1102_vm4, %v3001_v31, -inf }
0x1aca   : > { %3004 = vmax.xlane.f32.xlu1 %v3003_v60 }
0x1ace   : > { %3007 = vmax.xlane.f32.xlu1 %v3006_v33 }
0x1b57   : > { %v3005_v34 = vpop.xlane.xlu1 %3004 }
0x1b58   : > { %v3009_v37 = vsub.f32 %v3001_v31, %v3005_v34 }
0x1b5a   : > { %v3011_v38 = vmul.f32 1.442695, %v3009_v37  ;;  %v6155_v37 = vld [vmem:[%s7515_s4 + $0x1d8] sm:$0xff]  }
0x1b5b   : > { %v3008_v39 = vpop.xlane.xlu1 %3007 }
0x1b5c   : > { %6226 = vpow2.f32 %v3011_v38  ;;  %v3010_v15 = vsub.f32 %v3002_v32, %v3008_v39  ;;  %v3443_v38 = vsel %vm1012_vm2, %v6155_v37, 0 }
0x1b5e   : > { %v3013_v17 = vmul.f32 1.442695, %v3010_v15 }
0x1b60   : > { %6228 = vpow2.f32 %v3013_v17 }
0x1b66   : > { %v6227_v7 = vpop.eup %6226 }
0x1b67   : > { %v3015_v9 = vsel %vm1102_vm4, %v6227_v7, 0.0 }
0x1b68   : > { %3016 = vadd.xlane.f32.xlu1 %v3015_v9 }
0x1b6a   : > { %v6229_v40 = vpop.eup %6228 }
0x1b6b   : > { %v3018_v29 = vsel %vm1102_vm4, %v6229_v40, 0.0 }
0x1b6c   : > { %3019 = vadd.xlane.f32.xlu1 %v3018_v29 }
0x1b7d   : > { %3157 = vrot.lane.b32.xlu1 %v7088_v6, %s6354_s18 }
0x1bf5   : > { %v3017_v41 = vpop.xlane.xlu1 %3016 }
0x1bf6   : > { %6230 = vrcp.f32 %v3017_v41 }
0x1bf9   : > { %v3020_v35 = vpop.xlane.xlu1 %3019 }
0x1bfa   : > { %6232 = vrcp.f32 %v3020_v35 }
0x1bfd   : > { %v3158_v61 = vpop.permute.xlu1 %3157 }
0x1c00   : > { %v6231_v42 = vpop.eup %6230 }
0x1c01   : > { %v3023_v44 = vmul.f32 %v6231_v42, %v6227_v7  ;;  %v6150_v7 = vld [vmem:[%s7515_s4 + $0x1c0] sm:$0xff]   ;;  %v6151_v42 = vld [vmem:[%s7515_s4 + $0x1c8] sm:$0xff]  }
0x1c02   : > { %v3500_v35 = vsel %vm1012_vm2, %v6150_v7, 0 }
0x1c04   : > { %v6233_v45 = vpop.eup %6232 }
0x1c05   : > { %v3024_v46 = vmul.f32 %v6233_v45, %v6229_v40  ;;  %v3503_v45 = vsel %vm1012_vm2, %v6151_v42, 0 }
0x1c07   : > { %v3025_v53 = vpack.c.bf16 %v3024_v46, %v3023_v44  ;;  %v6152_v44 = vld [vmem:[%s7515_s4 + $0x160] sm:$0xff]   ;;  %v6153_v46 = vld [vmem:[%s7515_s4 + $0x168] sm:$0xff]  }
0x1c09   : > { %5776 = vmatmul.mubr.msk.bf16.vlgmr.msra.gmra.mrb[60].mxu0 %vm1102_vm4, %v3025_v53 }
0x1c0a   : > { %5788 = vmatpush3.bf16.msra.mxu0 %v6148_v50  ;;  %5791 = vmatprep.mubr.msk.bf16.mxu0 %vm6352_vm13, %v6351_v24 }
0x1c0b   : > { %5789 = vmatprep.subr.bf16.mxu0 %v6351_v24 }
0x1c0e   : > { %5790 = vmatpush3.bf16.msra.mxu0 %v6149_v55 }
0x1c11   : > { %5792 = vmatmul.mubr.msk.bf16.vlgmr.msra.gmra.mrb[64].mxu0 %vm441_vm0, %v7039_v54 }
0x1c12   : > { %5807 = vmatprep.mubr.msk.f32.mxu0 %vm1012_vm2, %v3133_v36 }
0x1cdc   : > { %v7127_v57 = vpop.f32.mrb[60].mxu0 }
0x1cdd   : > { %v5777_v49 = vpop.f32.mrb[61].mxu0 }
0x1cde   : > { %v7129_v52 = vpop.f32.mrb[62].mxu0  ;;  %v6157_v49 = vld [vmem:[%s7515_s4 + $0x128] sm:$0xff]  }
0x1cdf   : > { %v3071_v58 = vpack.c.bf16 %v7129_v52, %v7127_v57  ;;  %v5778_v59 = vpop.f32.mrb[63].mxu0  ;;  %v6158_v52 = vld [vmem:[%s7515_s4 + $0x1a0] sm:$0xff]  }
0x1ce4   : > { %v3194_v62 = vpop.f32.mrb[64].mxu0 }
0x1ce5   : > { %v5793_v0 = vpop.f32.mrb[65].mxu0  ;;  %v3195_v2 = vadd.f32 %v3194_v62, %v3158_v61 }
0x1ce6   : > { %v3197_v1 = vpop.f32.mrb[66].mxu0 }
0x1ce7   : > { %v3198_v11 = vadd.f32 %v3197_v1, %v3158_v61  ;;  %v5794_v3 = vpop.f32.mrb[67].mxu0 }
0x1ce9   : > { %v6024_v4 = vpack.c.bf16 %v3198_v11, %v3195_v2 }
0x1ceb   : > { %6026 = vmatprep.subr.msk.bf16.mxu0 %vm6653_vm3, %v6024_v4 }
0x1cec   : > { %6029 = vmatpush3.bf16.xpose.msk.msra.mxu0 %vm6653_vm3, %v6024_v4 }
0x1ced   : > { %5816 = vmatprep.subr.bf16.mxu0 %v6351_v24 }
0x1cf3   : > { %5808 = vmatmul.mubr.msk.f32.vlgmr.msra.gmra.mrb[58].mxu0 %vm1012_vm2, %v3136_v8 }
0x1cf4   : > { %5820 = vmatprep.mubr.msk.bf16.mxu0 %vm6352_vm13, %v6351_v24 }
0x1dc6   : > { %v5809_v10 = vpop.f32.mrb[58].mxu0 }
0x1dc7   : > { %v3351_v25 = vmul.f32 0.35355338, %v5809_v10  ;;  %v3341_v5 = vpop.f32.mrb[59].mxu0 }
0x1dc8   : > { %v3350_v12 = vmul.f32 0.35355338, %v3341_v5 }
0x1dc9   : > { %v3355_v16 = vsel %vm1102_vm4, %v3351_v25, -inf }
0x1dca   : > { %3356 = vmax.xlane.f32.xlu0 %v3355_v16  ;;  %v3352_v19 = vsel %vm1102_vm4, %v3350_v12, -inf }
0x1dcb   : > { %3353 = vmax.xlane.f32.xlu1 %v3352_v19 }
0x1de0   : > { %3219 = vrot.lane.b32.xlu0 %v7079_v51, %s6354_s18  ;;  %s5300_s18 = sshll.u32 %s6426_s9, 8 }
0x1de1   : > { %s7468_s23 = scalar_lea.hbm %s7518_s7, %s5300_s18 }
0x1e57   : > { %v3357_v21 = vpop.xlane.xlu0 %3356 }
0x1e58   : > { %v3359_v14 = vsub.f32 %v3351_v25, %v3357_v21  ;;  %v3354_v18 = vpop.xlane.xlu1 %3353 }
0x1e59   : > { %v3358_v20 = vsub.f32 %v3350_v12, %v3354_v18 }
0x1e5a   : > { %v3362_v13 = vmul.f32 1.442695, %v3359_v14 }
0x1e5b   : > { %v3360_v26 = vmul.f32 1.442695, %v3358_v20  ;;  %v3220_v27 = vpop.permute.xlu0 %3219 }
0x1e5c   : > { %v3257_v28 = vadd.f32 %v7098_v22, %v3220_v27  ;;  %v3260_v30 = vadd.f32 %v7101_v23, %v3220_v27  ;;  %v6154_v22 = vld [vmem:[%s7515_s4 + $0x1d0] sm:$0xff]  }
0x1e5d   : > { %6234 = vpow2.f32 %v3360_v26  ;;  %v3440_v23 = vsel %vm1012_vm2, %v6154_v22, 0 }
0x1e5e   : > { %v3375_v31 = vpack.c.bf16 %v3260_v30, %v3257_v28  ;;  %6236 = vpow2.f32 %v3362_v13  ;;  %5817 = vmatpush3.bf16.xpose.msra.mxu0 %v3440_v23 }
0x1e5f   : > { %5818 = vmatprep.subr.bf16.mxu0 %v6351_v24 }
0x1e60   : > { %5811 = vmatpush3.bf16.msra.mxu1 %v3375_v31 }
0x1e61   : > { %5824 = vmatprep.subr.bf16.mxu1 %v6351_v24 }
0x1e66   : > { %5819 = vmatpush3.bf16.xpose.msra.mxu0 %v3443_v38 }
0x1e67   : > { %v6235_v32 = vpop.eup %6234  ;;  %5832 = vmatprep.subr.bf16.mxu0 %v6351_v24 }
0x1e68   : > { %v3364_v60 = vsel %vm1102_vm4, %v6235_v32, 0.0  ;;  %v6237_v33 = vpop.eup %6236 }
0x1e69   : > { %3365 = vadd.xlane.f32.xlu1 %v3364_v60  ;;  %v3367_v34 = vsel %vm1102_vm4, %v6237_v33, 0.0 }
0x1e6d   : > { %3368 = vadd.xlane.f32.xlu1 %v3367_v34 }
0x1e7e   : > { %3624 = vrot.lane.b32.xlu1 %v7088_v6, %s6355_s24 }
0x1e82   : > { %3563 = vrot.lane.b32.xlu1 %v7017_v63, %s6355_s24 }
0x1ef6   : > { %v3366_v39 = vpop.xlane.xlu1 %3365 }
0x1ef7   : > { %6238 = vrcp.f32 %v3366_v39 }
0x1efa   : > { %v3369_v15 = vpop.xlane.xlu1 %3368 }
0x1efb   : > { %6240 = vrcp.f32 %v3369_v15 }
0x1efe   : > { %v3625_v1 = vpop.permute.xlu1 %3624 }
0x1f01   : > { %v6239_v17 = vpop.eup %6238 }
0x1f02   : > { %v3372_v40 = vmul.f32 %v6239_v17, %v6235_v32  ;;  %v3564_v18 = vpop.permute.xlu1 %3563 }
0x1f05   : > { %v6241_v9 = vpop.eup %6240 }
0x1f06   : > { %v3373_v29 = vmul.f32 %v6241_v9, %v6237_v33 }
0x1f08   : > { %v3374_v41 = vpack.c.bf16 %v3373_v29, %v3372_v40 }
0x1f0a   : > { %5813 = vmatmul.mubr.msk.bf16.vlgmr.msra.gmra.mrb[68].mxu1 %vm1102_vm4, %v3374_v41 }
0x1f0b   : > { %5825 = vmatpush3.bf16.xpose.msra.mxu1 %v3500_v35  ;;  %5828 = vmatprep.mubr.msk.bf16.mxu1 %vm6352_vm13, %v6351_v24 }
0x1f0c   : > { %5826 = vmatprep.subr.bf16.mxu1 %v6351_v24 }
0x1f13   : > { %5827 = vmatpush3.bf16.xpose.msra.mxu1 %v3503_v45 }
0x1f14   : > { %5840 = vmatprep.subr.bf16.mxu1 %v6351_v24 }
0x1f1a   : > { %5829 = vmatmul.mubr.msk.bf16.vlgmr.msra.gmra.mrb[72].mxu1 %vm1012_vm2, %v3071_v58  ;;  %v6159_v58 = vld [vmem:[%s7515_s4 + $0x1a8] sm:$0xff]  }
0x1f1b   : > { %5841 = vmatpush3.bf16.msra.mxu1 %v6152_v44  ;;  %5844 = vmatprep.mubr.msk.bf16.mxu1 %vm6352_vm13, %v6351_v24 }
0x1f1c   : > { %5842 = vmatprep.subr.bf16.mxu1 %v6351_v24 }
0x1f1f   : > { %5843 = vmatpush3.bf16.msra.mxu1 %v6153_v46 }
0x1f22   : > { %5845 = vmatmul.mubr.msk.bf16.vlgmr.msra.gmra.mrb[76].mxu1 %vm441_vm0, %v7039_v54 }
0x1fdd   : > { %v3413_v50 = vpop.f32.mrb[68].mxu1 }
0x1fde   : > { %v5814_v53 = vpop.f32.mrb[69].mxu1 }
0x1fdf   : > { %v3416_v55 = vpop.f32.mrb[70].mxu1  ;;  %v6164_v53 = vld [vmem:[%s7515_s4 + $0x1e0] sm:$0xff]  }
0x1fe0   : > { %v3420_v36 = vpack.c.bf16 %v3416_v55, %v3413_v50  ;;  %v5815_v57 = vpop.f32.mrb[71].mxu1  ;;  %v3906_v55 = vsel %vm1012_vm2, %v6164_v53, 0 }
0x1fe2   : > { %5821 = vmatmul.mubr.msk.bf16.vlgmr.msra.gmra.mrb[68].mxu0 %vm1012_vm2, %v3420_v36 }
0x1fe3   : > { %5833 = vmatpush3.bf16.msra.mxu0 %v6156_v56  ;;  %5836 = vmatprep.mubr.msk.bf16.mxu0 %vm6352_vm13, %v6351_v24  ;;  %v6165_v56 = vld [vmem:[%s7515_s4 + $0x1e8] sm:$0xff]  }
0x1fe4   : > { %5834 = vmatprep.subr.bf16.mxu0 %v6351_v24  ;;  %v3909_v36 = vsel %vm1012_vm2, %v6165_v56, 0 }
0x1fe7   : > { %5835 = vmatpush3.bf16.msra.mxu0 %v6157_v49 }
0x1fe8   : > { %5848 = vmatprep.subr.bf16.mxu0 %v6351_v24 }
0x1fea   : > { %5837 = vmatmul.mubr.msk.bf16.vlgmr.msra.gmra.mrb[72].mxu0 %vm441_vm0, %v7039_v54 }
0x1feb   : > { %5849 = vmatpush3.bf16.msra.mxu0 %v6158_v52  ;;  %5852 = vmatprep.mubr.msk.bf16.mxu0 %vm6352_vm13, %v6351_v24 }
0x1fec   : > { %5850 = vmatprep.subr.bf16.mxu0 %v6351_v24 }
0x1fed   : > { %v3539_v59 = vpop.f32.mrb[72].mxu1 }
0x1fee   : > { %v5830_v61 = vpop.f32.mrb[73].mxu1 }
0x1fef   : > { %v3542_v62 = vpop.f32.mrb[74].mxu1  ;;  %5851 = vmatpush3.bf16.msra.mxu0 %v6159_v58  ;;  %v6160_v61 = vld [vmem:[%s7515_s4 + $0x130] sm:$0xff]  }
0x1ff0   : > { %v5831_v0 = vpop.f32.mrb[75].mxu1  ;;  %5869 = vmatprep.subr.bf16.mxu0 %v6351_v24 }
0x1ff1   : > { %v6161_v0 = vld [vmem:[%s7515_s4 + $0x138] sm:$0xff]  }
0x1ff2   : > { %5853 = vmatmul.mubr.msk.bf16.vlgmr.msra.gmra.mrb[76].mxu0 %vm441_vm0, %v7039_v54 }
0x1ff3   : > { %5873 = vmatprep.mubr.msk.bf16.mxu0 %vm6352_vm13, %v6351_v24 }
0x1ff5   : > { %v3661_v2 = vpop.f32.mrb[76].mxu1 }
0x1ff6   : > { %v5846_v11 = vpop.f32.mrb[77].mxu1  ;;  %v3662_v4 = vadd.f32 %v3661_v2, %v3625_v1  ;;  %v6163_v2 = vld [vmem:[%s7515_s4 + $0x178] sm:$0xff]  }
0x1ff7   : > { %v3664_v3 = vpop.f32.mrb[78].mxu1 }
0x1ff8   : > { %v3665_v8 = vadd.f32 %v3664_v3, %v3625_v1  ;;  %v5847_v10 = vpop.f32.mrb[79].mxu1  ;;  %5870 = vmatpush3.bf16.xpose.msra.mxu0 %v3906_v55  ;;  %v6162_v1 = vld [vmem:[%s7515_s4 + $0x170] sm:$0xff]  }
0x1ff9   : > { %5871 = vmatprep.subr.bf16.mxu0 %v6351_v24 }
0x1ffa   : > { %v6030_v25 = vpack.c.bf16 %v3665_v8, %v3662_v4  ;;  %v6166_v8 = vld [vmem:[%s7515_s4 + $0x1b0] sm:$0xff]  }
0x1ffc   : > { %6032 = vmatprep.subr.msk.bf16.mxu1 %vm6653_vm3, %v6030_v25 }
0x1ffd   : > { %6035 = vmatpush3.bf16.xpose.msk.msra.mxu1 %vm6653_vm3, %v6030_v25 }
0x1ffe   : > { %5863 = vmatprep.subr.bf16.mxu1 %v6351_v24 }
0x2000   : > { %5872 = vmatpush3.bf16.xpose.msra.mxu0 %v3909_v36  ;;  %v6168_v36 = vld [vmem:[%s7515_s4 + $0x1f0] sm:$0xff]  }
0x2001   : > { %5893 = vmatprep.subr.bf16.mxu0 %v6351_v24 }
0x20b5   : > { %v3479_v5 = vpop.f32.mrb[68].mxu0 }
0x20b6   : > { %v7225_v12 = vadd.f32 %v3539_v59, %v3479_v5  ;;  %v5822_v16 = vpop.f32.mrb[69].mxu0 }
0x20b7   : > { %v3482_v19 = vpop.f32.mrb[70].mxu0  ;;  %v6167_v16 = vld [vmem:[%s7515_s4 + $0x1b8] sm:$0xff]  }
0x20b8   : > { %v7227_v21 = vadd.f32 %v3542_v62, %v3482_v19  ;;  %v5823_v14 = vpop.f32.mrb[71].mxu0 }
0x20bd   : > { %v3600_v20 = vpop.f32.mrb[72].mxu0 }
0x20be   : > { %v3601_v13 = vadd.f32 %v3600_v20, %v3564_v18  ;;  %v5838_v26 = vpop.f32.mrb[73].mxu0 }
0x20bf   : > { %v3603_v27 = vpop.f32.mrb[74].mxu0 }
0x20c0   : > { %v3604_v28 = vadd.f32 %v3603_v27, %v3564_v18  ;;  %v5839_v30 = vpop.f32.mrb[75].mxu0  ;;  %5860 = vmatprep.mubr.msk.f32.mxu1 %vm1012_vm2, %v3601_v13 }
0x20c2   : > { %5861 = vmatmul.mubr.msk.f32.vlgmr.msra.gmra.mrb[80].mxu1 %vm1012_vm2, %v3604_v28 }
0x20c3   : > { %5865 = vmatprep.mubr.msk.bf16.mxu1 %vm6352_vm13, %v6351_v24 }
0x20c5   : > { %v3722_v31 = vpop.f32.mrb[76].mxu0 }
0x20c6   : > { %v5854_v32 = vpop.f32.mrb[77].mxu0 }
0x20c7   : > { %v3725_v60 = vpop.f32.mrb[78].mxu0 }
0x20c8   : > { %v5855_v33 = vpop.f32.mrb[79].mxu0 }
0x2195   : > { %v5862_v34 = vpop.f32.mrb[80].mxu1 }
0x2196   : > { %v3817_v22 = vmul.f32 0.35355338, %v5862_v34  ;;  %v3807_v23 = vpop.f32.mrb[81].mxu1 }
0x2197   : > { %v3816_v37 = vmul.f32 0.35355338, %v3807_v23 }
0x2198   : > { %v3821_v38 = vsel %vm1102_vm4, %v3817_v22, -inf }
0x2199   : > { %3822 = vmax.xlane.f32.xlu1 %v3821_v38  ;;  %v3818_v39 = vsel %vm1102_vm4, %v3816_v37, -inf }
0x219a   : > { %3819 = vmax.xlane.f32.xlu0 %v3818_v39 }
0x21aa   : > { %3685 = vrot.lane.b32.xlu1 %v7079_v51, %s6355_s24 }
0x21ae   : > { %3971 = vrot.lane.b32.xlu1 %v7017_v63, %s6356_s12 }
0x2226   : > { %v3823_v15 = vpop.xlane.xlu1 %3822 }
0x2227   : > { %v3825_v17 = vsub.f32 %v3817_v22, %v3823_v15  ;;  %v3820_v7 = vpop.xlane.xlu0 %3819 }
0x2228   : > { %v3824_v9 = vsub.f32 %v3816_v37, %v3820_v7 }
0x2229   : > { %v3828_v40 = vmul.f32 1.442695, %v3825_v17 }
0x222a   : > { %v3826_v29 = vmul.f32 1.442695, %v3824_v9  ;;  %v3686_v41 = vpop.permute.xlu1 %3685 }
0x222b   : > { %v3723_v35 = vadd.f32 %v3722_v31, %v3686_v41  ;;  %v3726_v42 = vadd.f32 %v3725_v60, %v3686_v41 }
0x222c   : > { %6242 = vpow2.f32 %v3826_v29 }
0x222d   : > { %v3841_v45 = vpack.c.bf16 %v3726_v42, %v3723_v35  ;;  %6244 = vpow2.f32 %v3828_v40 }
0x222e   : > { %v3972_v5 = vpop.permute.xlu1 %3971 }
0x222f   : > { %5864 = vmatpush3.bf16.msra.mxu1 %v3841_v45 }
0x2230   : > { %5877 = vmatprep.subr.bf16.mxu1 %v6351_v24 }
0x2236   : > { %v6243_v44 = vpop.eup %6242 }
0x2237   : > { %v3830_v46 = vsel %vm1102_vm4, %v6243_v44, 0.0  ;;  %v6245_v50 = vpop.eup %6244 }
0x2238   : > { %3831 = vadd.xlane.f32.xlu0 %v3830_v46  ;;  %v3833_v63 = vsel %vm1102_vm4, %v6245_v50, 0.0 }
0x223c   : > { %3834 = vadd.xlane.f32.xlu0 %v3833_v63 }
0x2252   : > { %4032 = vrot.lane.b32.xlu0 %v7088_v6, %s6356_s12 }
0x22c5   : > { %v3832_v57 = vpop.xlane.xlu0 %3831 }
0x22c6   : > { %6246 = vrcp.f32 %v3832_v57  ;;  %v4314_v57 = vsel %vm1012_vm2, %v6168_v36, 0  ;;  %v6173_v36 = vld [vmem:[%s7516_s5 + $0x68] sm:$0xff]  }
0x22c9   : > { %v3835_v6 = vpop.xlane.xlu0 %3834 }
0x22ca   : > { %6248 = vrcp.f32 %v3835_v6  ;;  %v6169_v6 = vld [vmem:[%s7515_s4 + $0x1f8] sm:$0xff]  }
0x22cd   : > { %v4033_v27 = vpop.permute.xlu0 %4032 }
0x22d0   : > { %v6247_v49 = vpop.eup %6246 }
0x22d1   : > { %v3838_v58 = vmul.f32 %v6247_v49, %v6243_v44  ;;  %v4317_v49 = vsel %vm1012_vm2, %v6169_v6, 0  ;;  %v6175_v6 = vld [vmem:[%s7516_s5 + $0x78] sm:$0xff]  }
0x22d4   : > { %v6249_v52 = vpop.eup %6248 }
0x22d5   : > { %v3839_v59 = vmul.f32 %v6249_v52, %v6245_v50 }
0x22d7   : > { %v3840_v62 = vpack.c.bf16 %v3839_v59, %v3838_v58 }
0x22d9   : > { %5866 = vmatmul.mubr.msk.bf16.vlgmr.msra.gmra.mrb[84].mxu1 %vm1102_vm4, %v3840_v62 }
0x22da   : > { %5878 = vmatpush3.bf16.msra.mxu1 %v6160_v61  ;;  %5881 = vmatprep.mubr.msk.bf16.mxu1 %vm6352_vm13, %v6351_v24 }
0x22db   : > { %5879 = vmatprep.subr.bf16.mxu1 %v6351_v24 }
0x22de   : > { %5880 = vmatpush3.bf16.msra.mxu1 %v6161_v0 }
0x22df   : > { %5885 = vmatprep.subr.bf16.mxu1 %v6351_v24 }
0x22e1   : > { %5882 = vmatmul.mubr.msk.bf16.vlgmr.msra.gmra.mrb[88].mxu1 %vm441_vm0, %v7039_v54 }
0x22e2   : > { %5886 = vmatpush3.bf16.msra.mxu1 %v6162_v1  ;;  %5889 = vmatprep.mubr.msk.bf16.mxu1 %vm6352_vm13, %v6351_v24 }
0x22e3   : > { %5887 = vmatprep.subr.bf16.mxu1 %v6351_v24 }
0x22e6   : > { %5888 = vmatpush3.bf16.msra.mxu1 %v6163_v2 }
0x22e9   : > { %5890 = vmatmul.mubr.msk.bf16.vlgmr.msra.gmra.mrb[92].mxu1 %vm441_vm0, %v7039_v54 }
0x23ac   : > { %v3879_v11 = vpop.f32.mrb[84].mxu1 }
0x23ad   : > { %v5867_v3 = vpop.f32.mrb[85].mxu1 }
0x23ae   : > { %v3882_v4 = vpop.f32.mrb[86].mxu1 }
0x23af   : > { %v3886_v10 = vpack.c.bf16 %v3882_v4, %v3879_v11  ;;  %v5868_v25 = vpop.f32.mrb[87].mxu1 }
0x23b1   : > { %5874 = vmatmul.mubr.msk.bf16.vlgmr.msra.gmra.mrb[80].mxu0 %vm1012_vm2, %v3886_v10 }
0x23b2   : > { %5894 = vmatpush3.bf16.msra.mxu0 %v6166_v8  ;;  %5897 = vmatprep.mubr.msk.bf16.mxu0 %vm6352_vm13, %v6351_v24 }
0x23b3   : > { %5895 = vmatprep.subr.bf16.mxu0 %v6351_v24 }
0x23b4   : > { %v4008_v19 = vpop.f32.mrb[88].mxu1 }
0x23b5   : > { %v4009_v14 = vadd.f32 %v4008_v19, %v3972_v5  ;;  %v5883_v18 = vpop.f32.mrb[89].mxu1 }
0x23b6   : > { %v4011_v20 = vpop.f32.mrb[90].mxu1  ;;  %5896 = vmatpush3.bf16.msra.mxu0 %v6167_v16 }
0x23b7   : > { %v5884_v13 = vpop.f32.mrb[91].mxu1  ;;  %5905 = vmatprep.mubr.msk.f32.mxu1 %vm1012_vm2, %v4009_v14  ;;  %5908 = vmatprep.subr.bf16.mxu0 %v6351_v24 }
0x23b9   : > { %5898 = vmatmul.mubr.msk.bf16.vlgmr.msra.gmra.mrb[84].mxu0 %vm441_vm0, %v7039_v54  ;;  %v4012_v54 = vadd.f32 %v4011_v20, %v3972_v5  ;;  %v5254_v20 = vld [vmem:[%s7514_s3 + $0x12] ss:$0 sm:$0xff] }
0x23ba   : > { %5910 = vmatprep.mubr.msk.bf16.mxu0 %vm6352_vm13, %v6351_v24 }
0x23bc   : > { %v4069_v26 = vpop.f32.mrb[92].mxu1 }
0x23bd   : > { %v5891_v28 = vpop.f32.mrb[93].mxu1  ;;  %v4070_v31 = vadd.f32 %v4069_v26, %v4033_v27 }
0x23be   : > { %v4072_v30 = vpop.f32.mrb[94].mxu1 }
0x23bf   : > { %v4073_v32 = vadd.f32 %v4072_v30, %v4033_v27  ;;  %v5892_v60 = vpop.f32.mrb[95].mxu1 }
0x23c1   : > { %v6036_v33 = vpack.c.bf16 %v4073_v32, %v4070_v31 }
0x23c3   : > { %6038 = vmatprep.subr.msk.bf16.mxu1 %vm6653_vm3, %v6036_v33 }
0x23c4   : > { %6041 = vmatpush3.bf16.xpose.msk.msra.mxu1 %vm6653_vm3, %v6036_v33 }
0x23c5   : > { %5914 = vmatprep.subr.bf16.mxu1 %v6351_v24 }
0x23cb   : > { %5906 = vmatmul.mubr.msk.f32.vlgmr.msra.gmra.mrb[82].mxu1 %vm1012_vm2, %v4012_v54 }
0x23cc   : > { %5918 = vmatprep.mubr.msk.bf16.mxu1 %vm6352_vm13, %v6351_v24  ;;  %5915 = vmatpush3.bf16.xpose.msra.mxu1 %v4314_v57  ;;  %v6174_v57 = vld [vmem:[%s7516_s5 + $0x70] sm:$0xff]  }
0x23cd   : > { %5916 = vmatprep.subr.bf16.mxu1 %v6351_v24 }
0x23d4   : > { %5917 = vmatpush3.bf16.xpose.msra.mxu1 %v4317_v49  ;;  %v5261_v49 = vld [vmem:[%s7514_s3 + $0x15] ss:$0 sm:$0xff] }
0x23d5   : > { %5942 = vmatprep.subr.bf16.mxu1 %v6351_v24 }
0x2484   : > { %v3945_v34 = vpop.f32.mrb[80].mxu0 }
0x2485   : > { %v7303_v22 = vadd.f32 %v3945_v34, %v7225_v12  ;;  %v5875_v23 = vpop.f32.mrb[81].mxu0 }
0x2486   : > { %v3948_v37 = vpop.f32.mrb[82].mxu0 }
0x2487   : > { %v7306_v38 = vadd.f32 %v3948_v37, %v7227_v21  ;;  %v5876_v39 = vpop.f32.mrb[83].mxu0 }
0x248c   : > { %v4130_v43 = vpop.f32.mrb[84].mxu0 }
0x248d   : > { %v5899_v15 = vpop.f32.mrb[85].mxu0 }
0x248e   : > { %v4133_v17 = vpop.f32.mrb[86].mxu0  ;;  %v6171_v15 = vld [vmem:[%s7516_s5 + $0x48] sm:$0xff]  }
0x248f   : > { %v5900_v7 = vpop.f32.mrb[87].mxu0 }
0x249e   : > { %v5907_v9 = vpop.f32.mrb[82].mxu1 }
0x249f   : > { %v4225_v40 = vmul.f32 0.35355338, %v5907_v9  ;;  %v4215_v29 = vpop.f32.mrb[83].mxu1 }
0x24a0   : > { %v4224_v41 = vmul.f32 0.35355338, %v4215_v29 }
0x24a1   : > { %v4229_v35 = vsel %vm1102_vm4, %v4225_v40, -inf }
0x24a2   : > { %4230 = vmax.xlane.f32.xlu0 %v4229_v35  ;;  %v4226_v12 = vsel %vm1102_vm4, %v4224_v41, -inf }
0x24a3   : > { %4227 = vmax.xlane.f32.xlu1 %v4226_v12 }
0x252f   : > { %v4231_v42 = vpop.xlane.xlu0 %4230 }
0x2530   : > { %v4233_v45 = vsub.f32 %v4225_v40, %v4231_v42  ;;  %v4228_v44 = vpop.xlane.xlu1 %4227  ;;  %v5255_v42 = vld [vmem:[%s7514_s3 + $0x13] ss:$0 sm:$0xff] }
0x2531   : > { %v4232_v21 = vsub.f32 %v4224_v41, %v4228_v44 }
0x2532   : > { %v4236_v46 = vmul.f32 1.442695, %v4233_v45 }
0x2533   : > { %v4234_v50 = vmul.f32 1.442695, %v4232_v21 }
0x2534   : > { %6250 = vpow2.f32 %v4236_v46  ;;  %v5256_v46 = vld [vmem:[%s7514_s3 + $0x14] ss:$0 sm:$0xff] }
0x2535   : > { %6252 = vpow2.f32 %v4234_v50 }
0x253e   : > { %v6251_v63 = vpop.eup %6250 }
0x253f   : > { %v6253_v53 = vpop.eup %6252  ;;  %v4241_v55 = vsel %vm1102_vm4, %v6251_v63, 0.0 }
0x2540   : > { %4242 = vadd.xlane.f32.xlu1 %v4241_v55  ;;  %v4238_v56 = vsel %vm1102_vm4, %v6253_v53, 0.0 }
0x2541   : > { %4239 = vadd.xlane.f32.xlu0 %v4238_v56  ;;  %v6172_v56 = vld [vmem:[%s7516_s5 + $0x60] sm:$0xff]  }
0x2557   : > { %4093 = vrot.lane.b32.xlu0 %v7079_v51, %s6356_s12  ;;  %s312_s12 = sand.u32 1, %s6340_s28  }
0x2558   : > { %s4937_s26 = sshll.u32 %s312_s12, 4  ;;  %s7470_s25 = scalar_lea.sflag [#allocation3], %s312_s12 }
0x2559   : > { %s314_s13 = scalar_lea.vmem [#allocation2], %s4937_s26  ;;  %s6357_s26 = smov [#allocation2]  }
0x255a   : > { %s4831_s24 = sshll.u32 %s314_s13, 4  ;;  %s6290_s10 = sshll.u32 %s6357_s26, 4  ;;  %s7463_s24 = int_to_ptr.vmem [resolvable:$true] %s4831_s24  ;;  %s6291_s10 = int_to_ptr.vmem [resolvable:$false] %s6290_s10 }
0x255b   : > { %s6286_s9 = scalar_lea.vmem %s7463_s24, 256  ;;  %s6292_s21 = scalar_lea.vmem %s6291_s10, 512 }
0x255c   : > { %p6287_p11 = scmp.ne.s32.totalorder %s7463_s24, %s6286_s9  ;;  %p6293_p0 = scmp.lt.s32.totalorder %s7463_s24, %s6291_s10 }
0x255d   : > { %p6294_p1 = scmp.lt.s32.totalorder %s6292_s21, %s6286_s9 }
0x255e   : > { %p6288_p12 = pnand %p6287_p11, %p6443_p5 }
0x255f   : > { %p6295_p2 = por %p6294_p1, %p6293_p0 }
0x2560   : > { %p6289_p13 = pneg %p6288_p12 }
0x2562   : > { %p6296_p3 = pnand %p6295_p2, %p6289_p13 }
0x25cd   : > { %v4243_v52 = vpop.xlane.xlu1 %4242 }
0x25ce   : > { %6254 = vrcp.f32 %v4243_v52  ;;  %v4240_v51 = vpop.xlane.xlu0 %4239 }
0x25cf   : > { %6256 = vrcp.f32 %v4240_v51 }
0x25d2   : > { %v4094_v58 = vpop.permute.xlu0 %4093 }
0x25d3   : > { %v4131_v59 = vadd.f32 %v4130_v43, %v4094_v58  ;;  %v4134_v61 = vadd.f32 %v4133_v17, %v4094_v58  ;;  %v6170_v43 = vld [vmem:[%s7516_s5 + $0x40] sm:$0xff]  }
0x25d5   : > { %v4249_v62 = vpack.c.bf16 %v4134_v61, %v4131_v59 }
0x25d7   : > { %5909 = vmatpush3.bf16.msra.mxu0 %v4249_v62 }
0x25d8   : > { %v6255_v0 = vpop.eup %6254  ;;  %5922 = vmatprep.subr.bf16.mxu0 %v6351_v24 }
0x25d9   : > { %v6257_v1 = vpop.eup %6256  ;;  %v4247_v2 = vmul.f32 %v6255_v0, %v6251_v63 }
0x25da   : > { %v4246_v11 = vmul.f32 %v6257_v1, %v6253_v53 }
0x25dc   : > { %v4248_v3 = vpack.c.bf16 %v4247_v2, %v4246_v11 }
0x25de   : > { %5911 = vmatmul.mubr.msk.bf16.vlgmr.msra.gmra.mrb[88].mxu0 %vm1102_vm4, %v4248_v3 }
0x25df   : > { %5926 = vmatprep.mubr.msk.bf16.mxu0 %vm6352_vm13, %v6351_v24  ;;  %5923 = vmatpush3.bf16.msra.mxu0 %v6170_v43 }
0x25e0   : > { %5924 = vmatprep.subr.bf16.mxu0 %v6351_v24 }
0x25e3   : > { %5925 = vmatpush3.bf16.msra.mxu0 %v6171_v15 }
0x25e4   : > { %5930 = vmatprep.subr.bf16.mxu0 %v6351_v24 }
0x26b1   : > { %v4287_v4 = vpop.f32.mrb[88].mxu0 }
0x26b2   : > { %v5912_v8 = vpop.f32.mrb[89].mxu0 }
0x26b3   : > { %v4290_v10 = vpop.f32.mrb[90].mxu0 }
0x26b4   : > { %v4294_v25 = vpack.c.bf16 %v4290_v10, %v4287_v4  ;;  %v5913_v5 = vpop.f32.mrb[91].mxu0 }
0x26b6   : > { %5919 = vmatmul.mubr.msk.bf16.vlgmr.msra.gmra.mrb[96].mxu1 %vm1012_vm2, %v4294_v25 }
0x26b7   : > { %5946 = vmatprep.mubr.msk.bf16.mxu1 %vm6352_vm13, %v6351_v24 }
0x2789   : > { %v4353_v16 = vpop.f32.mrb[96].mxu1 }
0x278a   : > { %v4360_v19 = vadd.f32 %v4353_v16, %v7303_v22  ;;  %v5920_v14 = vpop.f32.mrb[97].mxu1 }
0x278b   : > { %v4356_v18 = vpop.f32.mrb[98].mxu1 }
0x278c   : > { %v4362_v13 = vadd.f32 %v4360_v19, %v7027_v47  ;;  %v4361_v26 = vadd.f32 %v4356_v18, %v7306_v38  ;;  %v5921_v27 = vpop.f32.mrb[99].mxu1 }
0x278e   : > { %v4363_v28 = vadd.f32 %v4361_v26, %v7029_v48  ;;  %v4368_v30 = vadd.f32 %v5254_v20, %v4362_v13 }
0x2790   : > { %v4370_v31 = vsel %vm441_vm0, %v4368_v30, 0.0  ;;  %v4369_v32 = vadd.f32 %v5254_v20, %v4363_v28 }
0x2791   : > { %4371 = vadd.xlane.f32.xlu1 %v4370_v31 }
0x2792   : > { %v4373_v60 = vsel %vm441_vm0, %v4369_v32, 0.0 }
0x2795   : > { %4374 = vadd.xlane.f32.xlu1 %v4373_v60 }
0x281e   : > { %v4372_v33 = vpop.xlane.xlu1 %4371 }
0x281f   : > { %v4376_v54 = vmul.f32 0.03125, %v4372_v33 }
0x2821   : > { %v4378_v34 = vsub.f32 %v4368_v30, %v4376_v54  ;;  %v5273_v30 = vld [vmem:[%s7514_s3 + $0x16] ss:$0 sm:$0xff] }
0x2822   : > { %v4375_v22 = vpop.xlane.xlu1 %4374 }
0x2823   : > { %v4377_v23 = vmul.f32 0.03125, %v4375_v22  ;;  %v4380_v37 = vmul.f32 %v4378_v34, %v4378_v34 }
0x2825   : > { %v4379_v47 = vsub.f32 %v4369_v32, %v4377_v23  ;;  %v4382_v38 = vsel %vm441_vm0, %v4380_v37, 0.0 }
0x2826   : > { %4383 = vadd.xlane.f32.xlu1 %v4382_v38 }
0x2827   : > { %v4381_v39 = vmul.f32 %v4379_v47, %v4379_v47 }
0x2829   : > { %v4385_v48 = vsel %vm441_vm0, %v4381_v39, 0.0 }
0x282a   : > { %4386 = vadd.xlane.f32.xlu1 %v4385_v48 }
0x28b3   : > { %v4384_v17 = vpop.xlane.xlu1 %4383 }
0x28b4   : > { %v4388_v7 = vmul.f32 0.03125, %v4384_v17 }
0x28b6   : > { %v4390_v9 = vadd.f32 1e-12, %v4388_v7 }
0x28b7   : > { %v4387_v40 = vpop.xlane.xlu1 %4386 }
0x28b8   : > { %6258 = vrsqrt.f32 %v4390_v9  ;;  %v4389_v29 = vmul.f32 0.03125, %v4387_v40 }
0x28ba   : > { %v4391_v41 = vadd.f32 1e-12, %v4389_v29 }
0x28bc   : > { %6260 = vrsqrt.f32 %v4391_v41  ;;  %v6176_v41 = vld [vmem:[%s7516_s5 + $0x80] sm:$0xff]  }
0x28bd   : > { %5943 = vmatpush3.bf16.msra.mxu1 %v6176_v41 }
0x28be   : > { %5944 = vmatprep.subr.bf16.mxu1 %v6351_v24 }
0x28c2   : > { %v6259_v35 = vpop.eup %6258 }
0x28c3   : > { %v4394_v12 = vmul.f32 %v6259_v35, %v4378_v34  ;;  %v6177_v35 = vld [vmem:[%s7516_s5 + $0x88] sm:$0xff]  }
0x28c4   : > { %5945 = vmatpush3.bf16.msra.mxu1 %v6177_v35 }
0x28c5   : > { %v4400_v44 = vmul.f32 %v5255_v42, %v4394_v12  ;;  %5950 = vmatprep.subr.bf16.mxu1 %v6351_v24 }
0x28c6   : > { %v6261_v45 = vpop.eup %6260 }
0x28c7   : > { %v4395_v21 = vmul.f32 %v6261_v45, %v4379_v47  ;;  %v4406_v63 = vadd.f32 %v5256_v46, %v4400_v44 }
0x28c9   : > { %v4401_v50 = vmul.f32 %v5255_v42, %v4395_v21 }
0x28cb   : > { %v4407_v53 = vadd.f32 %v5256_v46, %v4401_v50 }
0x28cd   : > { %v4408_v55 = vpack.c.bf16 %v4407_v53, %v4406_v63 }
0x28cf   : > { %5927 = vmatmul.mubr.msk.bf16.vlgmr.msra.gmra.mrb[92].mxu0 %vm441_vm0, %v4408_v55 }
0x28d0   : > { %5938 = vmatprep.mubr.msk.bf16.mxu0 %vm6352_vm13, %v6351_v24  ;;  %5931 = vmatpush3.bf16.msra.mxu0 %v6172_v56 }
0x28d1   : > { %5932 = vmatprep.subr.bf16.mxu0 %v6351_v24 }
0x28d4   : > { %5933 = vmatpush3.bf16.msra.mxu0 %v6173_v36 }
0x28d5   : > { %5934 = vmatprep.subr.bf16.mxu0 %v6351_v24 }
0x28d8   : > { %5935 = vmatpush3.bf16.msra.mxu0 %v6174_v57  ;;  %v5280_v57 = vld [vmem:[%s7514_s3 + $0x18] ss:$0 sm:$0xff] }
0x28d9   : > { %5936 = vmatprep.subr.bf16.mxu0 %v6351_v24 }
0x28dc   : > { %5937 = vmatpush3.bf16.msra.mxu0 %v6175_v6 }
0x29a2   : > { %v4467_v52 = vpop.f32.mrb[92].mxu0 }
0x29a3   : > { %v4468_v51 = vadd.f32 %v5261_v49, %v4467_v52  ;;  %v5928_v58 = vpop.f32.mrb[93].mxu0 }
0x29a4   : > { %v4470_v59 = vpop.f32.mrb[94].mxu0  ;;  %v5285_v58 = vld [vmem:[%s7514_s3 + $0x2] ss:$0 sm:$0xff] }
0x29a5   : > { %v4474_v61 = vmul.f32 %v4468_v51, %v4468_v51  ;;  %v4471_v62 = vadd.f32 %v5261_v49, %v4470_v59  ;;  %v5929_v0 = vpop.f32.mrb[95].mxu0 }
0x29a7   : > { %v4476_v1 = vmul.f32 %v4474_v61, %v4468_v51  ;;  %v4475_v2 = vmul.f32 %v4471_v62, %v4471_v62 }
0x29a9   : > { %v4478_v11 = vmul.f32 0.044715, %v4476_v1  ;;  %v4477_v3 = vmul.f32 %v4475_v2, %v4471_v62 }
0x29ab   : > { %v4480_v4 = vadd.f32 %v4478_v11, %v4468_v51  ;;  %v4479_v8 = vmul.f32 0.044715, %v4477_v3 }
0x29ad   : > { %v4482_v10 = vmul.f32 0.7978846, %v4480_v4  ;;  %v4481_v25 = vadd.f32 %v4479_v8, %v4471_v62 }
0x29af   : > { %6262 = vtanh.f32 %v4482_v10  ;;  %v4483_v5 = vmul.f32 0.7978846, %v4481_v25 }
0x29b1   : > { %6264 = vtanh.f32 %v4483_v5 }
0x29b9   : > { %v6263_v16 = vpop.eup %6262 }
0x29ba   : > { %v4486_v19 = vadd.f32 1.0, %v6263_v16 }
0x29bb   : > { %v6265_v14 = vpop.eup %6264 }
0x29bc   : > { %v4488_v18 = vmul.f32 0.5, %v4486_v19  ;;  %v4487_v20 = vadd.f32 1.0, %v6265_v14 }
0x29be   : > { %v4489_v13 = vmul.f32 0.5, %v4487_v20  ;;  %v4490_v26 = vmul.f32 %v4488_v18, %v4468_v51 }
0x29c0   : > { %v4491_v27 = vmul.f32 %v4489_v13, %v4471_v62 }
0x29c2   : > { %v4492_v28 = vpack.c.bf16 %v4491_v27, %v4490_v26 }
0x29c4   : > { %5939 = vmatmul.mubr.msk.bf16.vlgmr.msra.gmra.mrb[96].mxu0 %vm2629_vm5, %v4492_v28 }
0x2a97   : > { %v4567_v31 = vpop.f32.mrb[96].mxu0 }
0x2a98   : > { %v4568_v32 = vadd.f32 %v5273_v30, %v4567_v31  ;;  %v5940_v60 = vpop.f32.mrb[97].mxu0 }
0x2a99   : > { %v4570_v33 = vpop.f32.mrb[98].mxu0 }
0x2a9a   : > { %v4574_v54 = vadd.f32 %v4568_v32, %v4406_v63  ;;  %v4571_v34 = vadd.f32 %v5273_v30, %v4570_v33  ;;  %v5941_v22 = vpop.f32.mrb[99].mxu0  ;;  %v6278_v33 = vld [vmem:[%s7517_s6] sm:$0xff]  }
0x2a9c   : > { %v4575_v23 = vadd.f32 %v4571_v34, %v4407_v53  ;;  %v4576_v37 = vsel %vm441_vm0, %v4574_v54, 0.0  ;;  %v5279_v53 = vld [vmem:[%s7514_s3 + $0x17] ss:$0 sm:$0xff]  ;;  %v6279_v34 = vld [vmem:[%s7517_s6 + $0x8] sm:$0xff]  }
0x2a9d   : > { %4577 = vadd.xlane.f32.xlu1 %v4576_v37  ;;  %v4749_v22 = vsel %vm441_vm0, %v6279_v34, 0 }
0x2a9e   : > { %v4579_v47 = vsel %vm441_vm0, %v4575_v23, 0.0 }
0x2aa1   : > { %4580 = vadd.xlane.f32.xlu1 %v4579_v47  ;;  %v6281_v47 = vld [vmem:[%s7517_s6 + $0x18] sm:$0xff]  }
0x2b2a   : > { %v4578_v38 = vpop.xlane.xlu1 %4577 }
0x2b2b   : > { %v4582_v39 = vmul.f32 0.03125, %v4578_v38  ;;  %v4755_v38 = vsel %vm441_vm0, %v6281_v47, 0 }
0x2b2d   : > { %v4584_v48 = vsub.f32 %v4574_v54, %v4582_v39  ;;  %v4746_v54 = vsel %vm441_vm0, %v6278_v33, 0  ;;  %v6282_v39 = vld [vmem:[%s7517_s6 + $0x20] sm:$0xff]  }
0x2b2e   : > { %v4581_v43 = vpop.xlane.xlu1 %4580 }
0x2b2f   : > { %v4583_v15 = vmul.f32 0.03125, %v4581_v43  ;;  %v4586_v17 = vmul.f32 %v4584_v48, %v4584_v48 }
0x2b31   : > { %v4585_v7 = vsub.f32 %v4575_v23, %v4583_v15  ;;  %v4588_v9 = vsel %vm441_vm0, %v4586_v17, 0.0  ;;  %v6280_v23 = vld [vmem:[%s7517_s6 + $0x10] sm:$0xff]  }
0x2b32   : > { %4589 = vadd.xlane.f32.xlu0 %v4588_v9  ;;  %v4752_v37 = vsel %vm441_vm0, %v6280_v23, 0 }
0x2b33   : > { %v4587_v40 = vmul.f32 %v4585_v7, %v4585_v7 }
0x2b35   : > { %v4591_v29 = vsel %vm441_vm0, %v4587_v40, 0.0 }
0x2b36   : > { %4592 = vadd.xlane.f32.xlu1 %v4591_v29 }
0x2bbf   : > { %v4590_v12 = vpop.xlane.xlu0 %4589 }
0x2bc0   : > { %v4594_v42 = vmul.f32 0.03125, %v4590_v12 }
0x2bc2   : > { %v4596_v45 = vadd.f32 1e-12, %v4594_v42  ;;  %v6283_v42 = vld [vmem:[%s7517_s6 + $0x28] sm:$0xff]  }
0x2bc3   : > { %v4593_v44 = vpop.xlane.xlu1 %4592 }
0x2bc4   : > { %6266 = vrsqrt.f32 %v4596_v45  ;;  %v4595_v21 = vmul.f32 0.03125, %v4593_v44  ;;  %v4761_v45 = vsel %vm441_vm0, %v6283_v42, 0  ;;  %v6284_v44 = vld [vmem:[%s7517_s6 + $0x30] sm:$0xff]  }
0x2bc6   : > { %v4597_v46 = vadd.f32 1e-12, %v4595_v21  ;;  %v4764_v21 = vsel %vm441_vm0, %v6284_v44, 0 }
0x2bc8   : > { %6268 = vrsqrt.f32 %v4597_v46  ;;  %v6285_v46 = vld [vmem:[%s7517_s6 + $0x38] sm:$0xff]  }
0x2bce   : > { %v6267_v50 = vpop.eup %6266 }
0x2bcf   : > { %v4600_v63 = vmul.f32 %v6267_v50, %v4584_v48  ;;  %v4758_v48 = vsel %vm441_vm0, %v6282_v39, 0  ;;  %v4767_v50 = vsel %vm441_vm0, %v6285_v46, 0 }
0x2bd1   : > { %v4606_v56 = vmul.f32 %v5279_v53, %v4600_v63 }
0x2bd2   : > { %v6269_v55 = vpop.eup %6268 }
0x2bd3   : > { %v4601_v36 = vmul.f32 %v6269_v55, %v4585_v7  ;;  %v4612_v49 = vadd.f32 %v5280_v57, %v4606_v56 }
0x2bd5   : > { %v4607_v6 = vmul.f32 %v5279_v53, %v4601_v36 }
0x2bd7   : > { %v4613_v52 = vadd.f32 %v5280_v57, %v4607_v6 }
0x2bd9   : > { %v4614_v51 = vpack.c.bf16 %v4613_v52, %v4612_v49 }
0x2bdb   : > { %5947 = vmatmul.mubr.msk.bf16.vlgmr.msra.gmra.mrb[100].mxu1 %vm441_vm0, %v4614_v51 }
0x2bdc   : > { %5966 = vmatprep.mubr.msk.bf16.mxu1 %vm6352_vm13, %v6351_v24  ;;  %5951 = vmatpush3.bf16.xpose.msra.mxu1 %v4746_v54 }
0x2bdd   : > { %5952 = vmatprep.subr.bf16.mxu1 %v6351_v24 }
0x2be4   : > { %5953 = vmatpush3.bf16.xpose.msra.mxu1 %v4749_v22 }
0x2be5   : > { %5954 = vmatprep.subr.bf16.mxu1 %v6351_v24 }
0x2bec   : > { %5955 = vmatpush3.bf16.xpose.msra.mxu1 %v4752_v37 }
0x2bed   : > { %5956 = vmatprep.subr.bf16.mxu1 %v6351_v24 }
0x2bf4   : > { %5957 = vmatpush3.bf16.xpose.msra.mxu1 %v4755_v38 }
0x2bf5   : > { %5958 = vmatprep.subr.bf16.mxu1 %v6351_v24 }
0x2bfc   : > { %5959 = vmatpush3.bf16.xpose.msra.mxu1 %v4758_v48 }
0x2bfd   : > { %5960 = vmatprep.subr.bf16.mxu1 %v6351_v24 }
0x2c04   : > { %5961 = vmatpush3.bf16.xpose.msra.mxu1 %v4761_v45 }
0x2c05   : > { %5962 = vmatprep.subr.bf16.mxu1 %v6351_v24 }
0x2c0c   : > { %5963 = vmatpush3.bf16.xpose.msra.mxu1 %v4764_v21 }
0x2c0d   : > { %5964 = vmatprep.subr.bf16.mxu1 %v6351_v24  ;;  %v5289_v24 = vld [vmem:[%s7514_s3 + $0x3] ss:$0 sm:$0xff] }
0x2c14   : > { %5965 = vmatpush3.bf16.xpose.msra.mxu1 %v4767_v50 }
0x2cae   : > { %v4674_v59 = vpop.f32.mrb[100].mxu1 }
0x2caf   : > { %v4675_v61 = vadd.f32 %v5285_v58, %v4674_v59  ;;  %v5948_v62 = vpop.f32.mrb[101].mxu1  ;;  %v5290_v59 = vld [vmem:[%s7514_s3 + $0x4] ss:$0 sm:$0xff] }
0x2cb0   : > { %v4677_v0 = vpop.f32.mrb[102].mxu1 }
0x2cb1   : > { %v4681_v1 = vmul.f32 %v4675_v61, %v4675_v61  ;;  %v4678_v2 = vadd.f32 %v5285_v58, %v4677_v0  ;;  %v5949_v11 = vpop.f32.mrb[103].mxu1 }
0x2cb3   : > { %v4683_v3 = vmul.f32 %v4681_v1, %v4675_v61  ;;  %v4682_v4 = vmul.f32 %v4678_v2, %v4678_v2 }
0x2cb5   : > { %v4685_v8 = vmul.f32 0.044715, %v4683_v3  ;;  %v4684_v10 = vmul.f32 %v4682_v4, %v4678_v2  ;;  %v4741_v3 = vld [vmem:[%s7514_s3 + $0x28] sm:$0xff] }
0x2cb7   : > { %v4687_v25 = vadd.f32 %v4685_v8, %v4675_v61  ;;  %v4686_v5 = vmul.f32 0.044715, %v4684_v10 }
0x2cb9   : > { %v4689_v16 = vmul.f32 0.7978846, %v4687_v25  ;;  %v4688_v19 = vadd.f32 %v4686_v5, %v4678_v2 }
0x2cbb   : > { %v4690_v14 = vmul.f32 0.7978846, %v4688_v19  ;;  %6270 = vtanh.f32 %v4689_v16 }
0x2cbd   : > { %6272 = vtanh.f32 %v4690_v14 }
0x2cc5   : > { %v6271_v18 = vpop.eup %6270 }
0x2cc6   : > { %v4693_v20 = vadd.f32 1.0, %v6271_v18 }
0x2cc7   : > { %v6273_v13 = vpop.eup %6272 }
0x2cc8   : > { %v4695_v26 = vmul.f32 0.5, %v4693_v20  ;;  %v4694_v27 = vadd.f32 1.0, %v6273_v13 }
0x2cca   : > { %v4697_v28 = vmul.f32 %v4695_v26, %v4675_v61  ;;  %v4696_v30 = vmul.f32 0.5, %v4694_v27 }
0x2ccc   : > { %v4701_v31 = vsel %vm441_vm0, %v4697_v28, 0.0  ;;  %v4698_v32 = vmul.f32 %v4696_v30, %v4678_v2  ;;  %v4740_v2 = vld [vmem:[%s7514_s3 + $0x20] sm:$0xff] }
0x2ccd   : > { %4702 = vadd.xlane.f32.xlu1 %v4701_v31 }
0x2cce   : > { %v4704_v60 = vsel %vm441_vm0, %v4698_v32, 0.0 }
0x2cd1   : > { %4705 = vadd.xlane.f32.xlu1 %v4704_v60 }
0x2d5a   : > { %v4703_v43 = vpop.xlane.xlu1 %4702 }
0x2d5b   : > { %v4707_v15 = vmul.f32 0.03125, %v4703_v43 }
0x2d5d   : > { %v4709_v17 = vsub.f32 %v4697_v28, %v4707_v15 }
0x2d5e   : > { %v4706_v7 = vpop.xlane.xlu1 %4705 }
0x2d5f   : > { %v4708_v9 = vmul.f32 0.03125, %v4706_v7  ;;  %v4711_v40 = vmul.f32 %v4709_v17, %v4709_v17 }
0x2d61   : > { %v4710_v29 = vsub.f32 %v4698_v32, %v4708_v9  ;;  %v4713_v41 = vsel %vm441_vm0, %v4711_v40, 0.0 }
0x2d62   : > { %4714 = vadd.xlane.f32.xlu1 %v4713_v41 }
0x2d63   : > { %v4712_v35 = vmul.f32 %v4710_v29, %v4710_v29 }
0x2d65   : > { %v4716_v12 = vsel %vm441_vm0, %v4712_v35, 0.0 }
0x2d66   : > { %4717 = vadd.xlane.f32.xlu1 %v4716_v12 }
0x2def   : > { %v4715_v63 = vpop.xlane.xlu1 %4714 }
0x2df0   : > { %v4719_v53 = vmul.f32 0.03125, %v4715_v63 }
0x2df2   : > { %v4721_v55 = vadd.f32 1e-12, %v4719_v53 }
0x2df3   : > { %v4718_v56 = vpop.xlane.xlu1 %4717 }
0x2df4   : > { %6274 = vrsqrt.f32 %v4721_v55  ;;  %v4720_v36 = vmul.f32 0.03125, %v4718_v56 }
0x2df6   : > { %v4722_v57 = vadd.f32 1e-12, %v4720_v36 }
0x2df8   : > { %6276 = vrsqrt.f32 %v4722_v57 }
0x2dfe   : > { %v6275_v6 = vpop.eup %6274 }
0x2dff   : > { %v4725_v49 = vmul.f32 %v6275_v6, %v4709_v17 }
0x2e01   : > { %v4731_v51 = vmul.f32 %v5289_v24, %v4725_v49 }
0x2e02   : > { %v6277_v52 = vpop.eup %6276 }
0x2e03   : > { %v4726_v58 = vmul.f32 %v6277_v52, %v4710_v29  ;;  %v4737_v62 = vadd.f32 %v5290_v59, %v4731_v51 }
0x2e05   : > { %v4732_v61 = vmul.f32 %v5289_v24, %v4726_v58 }
0x2e07   : > { %v4738_v0 = vadd.f32 %v5290_v59, %v4732_v61 }
0x2e09   : > { %v4739_v1 = vpack.c.bf16 %v4738_v0, %v4737_v62 }
0x2e0b   : > { %5967 = vmatmul.mubr.msk.bf16.vlgmr.msra.gmra.mrb[104].mxu1 %vm441_vm0, %v4739_v1 }
0x2ede   : > { %v4803_v11 = vpop.f32.mrb[104].mxu1 }
0x2edf   : > { %v4804_v4 = vadd.f32 %v4803_v11, %v4740_v2  ;;  %v5968_v8 = vpop.f32.mrb[105].mxu1 }
0x2ee0   : > { %v4806_v10 = vpop.f32.mrb[106].mxu1 }
0x2ee1   : > { %4810 = vst [vmem:[%s314_s13] sm:$0xff] %v4804_v4  ;;  %v4807_v25 = vadd.f32 %v4806_v10, %v4741_v3  ;;  %v5969_v5 = vpop.f32.mrb[107].mxu1 }
0x2ee3   : > { %4811 = vst [vmem:[%s314_s13 + $0x8] sm:$0xff] %v4807_v25 }
0x2ee4   : > { %6299 = shalt.err (!%p6296_p3)
}
0x2ee5   : > { %s6300_s12 = scalar_lea.hbm %s7468_s23, 256  ;;  %s6304_s19 = scalar_lea.hbm %s7518_s7, 512 }
0x2ee6   : > { %p6301_p4 = scmp.ne.s32.totalorder %s7468_s23, %s6300_s12  ;;  %p6305_p9 = scmp.lt.u32.totalorder %s7468_s23, %s7518_s7 }
0x2ee7   : > { %p6306_p10 = scmp.lt.u32.totalorder %s6304_s19, %s6300_s12  ;;  %p6308_p12 = scmp.lt.u32.totalorder %s6300_s12, %s7468_s23 }
0x2ee8   : > { %p6302_p7 = pnand %p6301_p4, %p6443_p5 }
0x2ee9   : > { %p6307_p11 = por %p6306_p10, %p6305_p9 }
0x2eea   : > { %p6303_p8 = pneg %p6302_p7 }
0x2eeb   : > { %p6309_p13 = por %p6308_p12, %p6307_p11 }
0x2eed   : > { %p6310_p0 = pnand %p6309_p13, %p6303_p8 }
0x2eef   : > { %6313 = shalt.err (!%p6310_p0)
}
0x2ef0   : > { %s6358_s22 = smov 128   ;;  %s6359_s9 = smov 8  }
0x2ef1   : > { %6042 = dma.vmem_to_hbm [thread:$0]  (%p6443_p5), %s7463_s24, 256, %s7468_s23, %s7470_s25, %s6358_s22, %s6358_s22, %s6359_s9  }
0x2ef2 PF: > { %p6048_p1 = scmp.ge.s32.totalorder %s6348_s30, 2  ;;  %s4849_s26 = sand.u32 1, %s6336_s27  }
0x2ef3   : > { %s4850_s10 = scalar_lea.sflag [#allocation3], %s4849_s26 }
0x2ef4   : > { %p6045_p2 = pnand %p6048_p1, %p6447_p6 }
0x2ef6   : > { %6331 = dma.done.wait (!%p6045_p2), %s4850_s10, 256  }
0x2ef7   : > { %6333 = vsyncadd (!%p6045_p2), %s4850_s10, 4294967040  ;;  %p19_p3 = scmp.ge.s32.totalorder %s6430_s11, 4   ;;  %s7526_s27 = smov %s6340_s28 }
0x2ef8   : > { %s7527_s28 = smov %s6344_s29  ;;  %s7528_s29 = smov %s6441_s14 }
0x2ef9   : > { %s7529_s30 = smov %s6430_s11  ;;  %21 = sbr.rel (!%p19_p3) target bundleno = 3 (0x3), region = 133 }
0x2f00   :  { %4863 = vsyncpa [#allocation3], 1 }
0x2f01   :  { %4865 = vsyncpa [#allocation3 + $0x1], 1 }

</bundles_post_ra>
